<compile_context>
chip_gen: v6e
topology: v6e:2x2x1
jax: 0.10.0
libtpu: 0.0.40
codegen_flags: <defaults>
</compile_context>

<pallas_src>
import functools

import jax
import jax.numpy as jnp
from jax.experimental import pallas as pl
from jax.experimental.pallas import tpu as pltpu

LN_EPS = 1e-5      # torch.nn.LayerNorm default
PD_EPS = 1e-6      # F.pairwise_distance default (eps is added to the difference)


def _layernorm(x, gamma, beta):
    mean = jnp.mean(x, axis=-1, keepdims=True)
    var = jnp.mean((x - mean) ** 2, axis=-1, keepdims=True)
    return (x - mean) * jax.lax.rsqrt(var + LN_EPS) * gamma + beta


def local_only_kernel(x_ref,
                      wqkv_ref, wo_ref, bo_ref,
                      g1_ref, be1_ref, w1_ref, bf1_ref, w2_ref, bf2_ref,
                      g2_ref, be2_ref,
                      o_ref, *,
                      num_layers, heads, dim_head,
                      location_indices, max_distance, sigmoid, compute_dtype):
    """One batch element per grid step: 4 transformer blocks -> inner-product
    decoder -> locality mask. All layer weights are VMEM-resident every step."""
    x_in = x_ref[...].astype(jnp.float32)                              # (N, D)
    N, D = x_in.shape
    scale = dim_head ** -0.5
    cdt = compute_dtype
    H = heads

    # ---------------- transformer stack (static unroll over 4 layers) --------
    h = x_in
    for l in range(num_layers):
        # Fused head-batched QKV projection: activations broadcast over the
        # (3*H) "projection" axis, single batched matmul on the MXU.
        hb = jnp.broadcast_to(h.astype(cdt)[None], (3 * H, N, D))      # (3H, N, D)
        qkv = jnp.einsum('hnd,hdk->hnk', hb, wqkv_ref[l],
                         preferred_element_type=jnp.float32)           # (3H, N, Dh)
        q = qkv[:H]                                                    # leading-axis
        k = qkv[H:2 * H]                                               # slices: no
        v = qkv[2 * H:]                                                # lane movement

        dots = jnp.einsum('hnk,hmk->hnm', q.astype(cdt), k.astype(cdt),
                          preferred_element_type=jnp.float32) * scale  # (H, N, N)
        dots = dots - jnp.max(dots, axis=-1, keepdims=True)
        e = jnp.exp(dots)
        attn = e * pl.reciprocal(jnp.sum(e, axis=-1, keepdims=True), approx=True)

        av = jnp.einsum('hnm,hmk->hnk', attn.astype(cdt), v.astype(cdt),
                        preferred_element_type=jnp.float32)            # (H, N, Dh)
        # Contract heads directly against w_out stored as (H, Dh, D): the
        # lane-axis concat of head outputs disappears (sum over the head axis).
        per_head = jnp.einsum('hnk,hkd->hnd', av.astype(cdt), wo_ref[l],
                              preferred_element_type=jnp.float32)      # (H, N, D)
        mhsa = jnp.sum(per_head, axis=0) + bo_ref[l]                   # (N, D)

        # residual + LN1 (dropout = identity at inference)
        y = _layernorm(mhsa + h, g1_ref[l], be1_ref[l])

        # position-wise FFN (ReLU)
        hid = jnp.maximum(
            jnp.dot(y.astype(cdt), w1_ref[l],
                    preferred_element_type=jnp.float32) + bf1_ref[l], 0.0)
        ffn = jnp.dot(hid.astype(cdt), w2_ref[l],
                      preferred_element_type=jnp.float32) + bf2_ref[l]

        # residual + LN2
        h = _layernorm(ffn + y, g2_ref[l], be2_ref[l])

    # ---------------- InnerProductDecoder: sigmoid(h @ h^T) ------------------
    hc = h.astype(cdt)
    prod = jax.lax.dot_general(hc, hc, (((1,), (1,)), ((), ())),
                               preferred_element_type=jnp.float32)     # (N, N)
    adj = jax.nn.sigmoid(prod) if sigmoid else prod

    # ---------------- LocalOnly distance mask --------------------------------
    # dist[i, j] = ||pos_i - pos_j + eps||_2 over the location features, matching
    # F.pairwise_distance applied to all N*N (source-major) object pairs.
    # TODO(synk): utils.state_to_source_sink_indices(num_obj) is assumed to
    # enumerate all num_obj**2 (source, target) pairs source-major.
    xt = x_in.T                                                        # (D, N)
    d2 = jnp.zeros((N, N), jnp.float32)
    for idx in location_indices:                                       # static unroll
        diff = x_in[:, idx:idx + 1] - xt[idx:idx + 1, :] + PD_EPS      # (N, N)
        d2 = d2 + diff * diff
    in_range = jnp.sqrt(d2) < max_distance

    o_ref[...] = jnp.where(in_range, adj, 0.0)


def local_only_forward(x, params, *, heads, dim_head, location_indices,
                       max_distance, sigmoid=True, compute_dtype=jnp.bfloat16):
    """LocalOnly(AttentionGraphPredictor) forward.  x: (B, N, D) float32.
    Returns (B, N*N) locality-masked edge predictions (source-major pairs)."""
    B, N, D = x.shape
    L = params["w_q"].shape[0]

    # Matmul weights are fed to the MXU in `compute_dtype` (bf16 by default,
    # set compute_dtype=jnp.float32 for bit-closer parity with the f32 reference);
    # biases / LayerNorm params stay f32 (post-accumulation adds).
    mm = lambda a: a.astype(compute_dtype)
    # Fuse Q/K/V into one stacked weight so the kernel does a single head-batched
    # projection matmul per layer.
    w_qkv = jnp.concatenate(
        [params["w_q"], params["w_k"], params["w_v"]], axis=1)         # (L, 3H, D, Dh)
    args = (mm(w_qkv), mm(params["w_out"]), params["b_out"],
            params["ln1_g"], params["ln1_b"],
            mm(params["w1"]), params["b1"], mm(params["w2"]), params["b2"],
            params["ln2_g"], params["ln2_b"])

    # Full-array blocks with constant index_map: weights are DMA'd once and stay
    # resident in VMEM across all grid steps.
    def full_spec(a):
        nd = a.ndim
        return pl.BlockSpec(a.shape, lambda b: (0,) * nd)

    kernel = functools.partial(
        local_only_kernel, num_layers=L, heads=heads, dim_head=dim_head,
        location_indices=tuple(int(i) for i in location_indices),
        max_distance=float(max_distance), sigmoid=sigmoid,
        compute_dtype=compute_dtype)

    out = pl.pallas_call(
        kernel,
        out_shape=jax.ShapeDtypeStruct((B, N, N), jnp.float32),
        grid_spec=pltpu.PrefetchScalarGridSpec(
            num_scalar_prefetch=0,
            grid=(B,),
            in_specs=[pl.BlockSpec((pl.Squeezed(), N, D), lambda b: (b, 0, 0))]
                     + [full_spec(a) for a in args],
            out_specs=pl.BlockSpec((pl.Squeezed(), N, N), lambda b: (b, 0, 0)),
        ),
        compiler_params=pltpu.CompilerParams(
            dimension_semantics=("parallel",)),   # v7x: the 2 TCs split the batch
    )(x, *args)

    # LocalOnly returns per-pair values flattened to (B, num_obj**2); the final
    # flatten is layout plumbing outside the kernel (store volume is ~0.5 KB).
    return out.reshape(B, N * N)


def init_params(key, num_layers, obj_dim, heads, dim_head, dim_linear):
    """Random params mirroring 4x TransformerBlock + InnerProductDecoder.
    QKV / output projections are stored per-head, (in, out)-major; porting real
    PyTorch weights requires reshaping the einops '(h qkv d)' layout accordingly
    (the layout is self-consistent for the random init used here)."""
    ks = jax.random.split(key, 6)
    s = 0.02
    L, H = num_layers, heads
    return {
        "w_q":  s * jax.random.normal(ks[0], (L, H, obj_dim, dim_head), jnp.float32),
        "w_k":  s * jax.random.normal(ks[1], (L, H, obj_dim, dim_head), jnp.float32),
        "w_v":  s * jax.random.normal(ks[2], (L, H, obj_dim, dim_head), jnp.float32),
        "w_out": s * jax.random.normal(ks[3], (L, H, dim_head, obj_dim), jnp.float32),
        "b_out": jnp.zeros((L, 1, obj_dim), jnp.float32),
        "ln1_g": jnp.ones((L, 1, obj_dim), jnp.float32),
        "ln1_b": jnp.zeros((L, 1, obj_dim), jnp.float32),
        "w1":   s * jax.random.normal(ks[4], (L, obj_dim, dim_linear), jnp.float32),
        "b1":   jnp.zeros((L, 1, dim_linear), jnp.float32),
        "w2":   s * jax.random.normal(ks[5], (L, dim_linear, obj_dim), jnp.float32),
        "b2":   jnp.zeros((L, 1, obj_dim), jnp.float32),
        "ln2_g": jnp.ones((L, 1, obj_dim), jnp.float32),
        "ln2_b": jnp.zeros((L, 1, obj_dim), jnp.float32),
    }


if __name__ == "__main__":
    B, NUM_OBJ, OBJ_DIM = 2, 8, 32
    NUM_HEADS, DIM_HEAD, DIM_LINEAR, NUM_LAYERS = 4, 16, 64, 4
    LOCATION_INDICES = (0, 1)       # which object features are coordinates
    MAX_DISTANCE = 2.0

    key = jax.random.PRNGKey(0)
    kx, kp = jax.random.split(key)
    x = jax.random.normal(kx, (B, NUM_OBJ, OBJ_DIM), jnp.float32)
    params = init_params(kp, NUM_LAYERS, OBJ_DIM, NUM_HEADS, DIM_HEAD, DIM_LINEAR)

    out = local_only_forward(
        x, params, heads=NUM_HEADS, dim_head=DIM_HEAD,
        location_indices=LOCATION_INDICES, max_distance=MAX_DISTANCE,
        sigmoid=True)
    jax.block_until_ready(out)
    assert out.shape == (B, NUM_OBJ * NUM_OBJ)
    print("KERNEL_OK")
</pallas_src>

<mosaic_0001>
module attributes {stable_mosaic.version = 11 : i64} {
  func.func @local_only_kernel(%arg0: i32, %arg1: memref<1x8x32xf32, #tpu.memory_space<vmem>>, %arg2: memref<4x12x32x16xbf16, #tpu.memory_space<vmem>>, %arg3: memref<4x4x16x32xbf16, #tpu.memory_space<vmem>>, %arg4: memref<4x1x32xf32, #tpu.memory_space<vmem>>, %arg5: memref<4x1x32xf32, #tpu.memory_space<vmem>>, %arg6: memref<4x1x32xf32, #tpu.memory_space<vmem>>, %arg7: memref<4x32x64xbf16, #tpu.memory_space<vmem>>, %arg8: memref<4x1x64xf32, #tpu.memory_space<vmem>>, %arg9: memref<4x64x32xbf16, #tpu.memory_space<vmem>>, %arg10: memref<4x1x32xf32, #tpu.memory_space<vmem>>, %arg11: memref<4x1x32xf32, #tpu.memory_space<vmem>>, %arg12: memref<4x1x32xf32, #tpu.memory_space<vmem>>, %arg13: memref<1x8x8xf32, #tpu.memory_space<vmem>>) attributes {dimension_semantics = [#tpu.dimension_semantics<parallel>], iteration_bounds = array<i64: 2>, scalar_prefetch = 0 : i64, scratch_operands = 0 : i64, tpu.core_type = #tpu.core_type<tc>, window_params = [{transform_indices = @transform_0, window_bounds = array<i64: 1, 8, 32>}, {pipeline_mode = #tpu.pipeline_mode<synchronous>, transform_indices = @transform_1, window_bounds = array<i64: 4, 12, 32, 16>}, {pipeline_mode = #tpu.pipeline_mode<synchronous>, transform_indices = @transform_2, window_bounds = array<i64: 4, 4, 16, 32>}, {pipeline_mode = #tpu.pipeline_mode<synchronous>, transform_indices = @transform_3, window_bounds = array<i64: 4, 1, 32>}, {pipeline_mode = #tpu.pipeline_mode<synchronous>, transform_indices = @transform_4, window_bounds = array<i64: 4, 1, 32>}, {pipeline_mode = #tpu.pipeline_mode<synchronous>, transform_indices = @transform_5, window_bounds = array<i64: 4, 1, 32>}, {pipeline_mode = #tpu.pipeline_mode<synchronous>, transform_indices = @transform_6, window_bounds = array<i64: 4, 32, 64>}, {pipeline_mode = #tpu.pipeline_mode<synchronous>, transform_indices = @transform_7, window_bounds = array<i64: 4, 1, 64>}, {pipeline_mode = #tpu.pipeline_mode<synchronous>, transform_indices = @transform_8, window_bounds = array<i64: 4, 64, 32>}, {pipeline_mode = #tpu.pipeline_mode<synchronous>, transform_indices = @transform_9, window_bounds = array<i64: 4, 1, 32>}, {pipeline_mode = #tpu.pipeline_mode<synchronous>, transform_indices = @transform_10, window_bounds = array<i64: 4, 1, 32>}, {pipeline_mode = #tpu.pipeline_mode<synchronous>, transform_indices = @transform_11, window_bounds = array<i64: 4, 1, 32>}, {transform_indices = @transform_12, window_bounds = array<i64: 1, 8, 8>}]} {
    %c0 = arith.constant 0 : index
    %c0_0 = arith.constant 0 : index
    %c0_1 = arith.constant 0 : index
    %0 = vector.load %arg1[%c0, %c0_0, %c0_1] : memref<1x8x32xf32, #tpu.memory_space<vmem>>, vector<1x8x32xf32>
    %1 = vector.shape_cast %0 : vector<1x8x32xf32> to vector<8x32xf32>
    %2 = arith.truncf %1 : vector<8x32xf32> to vector<8x32xbf16>
    %3 = vector.shape_cast %2 : vector<8x32xbf16> to vector<1x8x32xbf16>
    %4 = vector.shape_cast %3 : vector<1x8x32xbf16> to vector<1x8x32xbf16>
    %5 = vector.broadcast %4 : vector<1x8x32xbf16> to vector<12x8x32xbf16>
    %c0_2 = arith.constant 0 : index
    %c0_3 = arith.constant 0 : index
    %c0_4 = arith.constant 0 : index
    %c0_5 = arith.constant 0 : index
    %6 = vector.load %arg2[%c0_2, %c0_3, %c0_4, %c0_5] : memref<4x12x32x16xbf16, #tpu.memory_space<vmem>>, vector<1x12x32x16xbf16>
    %7 = vector.shape_cast %6 : vector<1x12x32x16xbf16> to vector<12x32x16xbf16>
    "tpu.trace_start"() <{level = 10 : i32, message = "hnd,hdk->hnk"}> : () -> ()
    %cst = arith.constant dense<0.000000e+00> : vector<12x8x16xf32>
    %8 = tpu.matmul %5, %7, %cst {dimension_numbers = #tpu.dot_dimension_numbers<[2], [1], [1], [2], [0, 0, 0, 1, 1, 2], [0], [0]>} : vector<12x8x32xbf16>, vector<12x32x16xbf16>, vector<12x8x16xf32> -> vector<12x8x16xf32>
    "tpu.trace_stop"() : () -> ()
    %9 = vector.extract_strided_slice %8 {offsets = [0, 0, 0], sizes = [4, 8, 16], strides = [1, 1, 1]} : vector<12x8x16xf32> to vector<4x8x16xf32>
    %10 = vector.extract_strided_slice %8 {offsets = [4, 0, 0], sizes = [4, 8, 16], strides = [1, 1, 1]} : vector<12x8x16xf32> to vector<4x8x16xf32>
    %11 = vector.extract_strided_slice %8 {offsets = [8, 0, 0], sizes = [4, 8, 16], strides = [1, 1, 1]} : vector<12x8x16xf32> to vector<4x8x16xf32>
    %12 = arith.truncf %9 : vector<4x8x16xf32> to vector<4x8x16xbf16>
    %13 = arith.truncf %10 : vector<4x8x16xf32> to vector<4x8x16xbf16>
    "tpu.trace_start"() <{level = 10 : i32, message = "hnk,hmk->hnm"}> : () -> ()
    %cst_6 = arith.constant dense<0.000000e+00> : vector<4x8x8xf32>
    %14 = tpu.matmul %12, %13, %cst_6 {dimension_numbers = #tpu.dot_dimension_numbers<[2], [2], [1], [1], [0, 0, 0, 1, 1, 1], [0], [0]>} : vector<4x8x16xbf16>, vector<4x8x16xbf16>, vector<4x8x8xf32> -> vector<4x8x8xf32>
    "tpu.trace_stop"() : () -> ()
    %cst_7 = arith.constant 2.500000e-01 : f32
    %15 = vector.broadcast %cst_7 : f32 to vector<4x8x8xf32>
    %16 = arith.mulf %14, %15 : vector<4x8x8xf32>
    %cst_8 = arith.constant dense<0xFF800000> : vector<4x8xf32>
    %17 = vector.multi_reduction <maximumf>, %16, %cst_8 [2] : vector<4x8x8xf32> to vector<4x8xf32>
    %18 = vector.shape_cast %17 : vector<4x8xf32> to vector<4x8x1xf32>
    %19 = vector.broadcast %18 : vector<4x8x1xf32> to vector<4x8x8xf32>
    %20 = arith.subf %16, %19 : vector<4x8x8xf32>
    %21 = math.exp %20 : vector<4x8x8xf32>
    %cst_9 = arith.constant dense<0.000000e+00> : vector<4x8xf32>
    %22 = vector.multi_reduction <add>, %21, %cst_9 [2] : vector<4x8x8xf32> to vector<4x8xf32>
    %23 = vector.shape_cast %22 : vector<4x8xf32> to vector<4x8x1xf32>
    %24 = tpu.reciprocal %23 {approx = true} : vector<4x8x1xf32> -> vector<4x8x1xf32>
    %25 = vector.broadcast %24 : vector<4x8x1xf32> to vector<4x8x8xf32>
    %26 = arith.mulf %21, %25 : vector<4x8x8xf32>
    %27 = arith.truncf %26 : vector<4x8x8xf32> to vector<4x8x8xbf16>
    %28 = arith.truncf %11 : vector<4x8x16xf32> to vector<4x8x16xbf16>
    "tpu.trace_start"() <{level = 10 : i32, message = "hnm,hmk->hnk"}> : () -> ()
    %cst_10 = arith.constant dense<0.000000e+00> : vector<4x8x16xf32>
    %29 = tpu.matmul %27, %28, %cst_10 {dimension_numbers = #tpu.dot_dimension_numbers<[2], [1], [1], [2], [0, 0, 0, 1, 1, 2], [0], [0]>} : vector<4x8x8xbf16>, vector<4x8x16xbf16>, vector<4x8x16xf32> -> vector<4x8x16xf32>
    "tpu.trace_stop"() : () -> ()
    %30 = arith.truncf %29 : vector<4x8x16xf32> to vector<4x8x16xbf16>
    %c0_11 = arith.constant 0 : index
    %c0_12 = arith.constant 0 : index
    %c0_13 = arith.constant 0 : index
    %c0_14 = arith.constant 0 : index
    %31 = vector.load %arg3[%c0_11, %c0_12, %c0_13, %c0_14] : memref<4x4x16x32xbf16, #tpu.memory_space<vmem>>, vector<1x4x16x32xbf16>
    %32 = vector.shape_cast %31 : vector<1x4x16x32xbf16> to vector<4x16x32xbf16>
    "tpu.trace_start"() <{level = 10 : i32, message = "hnk,hkd->hnd"}> : () -> ()
    %cst_15 = arith.constant dense<0.000000e+00> : vector<4x8x32xf32>
    %33 = tpu.matmul %30, %32, %cst_15 {dimension_numbers = #tpu.dot_dimension_numbers<[2], [1], [1], [2], [0, 0, 0, 1, 1, 2], [0], [0]>} : vector<4x8x16xbf16>, vector<4x16x32xbf16>, vector<4x8x32xf32> -> vector<4x8x32xf32>
    "tpu.trace_stop"() : () -> ()
    %cst_16 = arith.constant dense<0.000000e+00> : vector<8x32xf32>
    %34 = vector.multi_reduction <add>, %33, %cst_16 [0] : vector<4x8x32xf32> to vector<8x32xf32>
    %c0_17 = arith.constant 0 : index
    %c0_18 = arith.constant 0 : index
    %c0_19 = arith.constant 0 : index
    %35 = vector.load %arg4[%c0_17, %c0_18, %c0_19] : memref<4x1x32xf32, #tpu.memory_space<vmem>>, vector<1x1x32xf32>
    %36 = vector.shape_cast %35 : vector<1x1x32xf32> to vector<1x32xf32>
    %37 = vector.broadcast %36 : vector<1x32xf32> to vector<8x32xf32>
    %38 = arith.addf %34, %37 : vector<8x32xf32>
    %39 = arith.addf %38, %1 : vector<8x32xf32>
    %c0_20 = arith.constant 0 : index
    %c0_21 = arith.constant 0 : index
    %c0_22 = arith.constant 0 : index
    %40 = vector.load %arg5[%c0_20, %c0_21, %c0_22] : memref<4x1x32xf32, #tpu.memory_space<vmem>>, vector<1x1x32xf32>
    %41 = vector.shape_cast %40 : vector<1x1x32xf32> to vector<1x32xf32>
    %c0_23 = arith.constant 0 : index
    %c0_24 = arith.constant 0 : index
    %c0_25 = arith.constant 0 : index
    %42 = vector.load %arg6[%c0_23, %c0_24, %c0_25] : memref<4x1x32xf32, #tpu.memory_space<vmem>>, vector<1x1x32xf32>
    %43 = vector.shape_cast %42 : vector<1x1x32xf32> to vector<1x32xf32>
    %cst_26 = arith.constant dense<0.000000e+00> : vector<8xf32>
    %44 = vector.multi_reduction <add>, %39, %cst_26 [1] : vector<8x32xf32> to vector<8xf32>
    %45 = vector.shape_cast %44 : vector<8xf32> to vector<8x1xf32>
    %cst_27 = arith.constant 3.200000e+01 : f32
    %46 = vector.broadcast %cst_27 : f32 to vector<8x1xf32>
    %47 = arith.divf %45, %46 : vector<8x1xf32>
    %48 = vector.broadcast %47 : vector<8x1xf32> to vector<8x32xf32>
    %49 = arith.subf %39, %48 : vector<8x32xf32>
    %50 = arith.mulf %49, %49 : vector<8x32xf32>
    %cst_28 = arith.constant dense<0.000000e+00> : vector<8xf32>
    %51 = vector.multi_reduction <add>, %50, %cst_28 [1] : vector<8x32xf32> to vector<8xf32>
    %52 = vector.shape_cast %51 : vector<8xf32> to vector<8x1xf32>
    %cst_29 = arith.constant 3.200000e+01 : f32
    %53 = vector.broadcast %cst_29 : f32 to vector<8x1xf32>
    %54 = arith.divf %52, %53 : vector<8x1xf32>
    %55 = vector.broadcast %47 : vector<8x1xf32> to vector<8x32xf32>
    %56 = arith.subf %39, %55 : vector<8x32xf32>
    %cst_30 = arith.constant 9.99999974E-6 : f32
    %57 = vector.broadcast %cst_30 : f32 to vector<8x1xf32>
    %58 = arith.addf %54, %57 : vector<8x1xf32>
    %59 = math.rsqrt %58 : vector<8x1xf32>
    %60 = vector.broadcast %59 : vector<8x1xf32> to vector<8x32xf32>
    %61 = arith.mulf %56, %60 : vector<8x32xf32>
    %62 = vector.broadcast %41 : vector<1x32xf32> to vector<8x32xf32>
    %63 = arith.mulf %61, %62 : vector<8x32xf32>
    %64 = vector.broadcast %43 : vector<1x32xf32> to vector<8x32xf32>
    %65 = arith.addf %63, %64 : vector<8x32xf32>
    %66 = arith.truncf %65 : vector<8x32xf32> to vector<8x32xbf16>
    %c0_31 = arith.constant 0 : index
    %c0_32 = arith.constant 0 : index
    %c0_33 = arith.constant 0 : index
    %67 = vector.load %arg7[%c0_31, %c0_32, %c0_33] : memref<4x32x64xbf16, #tpu.memory_space<vmem>>, vector<1x32x64xbf16>
    %68 = vector.shape_cast %67 : vector<1x32x64xbf16> to vector<32x64xbf16>
    %cst_34 = arith.constant dense<0.000000e+00> : vector<8x64xf32>
    %69 = tpu.matmul %66, %68, %cst_34 {dimension_numbers = #tpu.dot_dimension_numbers<[1], [0], [0], [1], [0, 0, 1, 1], [], []>} : vector<8x32xbf16>, vector<32x64xbf16>, vector<8x64xf32> -> vector<8x64xf32>
    %c0_35 = arith.constant 0 : index
    %c0_36 = arith.constant 0 : index
    %c0_37 = arith.constant 0 : index
    %70 = vector.load %arg8[%c0_35, %c0_36, %c0_37] : memref<4x1x64xf32, #tpu.memory_space<vmem>>, vector<1x1x64xf32>
    %71 = vector.shape_cast %70 : vector<1x1x64xf32> to vector<1x64xf32>
    %72 = vector.broadcast %71 : vector<1x64xf32> to vector<8x64xf32>
    %73 = arith.addf %69, %72 : vector<8x64xf32>
    %cst_38 = arith.constant 0.000000e+00 : f32
    %74 = vector.broadcast %cst_38 : f32 to vector<8x64xf32>
    %75 = arith.maximumf %73, %74 : vector<8x64xf32>
    %76 = arith.truncf %75 : vector<8x64xf32> to vector<8x64xbf16>
    %c0_39 = arith.constant 0 : index
    %c0_40 = arith.constant 0 : index
    %c0_41 = arith.constant 0 : index
    %77 = vector.load %arg9[%c0_39, %c0_40, %c0_41] : memref<4x64x32xbf16, #tpu.memory_space<vmem>>, vector<1x64x32xbf16>
    %78 = vector.shape_cast %77 : vector<1x64x32xbf16> to vector<64x32xbf16>
    %cst_42 = arith.constant dense<0.000000e+00> : vector<8x32xf32>
    %79 = tpu.matmul %76, %78, %cst_42 {dimension_numbers = #tpu.dot_dimension_numbers<[1], [0], [0], [1], [0, 0, 1, 1], [], []>} : vector<8x64xbf16>, vector<64x32xbf16>, vector<8x32xf32> -> vector<8x32xf32>
    %c0_43 = arith.constant 0 : index
    %c0_44 = arith.constant 0 : index
    %c0_45 = arith.constant 0 : index
    %80 = vector.load %arg10[%c0_43, %c0_44, %c0_45] : memref<4x1x32xf32, #tpu.memory_space<vmem>>, vector<1x1x32xf32>
    %81 = vector.shape_cast %80 : vector<1x1x32xf32> to vector<1x32xf32>
    %82 = vector.broadcast %81 : vector<1x32xf32> to vector<8x32xf32>
    %83 = arith.addf %79, %82 : vector<8x32xf32>
    %84 = arith.addf %83, %65 : vector<8x32xf32>
    %c0_46 = arith.constant 0 : index
    %c0_47 = arith.constant 0 : index
    %c0_48 = arith.constant 0 : index
    %85 = vector.load %arg11[%c0_46, %c0_47, %c0_48] : memref<4x1x32xf32, #tpu.memory_space<vmem>>, vector<1x1x32xf32>
    %86 = vector.shape_cast %85 : vector<1x1x32xf32> to vector<1x32xf32>
    %c0_49 = arith.constant 0 : index
    %c0_50 = arith.constant 0 : index
    %c0_51 = arith.constant 0 : index
    %87 = vector.load %arg12[%c0_49, %c0_50, %c0_51] : memref<4x1x32xf32, #tpu.memory_space<vmem>>, vector<1x1x32xf32>
    %88 = vector.shape_cast %87 : vector<1x1x32xf32> to vector<1x32xf32>
    %cst_52 = arith.constant dense<0.000000e+00> : vector<8xf32>
    %89 = vector.multi_reduction <add>, %84, %cst_52 [1] : vector<8x32xf32> to vector<8xf32>
    %90 = vector.shape_cast %89 : vector<8xf32> to vector<8x1xf32>
    %cst_53 = arith.constant 3.200000e+01 : f32
    %91 = vector.broadcast %cst_53 : f32 to vector<8x1xf32>
    %92 = arith.divf %90, %91 : vector<8x1xf32>
    %93 = vector.broadcast %92 : vector<8x1xf32> to vector<8x32xf32>
    %94 = arith.subf %84, %93 : vector<8x32xf32>
    %95 = arith.mulf %94, %94 : vector<8x32xf32>
    %cst_54 = arith.constant dense<0.000000e+00> : vector<8xf32>
    %96 = vector.multi_reduction <add>, %95, %cst_54 [1] : vector<8x32xf32> to vector<8xf32>
    %97 = vector.shape_cast %96 : vector<8xf32> to vector<8x1xf32>
    %cst_55 = arith.constant 3.200000e+01 : f32
    %98 = vector.broadcast %cst_55 : f32 to vector<8x1xf32>
    %99 = arith.divf %97, %98 : vector<8x1xf32>
    %100 = vector.broadcast %92 : vector<8x1xf32> to vector<8x32xf32>
    %101 = arith.subf %84, %100 : vector<8x32xf32>
    %cst_56 = arith.constant 9.99999974E-6 : f32
    %102 = vector.broadcast %cst_56 : f32 to vector<8x1xf32>
    %103 = arith.addf %99, %102 : vector<8x1xf32>
    %104 = math.rsqrt %103 : vector<8x1xf32>
    %105 = vector.broadcast %104 : vector<8x1xf32> to vector<8x32xf32>
    %106 = arith.mulf %101, %105 : vector<8x32xf32>
    %107 = vector.broadcast %86 : vector<1x32xf32> to vector<8x32xf32>
    %108 = arith.mulf %106, %107 : vector<8x32xf32>
    %109 = vector.broadcast %88 : vector<1x32xf32> to vector<8x32xf32>
    %110 = arith.addf %108, %109 : vector<8x32xf32>
    %111 = arith.truncf %110 : vector<8x32xf32> to vector<8x32xbf16>
    %112 = vector.shape_cast %111 : vector<8x32xbf16> to vector<1x8x32xbf16>
    %113 = vector.shape_cast %112 : vector<1x8x32xbf16> to vector<1x8x32xbf16>
    %114 = vector.broadcast %113 : vector<1x8x32xbf16> to vector<12x8x32xbf16>
    %c1 = arith.constant 1 : index
    %c0_57 = arith.constant 0 : index
    %c0_58 = arith.constant 0 : index
    %c0_59 = arith.constant 0 : index
    %115 = vector.load %arg2[%c1, %c0_57, %c0_58, %c0_59] : memref<4x12x32x16xbf16, #tpu.memory_space<vmem>>, vector<1x12x32x16xbf16>
    %116 = vector.shape_cast %115 : vector<1x12x32x16xbf16> to vector<12x32x16xbf16>
    "tpu.trace_start"() <{level = 10 : i32, message = "hnd,hdk->hnk"}> : () -> ()
    %cst_60 = arith.constant dense<0.000000e+00> : vector<12x8x16xf32>
    %117 = tpu.matmul %114, %116, %cst_60 {dimension_numbers = #tpu.dot_dimension_numbers<[2], [1], [1], [2], [0, 0, 0, 1, 1, 2], [0], [0]>} : vector<12x8x32xbf16>, vector<12x32x16xbf16>, vector<12x8x16xf32> -> vector<12x8x16xf32>
    "tpu.trace_stop"() : () -> ()
    %118 = vector.extract_strided_slice %117 {offsets = [0, 0, 0], sizes = [4, 8, 16], strides = [1, 1, 1]} : vector<12x8x16xf32> to vector<4x8x16xf32>
    %119 = vector.extract_strided_slice %117 {offsets = [4, 0, 0], sizes = [4, 8, 16], strides = [1, 1, 1]} : vector<12x8x16xf32> to vector<4x8x16xf32>
    %120 = vector.extract_strided_slice %117 {offsets = [8, 0, 0], sizes = [4, 8, 16], strides = [1, 1, 1]} : vector<12x8x16xf32> to vector<4x8x16xf32>
    %121 = arith.truncf %118 : vector<4x8x16xf32> to vector<4x8x16xbf16>
    %122 = arith.truncf %119 : vector<4x8x16xf32> to vector<4x8x16xbf16>
    "tpu.trace_start"() <{level = 10 : i32, message = "hnk,hmk->hnm"}> : () -> ()
    %cst_61 = arith.constant dense<0.000000e+00> : vector<4x8x8xf32>
    %123 = tpu.matmul %121, %122, %cst_61 {dimension_numbers = #tpu.dot_dimension_numbers<[2], [2], [1], [1], [0, 0, 0, 1, 1, 1], [0], [0]>} : vector<4x8x16xbf16>, vector<4x8x16xbf16>, vector<4x8x8xf32> -> vector<4x8x8xf32>
    "tpu.trace_stop"() : () -> ()
    %cst_62 = arith.constant 2.500000e-01 : f32
    %124 = vector.broadcast %cst_62 : f32 to vector<4x8x8xf32>
    %125 = arith.mulf %123, %124 : vector<4x8x8xf32>
    %cst_63 = arith.constant dense<0xFF800000> : vector<4x8xf32>
    %126 = vector.multi_reduction <maximumf>, %125, %cst_63 [2] : vector<4x8x8xf32> to vector<4x8xf32>
    %127 = vector.shape_cast %126 : vector<4x8xf32> to vector<4x8x1xf32>
    %128 = vector.broadcast %127 : vector<4x8x1xf32> to vector<4x8x8xf32>
    %129 = arith.subf %125, %128 : vector<4x8x8xf32>
    %130 = math.exp %129 : vector<4x8x8xf32>
    %cst_64 = arith.constant dense<0.000000e+00> : vector<4x8xf32>
    %131 = vector.multi_reduction <add>, %130, %cst_64 [2] : vector<4x8x8xf32> to vector<4x8xf32>
    %132 = vector.shape_cast %131 : vector<4x8xf32> to vector<4x8x1xf32>
    %133 = tpu.reciprocal %132 {approx = true} : vector<4x8x1xf32> -> vector<4x8x1xf32>
    %134 = vector.broadcast %133 : vector<4x8x1xf32> to vector<4x8x8xf32>
    %135 = arith.mulf %130, %134 : vector<4x8x8xf32>
    %136 = arith.truncf %135 : vector<4x8x8xf32> to vector<4x8x8xbf16>
    %137 = arith.truncf %120 : vector<4x8x16xf32> to vector<4x8x16xbf16>
    "tpu.trace_start"() <{level = 10 : i32, message = "hnm,hmk->hnk"}> : () -> ()
    %cst_65 = arith.constant dense<0.000000e+00> : vector<4x8x16xf32>
    %138 = tpu.matmul %136, %137, %cst_65 {dimension_numbers = #tpu.dot_dimension_numbers<[2], [1], [1], [2], [0, 0, 0, 1, 1, 2], [0], [0]>} : vector<4x8x8xbf16>, vector<4x8x16xbf16>, vector<4x8x16xf32> -> vector<4x8x16xf32>
    "tpu.trace_stop"() : () -> ()
    %139 = arith.truncf %138 : vector<4x8x16xf32> to vector<4x8x16xbf16>
    %c1_66 = arith.constant 1 : index
    %c0_67 = arith.constant 0 : index
    %c0_68 = arith.constant 0 : index
    %c0_69 = arith.constant 0 : index
    %140 = vector.load %arg3[%c1_66, %c0_67, %c0_68, %c0_69] : memref<4x4x16x32xbf16, #tpu.memory_space<vmem>>, vector<1x4x16x32xbf16>
    %141 = vector.shape_cast %140 : vector<1x4x16x32xbf16> to vector<4x16x32xbf16>
    "tpu.trace_start"() <{level = 10 : i32, message = "hnk,hkd->hnd"}> : () -> ()
    %cst_70 = arith.constant dense<0.000000e+00> : vector<4x8x32xf32>
    %142 = tpu.matmul %139, %141, %cst_70 {dimension_numbers = #tpu.dot_dimension_numbers<[2], [1], [1], [2], [0, 0, 0, 1, 1, 2], [0], [0]>} : vector<4x8x16xbf16>, vector<4x16x32xbf16>, vector<4x8x32xf32> -> vector<4x8x32xf32>
    "tpu.trace_stop"() : () -> ()
    %cst_71 = arith.constant dense<0.000000e+00> : vector<8x32xf32>
    %143 = vector.multi_reduction <add>, %142, %cst_71 [0] : vector<4x8x32xf32> to vector<8x32xf32>
    %c1_72 = arith.constant 1 : index
    %c0_73 = arith.constant 0 : index
    %c0_74 = arith.constant 0 : index
    %144 = vector.load %arg4[%c1_72, %c0_73, %c0_74] : memref<4x1x32xf32, #tpu.memory_space<vmem>>, vector<1x1x32xf32>
    %145 = vector.shape_cast %144 : vector<1x1x32xf32> to vector<1x32xf32>
    %146 = vector.broadcast %145 : vector<1x32xf32> to vector<8x32xf32>
    %147 = arith.addf %143, %146 : vector<8x32xf32>
    %148 = arith.addf %147, %110 : vector<8x32xf32>
    %c1_75 = arith.constant 1 : index
    %c0_76 = arith.constant 0 : index
    %c0_77 = arith.constant 0 : index
    %149 = vector.load %arg5[%c1_75, %c0_76, %c0_77] : memref<4x1x32xf32, #tpu.memory_space<vmem>>, vector<1x1x32xf32>
    %150 = vector.shape_cast %149 : vector<1x1x32xf32> to vector<1x32xf32>
    %c1_78 = arith.constant 1 : index
    %c0_79 = arith.constant 0 : index
    %c0_80 = arith.constant 0 : index
    %151 = vector.load %arg6[%c1_78, %c0_79, %c0_80] : memref<4x1x32xf32, #tpu.memory_space<vmem>>, vector<1x1x32xf32>
    %152 = vector.shape_cast %151 : vector<1x1x32xf32> to vector<1x32xf32>
    %cst_81 = arith.constant dense<0.000000e+00> : vector<8xf32>
    %153 = vector.multi_reduction <add>, %148, %cst_81 [1] : vector<8x32xf32> to vector<8xf32>
    %154 = vector.shape_cast %153 : vector<8xf32> to vector<8x1xf32>
    %cst_82 = arith.constant 3.200000e+01 : f32
    %155 = vector.broadcast %cst_82 : f32 to vector<8x1xf32>
    %156 = arith.divf %154, %155 : vector<8x1xf32>
    %157 = vector.broadcast %156 : vector<8x1xf32> to vector<8x32xf32>
    %158 = arith.subf %148, %157 : vector<8x32xf32>
    %159 = arith.mulf %158, %158 : vector<8x32xf32>
    %cst_83 = arith.constant dense<0.000000e+00> : vector<8xf32>
    %160 = vector.multi_reduction <add>, %159, %cst_83 [1] : vector<8x32xf32> to vector<8xf32>
    %161 = vector.shape_cast %160 : vector<8xf32> to vector<8x1xf32>
    %cst_84 = arith.constant 3.200000e+01 : f32
    %162 = vector.broadcast %cst_84 : f32 to vector<8x1xf32>
    %163 = arith.divf %161, %162 : vector<8x1xf32>
    %164 = vector.broadcast %156 : vector<8x1xf32> to vector<8x32xf32>
    %165 = arith.subf %148, %164 : vector<8x32xf32>
    %cst_85 = arith.constant 9.99999974E-6 : f32
    %166 = vector.broadcast %cst_85 : f32 to vector<8x1xf32>
    %167 = arith.addf %163, %166 : vector<8x1xf32>
    %168 = math.rsqrt %167 : vector<8x1xf32>
    %169 = vector.broadcast %168 : vector<8x1xf32> to vector<8x32xf32>
    %170 = arith.mulf %165, %169 : vector<8x32xf32>
    %171 = vector.broadcast %150 : vector<1x32xf32> to vector<8x32xf32>
    %172 = arith.mulf %170, %171 : vector<8x32xf32>
    %173 = vector.broadcast %152 : vector<1x32xf32> to vector<8x32xf32>
    %174 = arith.addf %172, %173 : vector<8x32xf32>
    %175 = arith.truncf %174 : vector<8x32xf32> to vector<8x32xbf16>
    %c1_86 = arith.constant 1 : index
    %c0_87 = arith.constant 0 : index
    %c0_88 = arith.constant 0 : index
    %176 = vector.load %arg7[%c1_86, %c0_87, %c0_88] : memref<4x32x64xbf16, #tpu.memory_space<vmem>>, vector<1x32x64xbf16>
    %177 = vector.shape_cast %176 : vector<1x32x64xbf16> to vector<32x64xbf16>
    %cst_89 = arith.constant dense<0.000000e+00> : vector<8x64xf32>
    %178 = tpu.matmul %175, %177, %cst_89 {dimension_numbers = #tpu.dot_dimension_numbers<[1], [0], [0], [1], [0, 0, 1, 1], [], []>} : vector<8x32xbf16>, vector<32x64xbf16>, vector<8x64xf32> -> vector<8x64xf32>
    %c1_90 = arith.constant 1 : index
    %c0_91 = arith.constant 0 : index
    %c0_92 = arith.constant 0 : index
    %179 = vector.load %arg8[%c1_90, %c0_91, %c0_92] : memref<4x1x64xf32, #tpu.memory_space<vmem>>, vector<1x1x64xf32>
    %180 = vector.shape_cast %179 : vector<1x1x64xf32> to vector<1x64xf32>
    %181 = vector.broadcast %180 : vector<1x64xf32> to vector<8x64xf32>
    %182 = arith.addf %178, %181 : vector<8x64xf32>
    %cst_93 = arith.constant 0.000000e+00 : f32
    %183 = vector.broadcast %cst_93 : f32 to vector<8x64xf32>
    %184 = arith.maximumf %182, %183 : vector<8x64xf32>
    %185 = arith.truncf %184 : vector<8x64xf32> to vector<8x64xbf16>
    %c1_94 = arith.constant 1 : index
    %c0_95 = arith.constant 0 : index
    %c0_96 = arith.constant 0 : index
    %186 = vector.load %arg9[%c1_94, %c0_95, %c0_96] : memref<4x64x32xbf16, #tpu.memory_space<vmem>>, vector<1x64x32xbf16>
    %187 = vector.shape_cast %186 : vector<1x64x32xbf16> to vector<64x32xbf16>
    %cst_97 = arith.constant dense<0.000000e+00> : vector<8x32xf32>
    %188 = tpu.matmul %185, %187, %cst_97 {dimension_numbers = #tpu.dot_dimension_numbers<[1], [0], [0], [1], [0, 0, 1, 1], [], []>} : vector<8x64xbf16>, vector<64x32xbf16>, vector<8x32xf32> -> vector<8x32xf32>
    %c1_98 = arith.constant 1 : index
    %c0_99 = arith.constant 0 : index
    %c0_100 = arith.constant 0 : index
    %189 = vector.load %arg10[%c1_98, %c0_99, %c0_100] : memref<4x1x32xf32, #tpu.memory_space<vmem>>, vector<1x1x32xf32>
    %190 = vector.shape_cast %189 : vector<1x1x32xf32> to vector<1x32xf32>
    %191 = vector.broadcast %190 : vector<1x32xf32> to vector<8x32xf32>
    %192 = arith.addf %188, %191 : vector<8x32xf32>
    %193 = arith.addf %192, %174 : vector<8x32xf32>
    %c1_101 = arith.constant 1 : index
    %c0_102 = arith.constant 0 : index
    %c0_103 = arith.constant 0 : index
    %194 = vector.load %arg11[%c1_101, %c0_102, %c0_103] : memref<4x1x32xf32, #tpu.memory_space<vmem>>, vector<1x1x32xf32>
    %195 = vector.shape_cast %194 : vector<1x1x32xf32> to vector<1x32xf32>
    %c1_104 = arith.constant 1 : index
    %c0_105 = arith.constant 0 : index
    %c0_106 = arith.constant 0 : index
    %196 = vector.load %arg12[%c1_104, %c0_105, %c0_106] : memref<4x1x32xf32, #tpu.memory_space<vmem>>, vector<1x1x32xf32>
    %197 = vector.shape_cast %196 : vector<1x1x32xf32> to vector<1x32xf32>
    %cst_107 = arith.constant dense<0.000000e+00> : vector<8xf32>
    %198 = vector.multi_reduction <add>, %193, %cst_107 [1] : vector<8x32xf32> to vector<8xf32>
    %199 = vector.shape_cast %198 : vector<8xf32> to vector<8x1xf32>
    %cst_108 = arith.constant 3.200000e+01 : f32
    %200 = vector.broadcast %cst_108 : f32 to vector<8x1xf32>
    %201 = arith.divf %199, %200 : vector<8x1xf32>
    %202 = vector.broadcast %201 : vector<8x1xf32> to vector<8x32xf32>
    %203 = arith.subf %193, %202 : vector<8x32xf32>
    %204 = arith.mulf %203, %203 : vector<8x32xf32>
    %cst_109 = arith.constant dense<0.000000e+00> : vector<8xf32>
    %205 = vector.multi_reduction <add>, %204, %cst_109 [1] : vector<8x32xf32> to vector<8xf32>
    %206 = vector.shape_cast %205 : vector<8xf32> to vector<8x1xf32>
    %cst_110 = arith.constant 3.200000e+01 : f32
    %207 = vector.broadcast %cst_110 : f32 to vector<8x1xf32>
    %208 = arith.divf %206, %207 : vector<8x1xf32>
    %209 = vector.broadcast %201 : vector<8x1xf32> to vector<8x32xf32>
    %210 = arith.subf %193, %209 : vector<8x32xf32>
    %cst_111 = arith.constant 9.99999974E-6 : f32
    %211 = vector.broadcast %cst_111 : f32 to vector<8x1xf32>
    %212 = arith.addf %208, %211 : vector<8x1xf32>
    %213 = math.rsqrt %212 : vector<8x1xf32>
    %214 = vector.broadcast %213 : vector<8x1xf32> to vector<8x32xf32>
    %215 = arith.mulf %210, %214 : vector<8x32xf32>
    %216 = vector.broadcast %195 : vector<1x32xf32> to vector<8x32xf32>
    %217 = arith.mulf %215, %216 : vector<8x32xf32>
    %218 = vector.broadcast %197 : vector<1x32xf32> to vector<8x32xf32>
    %219 = arith.addf %217, %218 : vector<8x32xf32>
    %220 = arith.truncf %219 : vector<8x32xf32> to vector<8x32xbf16>
    %221 = vector.shape_cast %220 : vector<8x32xbf16> to vector<1x8x32xbf16>
    %222 = vector.shape_cast %221 : vector<1x8x32xbf16> to vector<1x8x32xbf16>
    %223 = vector.broadcast %222 : vector<1x8x32xbf16> to vector<12x8x32xbf16>
    %c2 = arith.constant 2 : index
    %c0_112 = arith.constant 0 : index
    %c0_113 = arith.constant 0 : index
    %c0_114 = arith.constant 0 : index
    %224 = vector.load %arg2[%c2, %c0_112, %c0_113, %c0_114] : memref<4x12x32x16xbf16, #tpu.memory_space<vmem>>, vector<1x12x32x16xbf16>
    %225 = vector.shape_cast %224 : vector<1x12x32x16xbf16> to vector<12x32x16xbf16>
    "tpu.trace_start"() <{level = 10 : i32, message = "hnd,hdk->hnk"}> : () -> ()
    %cst_115 = arith.constant dense<0.000000e+00> : vector<12x8x16xf32>
    %226 = tpu.matmul %223, %225, %cst_115 {dimension_numbers = #tpu.dot_dimension_numbers<[2], [1], [1], [2], [0, 0, 0, 1, 1, 2], [0], [0]>} : vector<12x8x32xbf16>, vector<12x32x16xbf16>, vector<12x8x16xf32> -> vector<12x8x16xf32>
    "tpu.trace_stop"() : () -> ()
    %227 = vector.extract_strided_slice %226 {offsets = [0, 0, 0], sizes = [4, 8, 16], strides = [1, 1, 1]} : vector<12x8x16xf32> to vector<4x8x16xf32>
    %228 = vector.extract_strided_slice %226 {offsets = [4, 0, 0], sizes = [4, 8, 16], strides = [1, 1, 1]} : vector<12x8x16xf32> to vector<4x8x16xf32>
    %229 = vector.extract_strided_slice %226 {offsets = [8, 0, 0], sizes = [4, 8, 16], strides = [1, 1, 1]} : vector<12x8x16xf32> to vector<4x8x16xf32>
    %230 = arith.truncf %227 : vector<4x8x16xf32> to vector<4x8x16xbf16>
    %231 = arith.truncf %228 : vector<4x8x16xf32> to vector<4x8x16xbf16>
    "tpu.trace_start"() <{level = 10 : i32, message = "hnk,hmk->hnm"}> : () -> ()
    %cst_116 = arith.constant dense<0.000000e+00> : vector<4x8x8xf32>
    %232 = tpu.matmul %230, %231, %cst_116 {dimension_numbers = #tpu.dot_dimension_numbers<[2], [2], [1], [1], [0, 0, 0, 1, 1, 1], [0], [0]>} : vector<4x8x16xbf16>, vector<4x8x16xbf16>, vector<4x8x8xf32> -> vector<4x8x8xf32>
    "tpu.trace_stop"() : () -> ()
    %cst_117 = arith.constant 2.500000e-01 : f32
    %233 = vector.broadcast %cst_117 : f32 to vector<4x8x8xf32>
    %234 = arith.mulf %232, %233 : vector<4x8x8xf32>
    %cst_118 = arith.constant dense<0xFF800000> : vector<4x8xf32>
    %235 = vector.multi_reduction <maximumf>, %234, %cst_118 [2] : vector<4x8x8xf32> to vector<4x8xf32>
    %236 = vector.shape_cast %235 : vector<4x8xf32> to vector<4x8x1xf32>
    %237 = vector.broadcast %236 : vector<4x8x1xf32> to vector<4x8x8xf32>
    %238 = arith.subf %234, %237 : vector<4x8x8xf32>
    %239 = math.exp %238 : vector<4x8x8xf32>
    %cst_119 = arith.constant dense<0.000000e+00> : vector<4x8xf32>
    %240 = vector.multi_reduction <add>, %239, %cst_119 [2] : vector<4x8x8xf32> to vector<4x8xf32>
    %241 = vector.shape_cast %240 : vector<4x8xf32> to vector<4x8x1xf32>
    %242 = tpu.reciprocal %241 {approx = true} : vector<4x8x1xf32> -> vector<4x8x1xf32>
    %243 = vector.broadcast %242 : vector<4x8x1xf32> to vector<4x8x8xf32>
    %244 = arith.mulf %239, %243 : vector<4x8x8xf32>
    %245 = arith.truncf %244 : vector<4x8x8xf32> to vector<4x8x8xbf16>
    %246 = arith.truncf %229 : vector<4x8x16xf32> to vector<4x8x16xbf16>
    "tpu.trace_start"() <{level = 10 : i32, message = "hnm,hmk->hnk"}> : () -> ()
    %cst_120 = arith.constant dense<0.000000e+00> : vector<4x8x16xf32>
    %247 = tpu.matmul %245, %246, %cst_120 {dimension_numbers = #tpu.dot_dimension_numbers<[2], [1], [1], [2], [0, 0, 0, 1, 1, 2], [0], [0]>} : vector<4x8x8xbf16>, vector<4x8x16xbf16>, vector<4x8x16xf32> -> vector<4x8x16xf32>
    "tpu.trace_stop"() : () -> ()
    %248 = arith.truncf %247 : vector<4x8x16xf32> to vector<4x8x16xbf16>
    %c2_121 = arith.constant 2 : index
    %c0_122 = arith.constant 0 : index
    %c0_123 = arith.constant 0 : index
    %c0_124 = arith.constant 0 : index
    %249 = vector.load %arg3[%c2_121, %c0_122, %c0_123, %c0_124] : memref<4x4x16x32xbf16, #tpu.memory_space<vmem>>, vector<1x4x16x32xbf16>
    %250 = vector.shape_cast %249 : vector<1x4x16x32xbf16> to vector<4x16x32xbf16>
    "tpu.trace_start"() <{level = 10 : i32, message = "hnk,hkd->hnd"}> : () -> ()
    %cst_125 = arith.constant dense<0.000000e+00> : vector<4x8x32xf32>
    %251 = tpu.matmul %248, %250, %cst_125 {dimension_numbers = #tpu.dot_dimension_numbers<[2], [1], [1], [2], [0, 0, 0, 1, 1, 2], [0], [0]>} : vector<4x8x16xbf16>, vector<4x16x32xbf16>, vector<4x8x32xf32> -> vector<4x8x32xf32>
    "tpu.trace_stop"() : () -> ()
    %cst_126 = arith.constant dense<0.000000e+00> : vector<8x32xf32>
    %252 = vector.multi_reduction <add>, %251, %cst_126 [0] : vector<4x8x32xf32> to vector<8x32xf32>
    %c2_127 = arith.constant 2 : index
    %c0_128 = arith.constant 0 : index
    %c0_129 = arith.constant 0 : index
    %253 = vector.load %arg4[%c2_127, %c0_128, %c0_129] : memref<4x1x32xf32, #tpu.memory_space<vmem>>, vector<1x1x32xf32>
    %254 = vector.shape_cast %253 : vector<1x1x32xf32> to vector<1x32xf32>
    %255 = vector.broadcast %254 : vector<1x32xf32> to vector<8x32xf32>
    %256 = arith.addf %252, %255 : vector<8x32xf32>
    %257 = arith.addf %256, %219 : vector<8x32xf32>
    %c2_130 = arith.constant 2 : index
    %c0_131 = arith.constant 0 : index
    %c0_132 = arith.constant 0 : index
    %258 = vector.load %arg5[%c2_130, %c0_131, %c0_132] : memref<4x1x32xf32, #tpu.memory_space<vmem>>, vector<1x1x32xf32>
    %259 = vector.shape_cast %258 : vector<1x1x32xf32> to vector<1x32xf32>
    %c2_133 = arith.constant 2 : index
    %c0_134 = arith.constant 0 : index
    %c0_135 = arith.constant 0 : index
    %260 = vector.load %arg6[%c2_133, %c0_134, %c0_135] : memref<4x1x32xf32, #tpu.memory_space<vmem>>, vector<1x1x32xf32>
    %261 = vector.shape_cast %260 : vector<1x1x32xf32> to vector<1x32xf32>
    %cst_136 = arith.constant dense<0.000000e+00> : vector<8xf32>
    %262 = vector.multi_reduction <add>, %257, %cst_136 [1] : vector<8x32xf32> to vector<8xf32>
    %263 = vector.shape_cast %262 : vector<8xf32> to vector<8x1xf32>
    %cst_137 = arith.constant 3.200000e+01 : f32
    %264 = vector.broadcast %cst_137 : f32 to vector<8x1xf32>
    %265 = arith.divf %263, %264 : vector<8x1xf32>
    %266 = vector.broadcast %265 : vector<8x1xf32> to vector<8x32xf32>
    %267 = arith.subf %257, %266 : vector<8x32xf32>
    %268 = arith.mulf %267, %267 : vector<8x32xf32>
    %cst_138 = arith.constant dense<0.000000e+00> : vector<8xf32>
    %269 = vector.multi_reduction <add>, %268, %cst_138 [1] : vector<8x32xf32> to vector<8xf32>
    %270 = vector.shape_cast %269 : vector<8xf32> to vector<8x1xf32>
    %cst_139 = arith.constant 3.200000e+01 : f32
    %271 = vector.broadcast %cst_139 : f32 to vector<8x1xf32>
    %272 = arith.divf %270, %271 : vector<8x1xf32>
    %273 = vector.broadcast %265 : vector<8x1xf32> to vector<8x32xf32>
    %274 = arith.subf %257, %273 : vector<8x32xf32>
    %cst_140 = arith.constant 9.99999974E-6 : f32
    %275 = vector.broadcast %cst_140 : f32 to vector<8x1xf32>
    %276 = arith.addf %272, %275 : vector<8x1xf32>
    %277 = math.rsqrt %276 : vector<8x1xf32>
    %278 = vector.broadcast %277 : vector<8x1xf32> to vector<8x32xf32>
    %279 = arith.mulf %274, %278 : vector<8x32xf32>
    %280 = vector.broadcast %259 : vector<1x32xf32> to vector<8x32xf32>
    %281 = arith.mulf %279, %280 : vector<8x32xf32>
    %282 = vector.broadcast %261 : vector<1x32xf32> to vector<8x32xf32>
    %283 = arith.addf %281, %282 : vector<8x32xf32>
    %284 = arith.truncf %283 : vector<8x32xf32> to vector<8x32xbf16>
    %c2_141 = arith.constant 2 : index
    %c0_142 = arith.constant 0 : index
    %c0_143 = arith.constant 0 : index
    %285 = vector.load %arg7[%c2_141, %c0_142, %c0_143] : memref<4x32x64xbf16, #tpu.memory_space<vmem>>, vector<1x32x64xbf16>
    %286 = vector.shape_cast %285 : vector<1x32x64xbf16> to vector<32x64xbf16>
    %cst_144 = arith.constant dense<0.000000e+00> : vector<8x64xf32>
    %287 = tpu.matmul %284, %286, %cst_144 {dimension_numbers = #tpu.dot_dimension_numbers<[1], [0], [0], [1], [0, 0, 1, 1], [], []>} : vector<8x32xbf16>, vector<32x64xbf16>, vector<8x64xf32> -> vector<8x64xf32>
    %c2_145 = arith.constant 2 : index
    %c0_146 = arith.constant 0 : index
    %c0_147 = arith.constant 0 : index
    %288 = vector.load %arg8[%c2_145, %c0_146, %c0_147] : memref<4x1x64xf32, #tpu.memory_space<vmem>>, vector<1x1x64xf32>
    %289 = vector.shape_cast %288 : vector<1x1x64xf32> to vector<1x64xf32>
    %290 = vector.broadcast %289 : vector<1x64xf32> to vector<8x64xf32>
    %291 = arith.addf %287, %290 : vector<8x64xf32>
    %cst_148 = arith.constant 0.000000e+00 : f32
    %292 = vector.broadcast %cst_148 : f32 to vector<8x64xf32>
    %293 = arith.maximumf %291, %292 : vector<8x64xf32>
    %294 = arith.truncf %293 : vector<8x64xf32> to vector<8x64xbf16>
    %c2_149 = arith.constant 2 : index
    %c0_150 = arith.constant 0 : index
    %c0_151 = arith.constant 0 : index
    %295 = vector.load %arg9[%c2_149, %c0_150, %c0_151] : memref<4x64x32xbf16, #tpu.memory_space<vmem>>, vector<1x64x32xbf16>
    %296 = vector.shape_cast %295 : vector<1x64x32xbf16> to vector<64x32xbf16>
    %cst_152 = arith.constant dense<0.000000e+00> : vector<8x32xf32>
    %297 = tpu.matmul %294, %296, %cst_152 {dimension_numbers = #tpu.dot_dimension_numbers<[1], [0], [0], [1], [0, 0, 1, 1], [], []>} : vector<8x64xbf16>, vector<64x32xbf16>, vector<8x32xf32> -> vector<8x32xf32>
    %c2_153 = arith.constant 2 : index
    %c0_154 = arith.constant 0 : index
    %c0_155 = arith.constant 0 : index
    %298 = vector.load %arg10[%c2_153, %c0_154, %c0_155] : memref<4x1x32xf32, #tpu.memory_space<vmem>>, vector<1x1x32xf32>
    %299 = vector.shape_cast %298 : vector<1x1x32xf32> to vector<1x32xf32>
    %300 = vector.broadcast %299 : vector<1x32xf32> to vector<8x32xf32>
    %301 = arith.addf %297, %300 : vector<8x32xf32>
    %302 = arith.addf %301, %283 : vector<8x32xf32>
    %c2_156 = arith.constant 2 : index
    %c0_157 = arith.constant 0 : index
    %c0_158 = arith.constant 0 : index
    %303 = vector.load %arg11[%c2_156, %c0_157, %c0_158] : memref<4x1x32xf32, #tpu.memory_space<vmem>>, vector<1x1x32xf32>
    %304 = vector.shape_cast %303 : vector<1x1x32xf32> to vector<1x32xf32>
    %c2_159 = arith.constant 2 : index
    %c0_160 = arith.constant 0 : index
    %c0_161 = arith.constant 0 : index
    %305 = vector.load %arg12[%c2_159, %c0_160, %c0_161] : memref<4x1x32xf32, #tpu.memory_space<vmem>>, vector<1x1x32xf32>
    %306 = vector.shape_cast %305 : vector<1x1x32xf32> to vector<1x32xf32>
    %cst_162 = arith.constant dense<0.000000e+00> : vector<8xf32>
    %307 = vector.multi_reduction <add>, %302, %cst_162 [1] : vector<8x32xf32> to vector<8xf32>
    %308 = vector.shape_cast %307 : vector<8xf32> to vector<8x1xf32>
    %cst_163 = arith.constant 3.200000e+01 : f32
    %309 = vector.broadcast %cst_163 : f32 to vector<8x1xf32>
    %310 = arith.divf %308, %309 : vector<8x1xf32>
    %311 = vector.broadcast %310 : vector<8x1xf32> to vector<8x32xf32>
    %312 = arith.subf %302, %311 : vector<8x32xf32>
    %313 = arith.mulf %312, %312 : vector<8x32xf32>
    %cst_164 = arith.constant dense<0.000000e+00> : vector<8xf32>
    %314 = vector.multi_reduction <add>, %313, %cst_164 [1] : vector<8x32xf32> to vector<8xf32>
    %315 = vector.shape_cast %314 : vector<8xf32> to vector<8x1xf32>
    %cst_165 = arith.constant 3.200000e+01 : f32
    %316 = vector.broadcast %cst_165 : f32 to vector<8x1xf32>
    %317 = arith.divf %315, %316 : vector<8x1xf32>
    %318 = vector.broadcast %310 : vector<8x1xf32> to vector<8x32xf32>
    %319 = arith.subf %302, %318 : vector<8x32xf32>
    %cst_166 = arith.constant 9.99999974E-6 : f32
    %320 = vector.broadcast %cst_166 : f32 to vector<8x1xf32>
    %321 = arith.addf %317, %320 : vector<8x1xf32>
    %322 = math.rsqrt %321 : vector<8x1xf32>
    %323 = vector.broadcast %322 : vector<8x1xf32> to vector<8x32xf32>
    %324 = arith.mulf %319, %323 : vector<8x32xf32>
    %325 = vector.broadcast %304 : vector<1x32xf32> to vector<8x32xf32>
    %326 = arith.mulf %324, %325 : vector<8x32xf32>
    %327 = vector.broadcast %306 : vector<1x32xf32> to vector<8x32xf32>
    %328 = arith.addf %326, %327 : vector<8x32xf32>
    %329 = arith.truncf %328 : vector<8x32xf32> to vector<8x32xbf16>
    %330 = vector.shape_cast %329 : vector<8x32xbf16> to vector<1x8x32xbf16>
    %331 = vector.shape_cast %330 : vector<1x8x32xbf16> to vector<1x8x32xbf16>
    %332 = vector.broadcast %331 : vector<1x8x32xbf16> to vector<12x8x32xbf16>
    %c3 = arith.constant 3 : index
    %c0_167 = arith.constant 0 : index
    %c0_168 = arith.constant 0 : index
    %c0_169 = arith.constant 0 : index
    %333 = vector.load %arg2[%c3, %c0_167, %c0_168, %c0_169] : memref<4x12x32x16xbf16, #tpu.memory_space<vmem>>, vector<1x12x32x16xbf16>
    %334 = vector.shape_cast %333 : vector<1x12x32x16xbf16> to vector<12x32x16xbf16>
    "tpu.trace_start"() <{level = 10 : i32, message = "hnd,hdk->hnk"}> : () -> ()
    %cst_170 = arith.constant dense<0.000000e+00> : vector<12x8x16xf32>
    %335 = tpu.matmul %332, %334, %cst_170 {dimension_numbers = #tpu.dot_dimension_numbers<[2], [1], [1], [2], [0, 0, 0, 1, 1, 2], [0], [0]>} : vector<12x8x32xbf16>, vector<12x32x16xbf16>, vector<12x8x16xf32> -> vector<12x8x16xf32>
    "tpu.trace_stop"() : () -> ()
    %336 = vector.extract_strided_slice %335 {offsets = [0, 0, 0], sizes = [4, 8, 16], strides = [1, 1, 1]} : vector<12x8x16xf32> to vector<4x8x16xf32>
    %337 = vector.extract_strided_slice %335 {offsets = [4, 0, 0], sizes = [4, 8, 16], strides = [1, 1, 1]} : vector<12x8x16xf32> to vector<4x8x16xf32>
    %338 = vector.extract_strided_slice %335 {offsets = [8, 0, 0], sizes = [4, 8, 16], strides = [1, 1, 1]} : vector<12x8x16xf32> to vector<4x8x16xf32>
    %339 = arith.truncf %336 : vector<4x8x16xf32> to vector<4x8x16xbf16>
    %340 = arith.truncf %337 : vector<4x8x16xf32> to vector<4x8x16xbf16>
    "tpu.trace_start"() <{level = 10 : i32, message = "hnk,hmk->hnm"}> : () -> ()
    %cst_171 = arith.constant dense<0.000000e+00> : vector<4x8x8xf32>
    %341 = tpu.matmul %339, %340, %cst_171 {dimension_numbers = #tpu.dot_dimension_numbers<[2], [2], [1], [1], [0, 0, 0, 1, 1, 1], [0], [0]>} : vector<4x8x16xbf16>, vector<4x8x16xbf16>, vector<4x8x8xf32> -> vector<4x8x8xf32>
    "tpu.trace_stop"() : () -> ()
    %cst_172 = arith.constant 2.500000e-01 : f32
    %342 = vector.broadcast %cst_172 : f32 to vector<4x8x8xf32>
    %343 = arith.mulf %341, %342 : vector<4x8x8xf32>
    %cst_173 = arith.constant dense<0xFF800000> : vector<4x8xf32>
    %344 = vector.multi_reduction <maximumf>, %343, %cst_173 [2] : vector<4x8x8xf32> to vector<4x8xf32>
    %345 = vector.shape_cast %344 : vector<4x8xf32> to vector<4x8x1xf32>
    %346 = vector.broadcast %345 : vector<4x8x1xf32> to vector<4x8x8xf32>
    %347 = arith.subf %343, %346 : vector<4x8x8xf32>
    %348 = math.exp %347 : vector<4x8x8xf32>
    %cst_174 = arith.constant dense<0.000000e+00> : vector<4x8xf32>
    %349 = vector.multi_reduction <add>, %348, %cst_174 [2] : vector<4x8x8xf32> to vector<4x8xf32>
    %350 = vector.shape_cast %349 : vector<4x8xf32> to vector<4x8x1xf32>
    %351 = tpu.reciprocal %350 {approx = true} : vector<4x8x1xf32> -> vector<4x8x1xf32>
    %352 = vector.broadcast %351 : vector<4x8x1xf32> to vector<4x8x8xf32>
    %353 = arith.mulf %348, %352 : vector<4x8x8xf32>
    %354 = arith.truncf %353 : vector<4x8x8xf32> to vector<4x8x8xbf16>
    %355 = arith.truncf %338 : vector<4x8x16xf32> to vector<4x8x16xbf16>
    "tpu.trace_start"() <{level = 10 : i32, message = "hnm,hmk->hnk"}> : () -> ()
    %cst_175 = arith.constant dense<0.000000e+00> : vector<4x8x16xf32>
    %356 = tpu.matmul %354, %355, %cst_175 {dimension_numbers = #tpu.dot_dimension_numbers<[2], [1], [1], [2], [0, 0, 0, 1, 1, 2], [0], [0]>} : vector<4x8x8xbf16>, vector<4x8x16xbf16>, vector<4x8x16xf32> -> vector<4x8x16xf32>
    "tpu.trace_stop"() : () -> ()
    %357 = arith.truncf %356 : vector<4x8x16xf32> to vector<4x8x16xbf16>
    %c3_176 = arith.constant 3 : index
    %c0_177 = arith.constant 0 : index
    %c0_178 = arith.constant 0 : index
    %c0_179 = arith.constant 0 : index
    %358 = vector.load %arg3[%c3_176, %c0_177, %c0_178, %c0_179] : memref<4x4x16x32xbf16, #tpu.memory_space<vmem>>, vector<1x4x16x32xbf16>
    %359 = vector.shape_cast %358 : vector<1x4x16x32xbf16> to vector<4x16x32xbf16>
    "tpu.trace_start"() <{level = 10 : i32, message = "hnk,hkd->hnd"}> : () -> ()
    %cst_180 = arith.constant dense<0.000000e+00> : vector<4x8x32xf32>
    %360 = tpu.matmul %357, %359, %cst_180 {dimension_numbers = #tpu.dot_dimension_numbers<[2], [1], [1], [2], [0, 0, 0, 1, 1, 2], [0], [0]>} : vector<4x8x16xbf16>, vector<4x16x32xbf16>, vector<4x8x32xf32> -> vector<4x8x32xf32>
    "tpu.trace_stop"() : () -> ()
    %cst_181 = arith.constant dense<0.000000e+00> : vector<8x32xf32>
    %361 = vector.multi_reduction <add>, %360, %cst_181 [0] : vector<4x8x32xf32> to vector<8x32xf32>
    %c3_182 = arith.constant 3 : index
    %c0_183 = arith.constant 0 : index
    %c0_184 = arith.constant 0 : index
    %362 = vector.load %arg4[%c3_182, %c0_183, %c0_184] : memref<4x1x32xf32, #tpu.memory_space<vmem>>, vector<1x1x32xf32>
    %363 = vector.shape_cast %362 : vector<1x1x32xf32> to vector<1x32xf32>
    %364 = vector.broadcast %363 : vector<1x32xf32> to vector<8x32xf32>
    %365 = arith.addf %361, %364 : vector<8x32xf32>
    %366 = arith.addf %365, %328 : vector<8x32xf32>
    %c3_185 = arith.constant 3 : index
    %c0_186 = arith.constant 0 : index
    %c0_187 = arith.constant 0 : index
    %367 = vector.load %arg5[%c3_185, %c0_186, %c0_187] : memref<4x1x32xf32, #tpu.memory_space<vmem>>, vector<1x1x32xf32>
    %368 = vector.shape_cast %367 : vector<1x1x32xf32> to vector<1x32xf32>
    %c3_188 = arith.constant 3 : index
    %c0_189 = arith.constant 0 : index
    %c0_190 = arith.constant 0 : index
    %369 = vector.load %arg6[%c3_188, %c0_189, %c0_190] : memref<4x1x32xf32, #tpu.memory_space<vmem>>, vector<1x1x32xf32>
    %370 = vector.shape_cast %369 : vector<1x1x32xf32> to vector<1x32xf32>
    %cst_191 = arith.constant dense<0.000000e+00> : vector<8xf32>
    %371 = vector.multi_reduction <add>, %366, %cst_191 [1] : vector<8x32xf32> to vector<8xf32>
    %372 = vector.shape_cast %371 : vector<8xf32> to vector<8x1xf32>
    %cst_192 = arith.constant 3.200000e+01 : f32
    %373 = vector.broadcast %cst_192 : f32 to vector<8x1xf32>
    %374 = arith.divf %372, %373 : vector<8x1xf32>
    %375 = vector.broadcast %374 : vector<8x1xf32> to vector<8x32xf32>
    %376 = arith.subf %366, %375 : vector<8x32xf32>
    %377 = arith.mulf %376, %376 : vector<8x32xf32>
    %cst_193 = arith.constant dense<0.000000e+00> : vector<8xf32>
    %378 = vector.multi_reduction <add>, %377, %cst_193 [1] : vector<8x32xf32> to vector<8xf32>
    %379 = vector.shape_cast %378 : vector<8xf32> to vector<8x1xf32>
    %cst_194 = arith.constant 3.200000e+01 : f32
    %380 = vector.broadcast %cst_194 : f32 to vector<8x1xf32>
    %381 = arith.divf %379, %380 : vector<8x1xf32>
    %382 = vector.broadcast %374 : vector<8x1xf32> to vector<8x32xf32>
    %383 = arith.subf %366, %382 : vector<8x32xf32>
    %cst_195 = arith.constant 9.99999974E-6 : f32
    %384 = vector.broadcast %cst_195 : f32 to vector<8x1xf32>
    %385 = arith.addf %381, %384 : vector<8x1xf32>
    %386 = math.rsqrt %385 : vector<8x1xf32>
    %387 = vector.broadcast %386 : vector<8x1xf32> to vector<8x32xf32>
    %388 = arith.mulf %383, %387 : vector<8x32xf32>
    %389 = vector.broadcast %368 : vector<1x32xf32> to vector<8x32xf32>
    %390 = arith.mulf %388, %389 : vector<8x32xf32>
    %391 = vector.broadcast %370 : vector<1x32xf32> to vector<8x32xf32>
    %392 = arith.addf %390, %391 : vector<8x32xf32>
    %393 = arith.truncf %392 : vector<8x32xf32> to vector<8x32xbf16>
    %c3_196 = arith.constant 3 : index
    %c0_197 = arith.constant 0 : index
    %c0_198 = arith.constant 0 : index
    %394 = vector.load %arg7[%c3_196, %c0_197, %c0_198] : memref<4x32x64xbf16, #tpu.memory_space<vmem>>, vector<1x32x64xbf16>
    %395 = vector.shape_cast %394 : vector<1x32x64xbf16> to vector<32x64xbf16>
    %cst_199 = arith.constant dense<0.000000e+00> : vector<8x64xf32>
    %396 = tpu.matmul %393, %395, %cst_199 {dimension_numbers = #tpu.dot_dimension_numbers<[1], [0], [0], [1], [0, 0, 1, 1], [], []>} : vector<8x32xbf16>, vector<32x64xbf16>, vector<8x64xf32> -> vector<8x64xf32>
    %c3_200 = arith.constant 3 : index
    %c0_201 = arith.constant 0 : index
    %c0_202 = arith.constant 0 : index
    %397 = vector.load %arg8[%c3_200, %c0_201, %c0_202] : memref<4x1x64xf32, #tpu.memory_space<vmem>>, vector<1x1x64xf32>
    %398 = vector.shape_cast %397 : vector<1x1x64xf32> to vector<1x64xf32>
    %399 = vector.broadcast %398 : vector<1x64xf32> to vector<8x64xf32>
    %400 = arith.addf %396, %399 : vector<8x64xf32>
    %cst_203 = arith.constant 0.000000e+00 : f32
    %401 = vector.broadcast %cst_203 : f32 to vector<8x64xf32>
    %402 = arith.maximumf %400, %401 : vector<8x64xf32>
    %403 = arith.truncf %402 : vector<8x64xf32> to vector<8x64xbf16>
    %c3_204 = arith.constant 3 : index
    %c0_205 = arith.constant 0 : index
    %c0_206 = arith.constant 0 : index
    %404 = vector.load %arg9[%c3_204, %c0_205, %c0_206] : memref<4x64x32xbf16, #tpu.memory_space<vmem>>, vector<1x64x32xbf16>
    %405 = vector.shape_cast %404 : vector<1x64x32xbf16> to vector<64x32xbf16>
    %cst_207 = arith.constant dense<0.000000e+00> : vector<8x32xf32>
    %406 = tpu.matmul %403, %405, %cst_207 {dimension_numbers = #tpu.dot_dimension_numbers<[1], [0], [0], [1], [0, 0, 1, 1], [], []>} : vector<8x64xbf16>, vector<64x32xbf16>, vector<8x32xf32> -> vector<8x32xf32>
    %c3_208 = arith.constant 3 : index
    %c0_209 = arith.constant 0 : index
    %c0_210 = arith.constant 0 : index
    %407 = vector.load %arg10[%c3_208, %c0_209, %c0_210] : memref<4x1x32xf32, #tpu.memory_space<vmem>>, vector<1x1x32xf32>
    %408 = vector.shape_cast %407 : vector<1x1x32xf32> to vector<1x32xf32>
    %409 = vector.broadcast %408 : vector<1x32xf32> to vector<8x32xf32>
    %410 = arith.addf %406, %409 : vector<8x32xf32>
    %411 = arith.addf %410, %392 : vector<8x32xf32>
    %c3_211 = arith.constant 3 : index
    %c0_212 = arith.constant 0 : index
    %c0_213 = arith.constant 0 : index
    %412 = vector.load %arg11[%c3_211, %c0_212, %c0_213] : memref<4x1x32xf32, #tpu.memory_space<vmem>>, vector<1x1x32xf32>
    %413 = vector.shape_cast %412 : vector<1x1x32xf32> to vector<1x32xf32>
    %c3_214 = arith.constant 3 : index
    %c0_215 = arith.constant 0 : index
    %c0_216 = arith.constant 0 : index
    %414 = vector.load %arg12[%c3_214, %c0_215, %c0_216] : memref<4x1x32xf32, #tpu.memory_space<vmem>>, vector<1x1x32xf32>
    %415 = vector.shape_cast %414 : vector<1x1x32xf32> to vector<1x32xf32>
    %cst_217 = arith.constant dense<0.000000e+00> : vector<8xf32>
    %416 = vector.multi_reduction <add>, %411, %cst_217 [1] : vector<8x32xf32> to vector<8xf32>
    %417 = vector.shape_cast %416 : vector<8xf32> to vector<8x1xf32>
    %cst_218 = arith.constant 3.200000e+01 : f32
    %418 = vector.broadcast %cst_218 : f32 to vector<8x1xf32>
    %419 = arith.divf %417, %418 : vector<8x1xf32>
    %420 = vector.broadcast %419 : vector<8x1xf32> to vector<8x32xf32>
    %421 = arith.subf %411, %420 : vector<8x32xf32>
    %422 = arith.mulf %421, %421 : vector<8x32xf32>
    %cst_219 = arith.constant dense<0.000000e+00> : vector<8xf32>
    %423 = vector.multi_reduction <add>, %422, %cst_219 [1] : vector<8x32xf32> to vector<8xf32>
    %424 = vector.shape_cast %423 : vector<8xf32> to vector<8x1xf32>
    %cst_220 = arith.constant 3.200000e+01 : f32
    %425 = vector.broadcast %cst_220 : f32 to vector<8x1xf32>
    %426 = arith.divf %424, %425 : vector<8x1xf32>
    %427 = vector.broadcast %419 : vector<8x1xf32> to vector<8x32xf32>
    %428 = arith.subf %411, %427 : vector<8x32xf32>
    %cst_221 = arith.constant 9.99999974E-6 : f32
    %429 = vector.broadcast %cst_221 : f32 to vector<8x1xf32>
    %430 = arith.addf %426, %429 : vector<8x1xf32>
    %431 = math.rsqrt %430 : vector<8x1xf32>
    %432 = vector.broadcast %431 : vector<8x1xf32> to vector<8x32xf32>
    %433 = arith.mulf %428, %432 : vector<8x32xf32>
    %434 = vector.broadcast %413 : vector<1x32xf32> to vector<8x32xf32>
    %435 = arith.mulf %433, %434 : vector<8x32xf32>
    %436 = vector.broadcast %415 : vector<1x32xf32> to vector<8x32xf32>
    %437 = arith.addf %435, %436 : vector<8x32xf32>
    %438 = arith.truncf %437 : vector<8x32xf32> to vector<8x32xbf16>
    %cst_222 = arith.constant dense<0.000000e+00> : vector<8x8xf32>
    %439 = tpu.matmul %438, %438, %cst_222 {dimension_numbers = #tpu.dot_dimension_numbers<[1], [1], [0], [0], [0, 0, 1, 0], [], []>} : vector<8x32xbf16>, vector<8x32xbf16>, vector<8x8xf32> -> vector<8x8xf32>
    %440 = arith.negf %439 : vector<8x8xf32>
    %441 = math.exp %440 : vector<8x8xf32>
    %cst_223 = arith.constant 1.000000e+00 : f32
    %442 = vector.broadcast %cst_223 : f32 to vector<8x8xf32>
    %443 = arith.addf %442, %441 : vector<8x8xf32>
    %444 = arith.divf %442, %443 : vector<8x8xf32>
    %445 = tpu.transpose %1, [1, 0] : vector<8x32xf32> -> vector<32x8xf32>
    %cst_224 = arith.constant 0.000000e+00 : f32
    %446 = vector.broadcast %cst_224 : f32 to vector<8x8xf32>
    %447 = vector.extract_strided_slice %1 {offsets = [0, 0], sizes = [8, 1], strides = [1, 1]} : vector<8x32xf32> to vector<8x1xf32>
    %448 = vector.extract_strided_slice %445 {offsets = [0, 0], sizes = [1, 8], strides = [1, 1]} : vector<32x8xf32> to vector<1x8xf32>
    %449 = vector.broadcast %447 : vector<8x1xf32> to vector<8x8xf32>
    %450 = vector.broadcast %448 : vector<1x8xf32> to vector<8x8xf32>
    %451 = arith.subf %449, %450 : vector<8x8xf32>
    %cst_225 = arith.constant 9.99999997E-7 : f32
    %452 = vector.broadcast %cst_225 : f32 to vector<8x8xf32>
    %453 = arith.addf %451, %452 : vector<8x8xf32>
    %454 = arith.mulf %453, %453 : vector<8x8xf32>
    %455 = arith.addf %446, %454 : vector<8x8xf32>
    %456 = vector.extract_strided_slice %1 {offsets = [0, 1], sizes = [8, 1], strides = [1, 1]} : vector<8x32xf32> to vector<8x1xf32>
    %457 = vector.extract_strided_slice %445 {offsets = [1, 0], sizes = [1, 8], strides = [1, 1]} : vector<32x8xf32> to vector<1x8xf32>
    %458 = vector.broadcast %456 : vector<8x1xf32> to vector<8x8xf32>
    %459 = vector.broadcast %457 : vector<1x8xf32> to vector<8x8xf32>
    %460 = arith.subf %458, %459 : vector<8x8xf32>
    %cst_226 = arith.constant 9.99999997E-7 : f32
    %461 = vector.broadcast %cst_226 : f32 to vector<8x8xf32>
    %462 = arith.addf %460, %461 : vector<8x8xf32>
    %463 = arith.mulf %462, %462 : vector<8x8xf32>
    %464 = arith.addf %455, %463 : vector<8x8xf32>
    %465 = math.sqrt %464 : vector<8x8xf32>
    %cst_227 = arith.constant 2.000000e+00 : f32
    %466 = vector.broadcast %cst_227 : f32 to vector<8x8xf32>
    %467 = arith.cmpf olt, %465, %466 : vector<8x8xf32>
    %cst_228 = arith.constant 0.000000e+00 : f32
    %468 = vector.broadcast %cst_228 : f32 to vector<8x8xf32>
    %469 = arith.select %467, %444, %468 : vector<8x8xi1>, vector<8x8xf32>
    %c0_229 = arith.constant 0 : index
    %c0_230 = arith.constant 0 : index
    %c0_231 = arith.constant 0 : index
    %470 = vector.load %arg13[%c0_229, %c0_230, %c0_231] : memref<1x8x8xf32, #tpu.memory_space<vmem>>, vector<1x8x8xf32>
    %471 = vector.shape_cast %470 : vector<1x8x8xf32> to vector<8x8xf32>
    %472 = vector.shape_cast %469 : vector<8x8xf32> to vector<1x8x8xf32>
    tpu.vector_store %arg13[%c0_229, %c0_230, %c0_231], %472 {strides = array<i32>} : memref<1x8x8xf32, #tpu.memory_space<vmem>>, vector<1x8x8xf32>,
    return
  }
  func.func @transform_0(%arg0: i32) -> (i32, i32, i32) {
    %c0_i32 = arith.constant 0 : i32
    %c0_i32_0 = arith.constant 0 : i32
    %c0_i32_1 = arith.constant 0 : i32
    return %arg0, %c0_i32, %c0_i32_0 : i32, i32, i32
  }
  func.func @transform_1(%arg0: i32) -> (i32, i32, i32, i32) {
    %c0_i32 = arith.constant 0 : i32
    %c0_i32_0 = arith.constant 0 : i32
    %c0_i32_1 = arith.constant 0 : i32
    %c0_i32_2 = arith.constant 0 : i32
    %c0_i32_3 = arith.constant 0 : i32
    return %c0_i32, %c0_i32_0, %c0_i32_1, %c0_i32_2 : i32, i32, i32, i32
  }
  func.func @transform_2(%arg0: i32) -> (i32, i32, i32, i32) {
    %c0_i32 = arith.constant 0 : i32
    %c0_i32_0 = arith.constant 0 : i32
    %c0_i32_1 = arith.constant 0 : i32
    %c0_i32_2 = arith.constant 0 : i32
    %c0_i32_3 = arith.constant 0 : i32
    return %c0_i32, %c0_i32_0, %c0_i32_1, %c0_i32_2 : i32, i32, i32, i32
  }
  func.func @transform_3(%arg0: i32) -> (i32, i32, i32) {
    %c0_i32 = arith.constant 0 : i32
    %c0_i32_0 = arith.constant 0 : i32
    %c0_i32_1 = arith.constant 0 : i32
    %c0_i32_2 = arith.constant 0 : i32
    return %c0_i32, %c0_i32_0, %c0_i32_1 : i32, i32, i32
  }
  func.func @transform_4(%arg0: i32) -> (i32, i32, i32) {
    %c0_i32 = arith.constant 0 : i32
    %c0_i32_0 = arith.constant 0 : i32
    %c0_i32_1 = arith.constant 0 : i32
    %c0_i32_2 = arith.constant 0 : i32
    return %c0_i32, %c0_i32_0, %c0_i32_1 : i32, i32, i32
  }
  func.func @transform_5(%arg0: i32) -> (i32, i32, i32) {
    %c0_i32 = arith.constant 0 : i32
    %c0_i32_0 = arith.constant 0 : i32
    %c0_i32_1 = arith.constant 0 : i32
    %c0_i32_2 = arith.constant 0 : i32
    return %c0_i32, %c0_i32_0, %c0_i32_1 : i32, i32, i32
  }
  func.func @transform_6(%arg0: i32) -> (i32, i32, i32) {
    %c0_i32 = arith.constant 0 : i32
    %c0_i32_0 = arith.constant 0 : i32
    %c0_i32_1 = arith.constant 0 : i32
    %c0_i32_2 = arith.constant 0 : i32
    return %c0_i32, %c0_i32_0, %c0_i32_1 : i32, i32, i32
  }
  func.func @transform_7(%arg0: i32) -> (i32, i32, i32) {
    %c0_i32 = arith.constant 0 : i32
    %c0_i32_0 = arith.constant 0 : i32
    %c0_i32_1 = arith.constant 0 : i32
    %c0_i32_2 = arith.constant 0 : i32
    return %c0_i32, %c0_i32_0, %c0_i32_1 : i32, i32, i32
  }
  func.func @transform_8(%arg0: i32) -> (i32, i32, i32) {
    %c0_i32 = arith.constant 0 : i32
    %c0_i32_0 = arith.constant 0 : i32
    %c0_i32_1 = arith.constant 0 : i32
    %c0_i32_2 = arith.constant 0 : i32
    return %c0_i32, %c0_i32_0, %c0_i32_1 : i32, i32, i32
  }
  func.func @transform_9(%arg0: i32) -> (i32, i32, i32) {
    %c0_i32 = arith.constant 0 : i32
    %c0_i32_0 = arith.constant 0 : i32
    %c0_i32_1 = arith.constant 0 : i32
    %c0_i32_2 = arith.constant 0 : i32
    return %c0_i32, %c0_i32_0, %c0_i32_1 : i32, i32, i32
  }
  func.func @transform_10(%arg0: i32) -> (i32, i32, i32) {
    %c0_i32 = arith.constant 0 : i32
    %c0_i32_0 = arith.constant 0 : i32
    %c0_i32_1 = arith.constant 0 : i32
    %c0_i32_2 = arith.constant 0 : i32
    return %c0_i32, %c0_i32_0, %c0_i32_1 : i32, i32, i32
  }
  func.func @transform_11(%arg0: i32) -> (i32, i32, i32) {
    %c0_i32 = arith.constant 0 : i32
    %c0_i32_0 = arith.constant 0 : i32
    %c0_i32_1 = arith.constant 0 : i32
    %c0_i32_2 = arith.constant 0 : i32
    return %c0_i32, %c0_i32_0, %c0_i32_1 : i32, i32, i32
  }
  func.func @transform_12(%arg0: i32) -> (i32, i32, i32) {
    %c0_i32 = arith.constant 0 : i32
    %c0_i32_0 = arith.constant 0 : i32
    %c0_i32_1 = arith.constant 0 : i32
    return %arg0, %c0_i32, %c0_i32_0 : i32, i32, i32
  }
}

</mosaic_0001>

<bundles_post_ra>
// kernel: tpu_custom_call.1
= control target key start
LH: loop header
LB: loop body
LE: loop exit
PB: predicated region body
PF: predicated region fallthrough
CT: control target
= control target key end

     0   :  { %s10022_s0 = inlined_call_operand.vmem [shape: f32[2,8,32], index: 0, kind: input, shape index: {}]   ;;  %s10023_s1 = inlined_call_operand.vmem [shape: bf16[4,12,32,16], index: 1, kind: input, shape index: {}]   ;;  %s10024_s2 = inlined_call_operand.vmem [shape: bf16[4,4,16,32], index: 2, kind: input, shape index: {}]   ;;  %s10025_s3 = inlined_call_operand.vmem [shape: f32[4,1,32], index: 3, kind: input, shape index: {}]   ;;  %s10026_s4 = inlined_call_operand.vmem [shape: f32[4,1,32], index: 4, kind: input, shape index: {}]   ;;  %s10027_s5 = inlined_call_operand.vmem [shape: f32[4,1,32], index: 5, kind: input, shape index: {}]   ;;  %s10028_s6 = inlined_call_operand.vmem [shape: bf16[4,32,64], index: 6, kind: input, shape index: {}]   ;;  %s10029_s7 = inlined_call_operand.vmem [shape: f32[4,1,64], index: 7, kind: input, shape index: {}]   ;;  %s10030_s8 = inlined_call_operand.vmem [shape: bf16[4,64,32], index: 8, kind: input, shape index: {}]   ;;  %s10031_s9 = inlined_call_operand.vmem [shape: f32[4,1,32], index: 9, kind: input, shape index: {}]   ;;  %s10032_s10 = inlined_call_operand.vmem [shape: f32[4,1,32], index: 10, kind: input, shape index: {}]   ;;  %s10033_s11 = inlined_call_operand.vmem [shape: f32[4,1,32], index: 11, kind: input, shape index: {}]   ;;  %s10034_s12 = inlined_call_operand.hbm [shape: f32[2,8,8], index: 12, kind: output, shape index: {}]  }
   0x1   :  { %10035 = sst [smem:[#allocation5_spill]] %s10022_s0 }
   0x2   :  { %10036 = sst [smem:[#allocation6_spill]] %s10023_s1 }
   0x3   :  { %17 = vsyncpa [#allocation3], 0 }
   0x4   :  { %19 = vsyncpa [#allocation3 + $0x1], 0  ;;  %s8747_s21 = smov 0   ;;  %s8749_s22 = smov 0  }
   0x5   :  { %s8751_s23 = smov 0   ;;  %s8753_s24 = smov 0  }
   0x6 LB: > { %s8768_s25 = sadd.s32 4294967295, %s8675_s24   ;;  %s6808_s26 = sadd.s32 4294967294, %s8675_s24   ;;  %s8675_s24 = sphi %s8753_s24, %s10044_s24   ;;  %s8671_s23 = sphi %s8751_s23, %s10043_s23   ;;  %s8667_s22 = sphi %s8749_s22, %s10042_s22   ;;  %s8663_s21 = sphi %s8747_s21, %s10041_s21  }
   0x7   : > { %s8772_s27 = sadd.s32 1, %s8675_s24   ;;  %s289_s28 = sadd.s32 1, %s8671_s23 }
   0x8   : > { %s286_s29 = ssub.s32 %s8675_s24, %s8772_s27  ;;  %p299_p0 = scmp.ne.s32.totalorder %s8671_s23, %s8667_s22 }
   0x9   : > { %p287_p1 = scmp.eq.s32.totalorder %s286_s29, 0  ;;  %p300_p2 = scmp.eq.s32.totalorder %s8768_s25, 1 }
   0xa   : > { %p305_p3 = scmp.ne.s32.totalorder %s8667_s22, %s8663_s21  ;;  %p306_p4 = scmp.eq.s32.totalorder %s6808_s26, 1 }
   0xb   : > { %s8783_s30 = scalar_select %p287_p1, %s8671_s23, %s289_s28  }
   0xc   : > { %p8785_p5 = por %p300_p2, %p299_p0  ;;  %p8789_p6 = por %p306_p4, %p305_p3 }
   0xd   : > { %p6811_p7 = scmp.ge.s32.totalorder %s8675_s24, 1  ;;  %p364_p8 = scmp.lt.s32.totalorder %s8675_s24, 3 }
   0xf   : > { %p365_p9 = pnand %p6811_p7, %p364_p8 }
  0x10   : > { %s10039_s1 = sld [smem:[#allocation6_spill]] (!%p365_p9)  ;;  %p405_p10 = scmp.lt.s32.totalorder (!%p365_p9), %s8768_s25, 1 }
  0x11   : > { %368 = sbr.rel (%p365_p9) target bundleno = 8894 (0x22be), region = 68  ;;  %s10040_s0 = sld [smem:[#allocation5_spill]] (!%p365_p9) }
  0x12   : > { %s7310_s19 = sshll.u32 (!%p365_p9), %s8768_s25, 7 }
  0x13   : > { %s9986_s16 = scalar_lea.hbm (!%p365_p9), %s10034_s12, %s7310_s19 }
  0x16   : > { %v8391_v0 = vld [vmem:[%s10039_s1 + $0x8] sm:$0xff]   ;;  %v8677_v1 = vmov 0.0   ;;  %v8392_v2 = vld [vmem:[%s10039_s1 + $0x18] sm:$0xff]   ;;  %v8393_v3 = vld [vmem:[%s10039_s1] sm:$0xff]   ;;  %vm8678_vm0 = vmmov 0   ;;  %s406_s29 = scalar_select %p405_p10, %s8768_s25, 1 }
  0x17   : > { %7587 = vmatprep.subr.bf16.mxu0 %v8677_v1  ;;  %7595 = vmatprep.subr.bf16.mxu1 %v8677_v1  ;;  %v8394_v4 = vld [vmem:[%s10039_s1 + $0x10] sm:$0xff]   ;;  %v8395_v5 = vld [vmem:[%s10039_s1 + $0x28] sm:$0xff]   ;;  %v8396_v6 = vld [vmem:[%s10039_s1 + $0x38] sm:$0xff]   ;;  %vm472_vm1 = vcmask 261120   ;;  %vm1096_vm2 = vcmask 130048   ;;  %vm1341_vm3 = vcmask 1043456  }
  0x18   : > { %7588 = vmatpush3.bf16.msra.mxu0 %v8391_v0  ;;  %7591 = vmatprep.mubr.msk.bf16.mxu0 %vm8678_vm0, %v8677_v1  ;;  %s6813_s15 = sshll.u32 %s406_s29, 3  ;;  %v8397_v9 = vld [vmem:[%s10039_s1 + $0x20] sm:$0xff]   ;;  %v8398_v10 = vld [vmem:[%s10039_s1 + $0x30] sm:$0xff]   ;;  %v8399_v11 = vld [vmem:[%s10039_s1 + $0x48] sm:$0xff]   ;;  %vm1285_vm4 = vcmask 64512   ;;  %vm1885_vm5 = vcmask 523264  }
  0x19   : > { %7596 = vmatpush3.bf16.msra.mxu1 %v8392_v2  ;;  %7589 = vmatprep.subr.bf16.mxu0 %v8677_v1  ;;  %s8823_s20 = scalar_lea.vmem %s10040_s0, %s6813_s15  ;;  %v8400_v12 = vld [vmem:[%s10039_s1 + $0x58] sm:$0xff]   ;;  %v8401_v13 = vld [vmem:[%s10039_s1 + $0x40] sm:$0xff]   ;;  %v8402_v14 = vld [vmem:[%s10039_s1 + $0x50] sm:$0xff]   ;;  %s8681_s25 = smov [#allocation2]  }
  0x1a   : > { %7597 = vmatprep.subr.bf16.mxu1 %v8677_v1  ;;  %7599 = vmatprep.mubr.msk.bf16.mxu1 %vm8678_vm0, %v8677_v1  ;;  %v410_v7 = vld [vmem:[%s8823_s20] sm:$0xff]  ;;  %v8403_v15 = vld [vmem:[%s10039_s1 + $0x68] sm:$0xff]   ;;  %v8404_v16 = vld [vmem:[%s10039_s1 + $0x78] sm:$0xff]  }
  0x1b   : > { %v8831_v8 = vpack.c.bf16 %v410_v7, %v410_v7  ;;  %v8405_v17 = vld [vmem:[%s10039_s1 + $0x60] sm:$0xff]   ;;  %v8406_v18 = vld [vmem:[%s10039_s1 + $0x70] sm:$0xff]   ;;  %v8407_v19 = vld [vmem:[%s10039_s1 + $0x88] sm:$0xff]  }
  0x1c   : > { %7590 = vmatpush3.bf16.msra.mxu0 %v8393_v3  ;;  %v8408_v20 = vld [vmem:[%s10039_s1 + $0x80] sm:$0xff]   ;;  %v8409_v21 = vld [vmem:[%s10039_s1 + $0x98] sm:$0xff]   ;;  %v8410_v22 = vld [vmem:[%s10039_s1 + $0x90] sm:$0xff]  }
  0x1d   : > { %7598 = vmatpush3.bf16.msra.mxu1 %v8394_v4  ;;  %7603 = vmatprep.subr.bf16.mxu0 %v8677_v1  ;;  %v8411_v23 = vld [vmem:[%s10039_s1 + $0xa8] sm:$0xff]   ;;  %v8412_v24 = vld [vmem:[%s10039_s1 + $0xa0] sm:$0xff]   ;;  %v8413_v25 = vld [vmem:[%s10039_s1 + $0xb8] sm:$0xff]  }
  0x1e   : > { %7611 = vmatprep.subr.bf16.mxu1 %v8677_v1  ;;  %v8414_v26 = vld [vmem:[%s10039_s1 + $0xb0] sm:$0xff]  }
  0x1f   : > { %7592 = vmatmul.mubr.msk.bf16.vlgmr.msra.gmra.mxu0 %vm472_vm1, %v8831_v8 }
  0x20   : > { %7600 = vmatmul.mubr.msk.bf16.vlgmr.msra.gmra.mxu1 %vm472_vm1, %v8831_v8  ;;  %7604 = vmatpush3.bf16.msra.mxu0 %v8395_v5 }
  0x21   : > { %7612 = vmatpush3.bf16.msra.mxu1 %v8396_v6  ;;  %7605 = vmatprep.subr.bf16.mxu0 %v8677_v1 }
  0x22   : > { %7613 = vmatprep.subr.bf16.mxu1 %v8677_v1  ;;  %7607 = vmatprep.mubr.msk.bf16.mxu0 %vm8678_vm0, %v8677_v1 }
  0x23   : > { %7615 = vmatprep.mubr.msk.bf16.mxu1 %vm8678_vm0, %v8677_v1 }
  0x24   : > { %7606 = vmatpush3.bf16.msra.mxu0 %v8397_v9 }
  0x25   : > { %7614 = vmatpush3.bf16.msra.mxu1 %v8398_v10  ;;  %7619 = vmatprep.subr.bf16.mxu0 %v8677_v1 }
  0x26   : > { %7627 = vmatprep.subr.bf16.mxu1 %v8677_v1 }
  0x27   : > { %7608 = vmatmul.mubr.msk.bf16.vlgmr.msra.gmra.mxu0 %vm472_vm1, %v8831_v8 }
  0x28   : > { %7616 = vmatmul.mubr.msk.bf16.vlgmr.msra.gmra.mxu1 %vm472_vm1, %v8831_v8  ;;  %7620 = vmatpush3.bf16.msra.mxu0 %v8399_v11 }
  0x29   : > { %7628 = vmatpush3.bf16.msra.mxu1 %v8400_v12  ;;  %7621 = vmatprep.subr.bf16.mxu0 %v8677_v1 }
  0x2a   : > { %7629 = vmatprep.subr.bf16.mxu1 %v8677_v1  ;;  %7623 = vmatprep.mubr.msk.bf16.mxu0 %vm8678_vm0, %v8677_v1 }
  0x2b   : > { %7631 = vmatprep.mubr.msk.bf16.mxu1 %vm8678_vm0, %v8677_v1 }
  0x2c   : > { %7622 = vmatpush3.bf16.msra.mxu0 %v8401_v13 }
  0x2d   : > { %7630 = vmatpush3.bf16.msra.mxu1 %v8402_v14  ;;  %7635 = vmatprep.subr.bf16.mxu0 %v8677_v1 }
  0x2e   : > { %7643 = vmatprep.subr.bf16.mxu1 %v8677_v1 }
  0x2f   : > { %7624 = vmatmul.mubr.msk.bf16.vlgmr.msra.gmra.mxu0 %vm472_vm1, %v8831_v8 }
  0x30   : > { %7632 = vmatmul.mubr.msk.bf16.vlgmr.msra.gmra.mxu1 %vm472_vm1, %v8831_v8  ;;  %7636 = vmatpush3.bf16.msra.mxu0 %v8403_v15 }
  0x31   : > { %7644 = vmatpush3.bf16.msra.mxu1 %v8404_v16  ;;  %7637 = vmatprep.subr.bf16.mxu0 %v8677_v1 }
  0x32   : > { %7645 = vmatprep.subr.bf16.mxu1 %v8677_v1  ;;  %7639 = vmatprep.mubr.msk.bf16.mxu0 %vm8678_vm0, %v8677_v1 }
  0x33   : > { %7647 = vmatprep.mubr.msk.bf16.mxu1 %vm8678_vm0, %v8677_v1 }
  0x34   : > { %7638 = vmatpush3.bf16.msra.mxu0 %v8405_v17 }
  0x35   : > { %7646 = vmatpush3.bf16.msra.mxu1 %v8406_v18  ;;  %7651 = vmatprep.subr.bf16.mxu0 %v8677_v1 }
  0x36   : > { %7659 = vmatprep.subr.bf16.mxu1 %v8677_v1 }
  0x37   : > { %7640 = vmatmul.mubr.msk.bf16.vlgmr.msra.gmra.mxu0 %vm472_vm1, %v8831_v8 }
  0x38   : > { %7648 = vmatmul.mubr.msk.bf16.vlgmr.msra.gmra.mxu1 %vm472_vm1, %v8831_v8  ;;  %7652 = vmatpush3.bf16.msra.mxu0 %v8407_v19 }
  0x39   : > { %7655 = vmatprep.mubr.msk.bf16.mxu0 %vm8678_vm0, %v8677_v1  ;;  %7653 = vmatprep.subr.bf16.mxu0 %v8677_v1 }
  0x3a   : > { %7663 = vmatprep.mubr.msk.bf16.mxu1 %vm8678_vm0, %v8677_v1  ;;  %7660 = vmatpush3.bf16.msra.mxu1 %v8409_v21 }
  0x3b   : > { %7661 = vmatprep.subr.bf16.mxu1 %v8677_v1 }
  0x3c   : > { %7654 = vmatpush3.bf16.msra.mxu0 %v8408_v20 }
  0x3d   : > { %7667 = vmatprep.subr.bf16.mxu0 %v8677_v1 }
  0x3e   : > { %7662 = vmatpush3.bf16.msra.mxu1 %v8410_v22 }
  0x3f   : > { %7656 = vmatmul.mubr.msk.bf16.vlgmr.msra.gmra.mxu0 %vm472_vm1, %v8831_v8  ;;  %7675 = vmatprep.subr.bf16.mxu1 %v8677_v1 }
  0x40   : > { %7668 = vmatpush3.bf16.msra.mxu0 %v8411_v23  ;;  %7671 = vmatprep.mubr.msk.bf16.mxu0 %vm8678_vm0, %v8677_v1 }
  0x41   : > { %7669 = vmatprep.subr.bf16.mxu0 %v8677_v1  ;;  %7664 = vmatmul.mubr.msk.bf16.vlgmr.msra.gmra.mxu1 %vm472_vm1, %v8831_v8 }
  0x42   : > { %7676 = vmatpush3.bf16.msra.mxu1 %v8413_v25  ;;  %7679 = vmatprep.mubr.msk.bf16.mxu1 %vm8678_vm0, %v8677_v1 }
  0x43   : > { %7677 = vmatprep.subr.bf16.mxu1 %v8677_v1 }
  0x44   : > { %7670 = vmatpush3.bf16.msra.mxu0 %v8412_v24 }
  0x45   : > { %7683 = vmatprep.subr.bf16.mxu0 %v8677_v1 }
  0x46   : > { %7678 = vmatpush3.bf16.msra.mxu1 %v8414_v26 }
  0x47   : > { %7672 = vmatmul.mubr.msk.bf16.vlgmr.msra.gmra.mxu0 %vm472_vm1, %v8831_v8  ;;  %7689 = vmatprep.subr.bf16.mxu1 %v8677_v1 }
  0x48   : > { %7685 = vmatprep.mubr.msk.bf16.mxu0 %vm8678_vm0, %v8677_v1 }
  0x49   : > { %7680 = vmatmul.mubr.msk.bf16.vlgmr.msra.gmra.mxu1 %vm472_vm1, %v8831_v8 }
  0x4a   : > { %7691 = vmatprep.mubr.msk.bf16.mxu1 %vm8678_vm0, %v8677_v1 }
  0xdf   : > { %v510_v27 = vpop.f32.mrf.mxu0 }
  0xe0   : > { %v562_v28 = vpop.f32.mrf.mxu1  ;;  %v1088_v57 = vpack.c.bf16 %v510_v27, %v510_v27 }
  0xe1   : > { %v7593_v29 = vpop.f32.mrf.mxu0  ;;  %v1089_v58 = vpack.c.bf16 %v562_v28, %v562_v28 }
  0xe2   : > { %v7601_v30 = vpop.f32.mrf.mxu1 }
  0xe3   : > { %v513_v31 = vpop.f32.mrf.mxu0 }
  0xe4   : > { %v565_v32 = vpop.f32.mrf.mxu1 }
  0xe5   : > { %v7594_v33 = vpop.f32.mrf.mxu0 }
  0xe6   : > { %v7602_v34 = vpop.f32.mrf.mxu1 }
  0xe7   : > { %v614_v35 = vpop.f32.mrf.mxu0 }
  0xe8   : > { %v666_v36 = vpop.f32.mrf.mxu1  ;;  %v1090_v6 = vpack.c.bf16 %v614_v35, %v614_v35 }
  0xe9   : > { %v7609_v37 = vpop.f32.mrf.mxu0  ;;  %v1091_v7 = vpack.c.bf16 %v666_v36, %v666_v36 }
  0xea   : > { %v7617_v38 = vpop.f32.mrf.mxu1 }
  0xeb   : > { %v617_v39 = vpop.f32.mrf.mxu0 }
  0xec   : > { %v669_v40 = vpop.f32.mrf.mxu1 }
  0xed   : > { %v7610_v41 = vpop.f32.mrf.mxu0 }
  0xee   : > { %v7618_v42 = vpop.f32.mrf.mxu1 }
  0xef   : > { %v718_v43 = vpop.f32.mrf.mxu0 }
  0xf0   : > { %v770_v44 = vpop.f32.mrf.mxu1  ;;  %v1092_v45 = vpack.c.bf16 %v718_v43, %v718_v43 }
  0xf1   : > { %v1093_v46 = vpack.c.bf16 %v770_v44, %v770_v44  ;;  %v7625_v47 = vpop.f32.mrf.mxu0 }
  0xf2   : > { %v7633_v48 = vpop.f32.mrf.mxu1  ;;  %v1101_v49 = vsel %vm1096_vm2, %v1092_v45, 0 }
  0xf3   : > { %v1147_v50 = vsel %vm1096_vm2, %v1093_v46, 0  ;;  %v721_v51 = vpop.f32.mrf.mxu0  ;;  %7684 = vmatpush3.bf16.xpose.msra.mxu0 %v1101_v49 }
  0xf4   : > { %v773_v52 = vpop.f32.mrf.mxu1  ;;  %7690 = vmatpush3.bf16.xpose.msra.mxu1 %v1147_v50  ;;  %7695 = vmatprep.subr.bf16.mxu0 %v8677_v1 }
  0xf5   : > { %7701 = vmatprep.subr.bf16.mxu1 %v8677_v1  ;;  %v7626_v53 = vpop.f32.mrf.mxu0 }
  0xf6   : > { %v7634_v54 = vpop.f32.mrf.mxu1 }
  0xf7   : > { %v822_v55 = vpop.f32.mrf.mxu0 }
  0xf8   : > { %v874_v56 = vpop.f32.mrf.mxu1  ;;  %v1094_v59 = vpack.c.bf16 %v822_v55, %v822_v55 }
  0xf9   : > { %v1095_v60 = vpack.c.bf16 %v874_v56, %v874_v56  ;;  %v7641_v61 = vpop.f32.mrf.mxu0 }
  0xfa   : > { %v7649_v62 = vpop.f32.mrf.mxu1  ;;  %v1193_v63 = vsel %vm1096_vm2, %v1094_v59, 0  ;;  %7686 = vmatmul.mubr.msk.bf16.vlgmr.msra.gmra.mxu0 %vm1096_vm2, %v1088_v57 }
  0xfb   : > { %v1239_v0 = vsel %vm1096_vm2, %v1095_v60, 0  ;;  %7692 = vmatmul.mubr.msk.bf16.vlgmr.msra.gmra.mxu1 %vm1096_vm2, %v1089_v58  ;;  %v825_v2 = vpop.f32.mrf.mxu0  ;;  %7696 = vmatpush3.bf16.xpose.msra.mxu0 %v1193_v63 }
  0xfc   : > { %v877_v3 = vpop.f32.mrf.mxu1  ;;  %7702 = vmatpush3.bf16.xpose.msra.mxu1 %v1239_v0  ;;  %7697 = vmatprep.mubr.msk.bf16.mxu0 %vm8678_vm0, %v8677_v1 }
  0xfd   : > { %7703 = vmatprep.mubr.msk.bf16.mxu1 %vm8678_vm0, %v8677_v1  ;;  %v7642_v4 = vpop.f32.mrf.mxu0  ;;  %7707 = vmatprep.subr.bf16.mxu0 %v8677_v1 }
  0xfe   : > { %v7650_v5 = vpop.f32.mrf.mxu1  ;;  %7713 = vmatprep.subr.bf16.mxu1 %v8677_v1 }
  0xff   : > { %v926_v8 = vpop.f32.mrf.mxu0 }
 0x100   : > { %v1334_v9 = vpack.c.bf16 %v926_v8, %v926_v8 }
 0x101   : > { %v7657_v10 = vpop.f32.mrf.mxu0  ;;  %v978_v13 = vpop.f32.mrf.mxu1 }
 0x102   : > { %7698 = vmatmul.mubr.msk.bf16.vlgmr.msra.gmra.mxu0 %vm1096_vm2, %v1090_v6  ;;  %v1343_v11 = vsel %vm1341_vm3, %v1334_v9, 0  ;;  %v1335_v14 = vpack.c.bf16 %v978_v13, %v978_v13 }
 0x103   : > { %7704 = vmatmul.mubr.msk.bf16.vlgmr.msra.gmra.mxu1 %vm1096_vm2, %v1091_v7  ;;  %7709 = vmatprep.mubr.msk.bf16.mxu0 %vm8678_vm0, %v8677_v1  ;;  %v929_v12 = vpop.f32.mrf.mxu0  ;;  %v7665_v16 = vpop.f32.mrf.mxu1 }
 0x104   : > { %7715 = vmatprep.mubr.msk.bf16.mxu1 %vm8678_vm0, %v8677_v1  ;;  %7708 = vmatpush3.bf16.msra.mxu0 %v1343_v11  ;;  %v1389_v17 = vsel %vm1341_vm3, %v1335_v14, 0 }
 0x105   : > { %7719 = vmatprep.subr.bf16.mxu0 %v8677_v1  ;;  %v7658_v15 = vpop.f32.mrf.mxu0  ;;  %v981_v18 = vpop.f32.mrf.mxu1  ;;  %7714 = vmatpush3.bf16.msra.mxu1 %v1389_v17 }
 0x106   : > { %7725 = vmatprep.subr.bf16.mxu1 %v8677_v1 }
 0x107   : > { %v8978_v19 = vpop.f32.mrf.mxu0  ;;  %v7666_v20 = vpop.f32.mrf.mxu1 }
 0x108   : > { %v1336_v14 = vpack.c.bf16 %v8978_v19, %v8978_v19 }
 0x109   : > { %v7673_v21 = vpop.f32.mrf.mxu0  ;;  %v8981_v23 = vpop.f32.mrf.mxu1 }
 0x10a   : > { %v1435_v18 = vsel %vm1341_vm3, %v1336_v14, 0  ;;  %v1337_v20 = vpack.c.bf16 %v8981_v23, %v8981_v23  ;;  %v8415_v23 = vld [vmem:[%s10024_s2] sm:$0xff]  }
 0x10b   : > { %v1033_v22 = vpop.f32.mrf.mxu0  ;;  %v7681_v25 = vpop.f32.mrf.mxu1 }
 0x10c   : > { %v1481_v19 = vsel %vm1341_vm3, %v1337_v20, 0 }
 0x10d   : > { %v7674_v24 = vpop.f32.mrf.mxu0  ;;  %v1085_v26 = vpop.f32.mrf.mxu1 }
 0x10f   : > { %v7682_v27 = vpop.f32.mrf.mxu1 }
 0x1ba   : > { %v1137_v28 = vpop.f32.mrf.mxu0 }
 0x1bb   : > { %v1183_v29 = vpop.f32.mrf.mxu1  ;;  %v1281_v30 = vmul.f32 0.25, %v1137_v28 }
 0x1bc   : > { %v7687_v31 = vpop.f32.mrf.mxu0  ;;  %v1282_v33 = vmul.f32 0.25, %v1183_v29 }
 0x1bd   : > { %v7693_v32 = vpop.f32.mrf.mxu1  ;;  %v1286_v34 = vsel %vm1285_vm4, %v1281_v30, -inf }
 0x1be   : > { %1287 = vmax.xlane.f32.xlu0 %v1286_v34  ;;  %v1140_v36 = vpop.f32.mrf.mxu0  ;;  %v1289_v39 = vsel %vm1285_vm4, %v1282_v33, -inf  ;;  %v8417_v32 = vld [vmem:[%s10024_s2 + $0x10] sm:$0xff]  }
 0x1bf   : > { %v1186_v35 = vpop.f32.mrf.mxu1 }
 0x1c0   : > { %v7688_v37 = vpop.f32.mrf.mxu0 }
 0x1c1   : > { %v7694_v38 = vpop.f32.mrf.mxu1  ;;  %v8418_v37 = vld [vmem:[%s10024_s2 + $0x18] sm:$0xff]  }
 0x1c2   : > { %1290 = vmax.xlane.f32.xlu0 %v1289_v39  ;;  %v1229_v41 = vpop.f32.mrf.mxu0 }
 0x1c3   : > { %v1275_v40 = vpop.f32.mrf.mxu1  ;;  %v1283_v42 = vmul.f32 0.25, %v1229_v41 }
 0x1c4   : > { %v7699_v43 = vpop.f32.mrf.mxu0  ;;  %v1284_v45 = vmul.f32 0.25, %v1275_v40 }
 0x1c5   : > { %v7705_v44 = vpop.f32.mrf.mxu1  ;;  %v1292_v46 = vsel %vm1285_vm4, %v1283_v42, -inf }
 0x1c6   : > { %1293 = vmax.xlane.f32.xlu1 %v1292_v46  ;;  %v1232_v48 = vpop.f32.mrf.mxu0  ;;  %v1295_v51 = vsel %vm1285_vm4, %v1284_v45, -inf }
 0x1c7   : > { %v1278_v47 = vpop.f32.mrf.mxu1 }
 0x1c8   : > { %v7700_v49 = vpop.f32.mrf.mxu0 }
 0x1c9   : > { %v7706_v50 = vpop.f32.mrf.mxu1 }
 0x1ca   : > { %1296 = vmax.xlane.f32.xlu1 %v1295_v51 }
 0x247   : > { %v1288_v52 = vpop.xlane.xlu0 %1287 }
 0x248   : > { %v1298_v53 = vsub.f32 %v1281_v30, %v1288_v52  ;;  %v8416_v30 = vld [vmem:[%s10024_s2 + $0x8] sm:$0xff]  }
 0x24a   : > { %v1302_v54 = vmul.f32 1.442695, %v1298_v53 }
 0x24b   : > { %v1291_v55 = vpop.xlane.xlu0 %1290 }
 0x24c   : > { %8527 = vpow2.f32 %v1302_v54  ;;  %v1299_v56 = vsub.f32 %v1282_v33, %v1291_v55 }
 0x24e   : > { %v1304_v57 = vmul.f32 1.442695, %v1299_v56 }
 0x24f   : > { %v1294_v58 = vpop.xlane.xlu1 %1293 }
 0x250   : > { %8529 = vpow2.f32 %v1304_v57  ;;  %v1300_v59 = vsub.f32 %v1283_v42, %v1294_v58 }
 0x252   : > { %v1306_v60 = vmul.f32 1.442695, %v1300_v59 }
 0x253   : > { %v1297_v61 = vpop.xlane.xlu1 %1296 }
 0x254   : > { %8531 = vpow2.f32 %v1306_v60  ;;  %v1301_v62 = vsub.f32 %v1284_v45, %v1297_v61 }
 0x256   : > { %v1308_v63 = vmul.f32 1.442695, %v1301_v62 }
 0x258   : > { %8533 = vpow2.f32 %v1308_v63 }
 0x259   : > { %v8528_v0 = vpop.eup %8527 }
 0x25a   : > { %v1310_v2 = vsel %vm1285_vm4, %v8528_v0, 0.0 }
 0x25b   : > { %1311 = vadd.xlane.f32.xlu0 %v1310_v2 }
 0x25d   : > { %v8530_v3 = vpop.eup %8529 }
 0x25e   : > { %v1313_v4 = vsel %vm1285_vm4, %v8530_v3, 0.0 }
 0x25f   : > { %1314 = vadd.xlane.f32.xlu1 %v1313_v4 }
 0x261   : > { %v8532_v5 = vpop.eup %8531 }
 0x262   : > { %v1316_v6 = vsel %vm1285_vm4, %v8532_v5, 0.0 }
 0x263   : > { %1317 = vadd.xlane.f32.xlu0 %v1316_v6 }
 0x265   : > { %v8534_v7 = vpop.eup %8533 }
 0x266   : > { %v1319_v8 = vsel %vm1285_vm4, %v8534_v7, 0.0 }
 0x267   : > { %1320 = vadd.xlane.f32.xlu1 %v1319_v8  ;;  %v6866_v8 = vld [vmem:[%s10025_s3] ss:$0 sm:$0xff] }
 0x2e4   : > { %v1312_v9 = vpop.xlane.xlu0 %1311 }
 0x2e5   : > { %8535 = vrcp.f32 %v1312_v9 }
 0x2e8   : > { %v1315_v10 = vpop.xlane.xlu1 %1314 }
 0x2e9   : > { %8537 = vrcp.f32 %v1315_v10 }
 0x2ec   : > { %v1318_v11 = vpop.xlane.xlu0 %1317 }
 0x2ed   : > { %8539 = vrcp.f32 %v1318_v11 }
 0x2f0   : > { %v1321_v12 = vpop.xlane.xlu1 %1320 }
 0x2f1   : > { %8541 = vrcp.f32 %v1321_v12 }
 0x2f2   : > { %v8536_v13 = vpop.eup %8535 }
 0x2f3   : > { %v1326_v15 = vmul.f32 %v8536_v13, %v8528_v0 }
 0x2f5   : > { %v1330_v16 = vpack.c.bf16 %v1326_v15, %v1326_v15  ;;  %v8613_v15 = vld [vmem:[%s8823_s20] sm:$0xff] }
 0x2f6   : > { %v8538_v17 = vpop.eup %8537 }
 0x2f7   : > { %7710 = vmatmul.mubr.msk.bf16.vlgmr.msra.gmra.mxu0 %vm1285_vm4, %v1330_v16  ;;  %v1327_v21 = vmul.f32 %v8538_v17, %v8530_v3 }
 0x2f8   : > { %7720 = vmatpush3.bf16.msra.mxu0 %v1435_v18  ;;  %7721 = vmatprep.mubr.msk.bf16.mxu0 %vm8678_vm0, %v8677_v1 }
 0x2f9   : > { %v1331_v22 = vpack.c.bf16 %v1327_v21, %v1327_v21  ;;  %7731 = vmatprep.subr.bf16.mxu0 %v8677_v1 }
 0x2fa   : > { %v8540_v24 = vpop.eup %8539 }
 0x2fb   : > { %7716 = vmatmul.mubr.msk.bf16.vlgmr.msra.gmra.mxu1 %vm1285_vm4, %v1331_v22  ;;  %v1328_v25 = vmul.f32 %v8540_v24, %v8532_v5 }
 0x2fc   : > { %7726 = vmatpush3.bf16.msra.mxu1 %v1481_v19  ;;  %7727 = vmatprep.mubr.msk.bf16.mxu1 %vm8678_vm0, %v8677_v1  ;;  %v8419_v19 = vld [vmem:[%s10028_s6 + $0x8] sm:$0xff]  }
 0x2fd   : > { %v1332_v26 = vpack.c.bf16 %v1328_v25, %v1328_v25  ;;  %7737 = vmatprep.subr.bf16.mxu1 %v8677_v1  ;;  %v8420_v25 = vld [vmem:[%s10028_s6] sm:$0xff]  }
 0x2fe   : > { %v8542_v27 = vpop.eup %8541 }
 0x2ff   : > { %7722 = vmatmul.mubr.msk.bf16.vlgmr.msra.gmra.mxu0 %vm1285_vm4, %v1332_v26  ;;  %v1329_v28 = vmul.f32 %v8542_v27, %v8534_v7  ;;  %v8422_v26 = vld [vmem:[%s10030_s8 + $0x10] sm:$0xff]  }
 0x300   : > { %7732 = vmatpush3.bf16.msra.mxu0 %v8415_v23  ;;  %7733 = vmatprep.mubr.msk.bf16.mxu0 %vm8678_vm0, %v8677_v1  ;;  %v8421_v23 = vld [vmem:[%s10030_s8 + $0x18] sm:$0xff]  }
 0x301   : > { %v1333_v29 = vpack.c.bf16 %v1329_v28, %v1329_v28  ;;  %7743 = vmatprep.subr.bf16.mxu0 %v8677_v1 }
 0x303   : > { %7728 = vmatmul.mubr.msk.bf16.vlgmr.msra.gmra.mxu1 %vm1285_vm4, %v1333_v29 }
 0x304   : > { %7739 = vmatprep.mubr.msk.bf16.mxu1 %vm8678_vm0, %v8677_v1  ;;  %7738 = vmatpush3.bf16.msra.mxu1 %v8416_v30 }
 0x305   : > { %7749 = vmatprep.subr.bf16.mxu1 %v8677_v1 }
 0x3b7   : > { %v1379_v31 = vpop.f32.mrf.mxu0 }
 0x3b8   : > { %v1523_v33 = vpack.c.bf16 %v1379_v31, %v1379_v31  ;;  %v6867_v31 = vld [vmem:[%s10026_s4] ss:$0 sm:$0xff] }
 0x3b9   : > { %v7711_v34 = vpop.f32.mrf.mxu0 }
 0x3ba   : > { %7734 = vmatmul.mubr.msk.bf16.vlgmr.msra.gmra.mxu0 %vm1096_vm2, %v1523_v33  ;;  %v6868_v33 = vld [vmem:[%s10027_s5] ss:$0 sm:$0xff] }
 0x3bb   : > { %v1382_v35 = vpop.f32.mrf.mxu0  ;;  %v1425_v36 = vpop.f32.mrf.mxu1  ;;  %7744 = vmatpush3.bf16.msra.mxu0 %v8417_v32  ;;  %7745 = vmatprep.mubr.msk.bf16.mxu0 %vm8678_vm0, %v8677_v1 }
 0x3bc   : > { %v1524_v38 = vpack.c.bf16 %v1425_v36, %v1425_v36  ;;  %7755 = vmatprep.subr.bf16.mxu0 %v8677_v1 }
 0x3bd   : > { %v7712_v39 = vpop.f32.mrf.mxu0  ;;  %v7717_v40 = vpop.f32.mrf.mxu1 }
 0x3be   : > { %7740 = vmatmul.mubr.msk.bf16.vlgmr.msra.gmra.mxu1 %vm1096_vm2, %v1524_v38  ;;  %v8424_v38 = vld [vmem:[%s10030_s8] sm:$0xff]  }
 0x3bf   : > { %v1428_v41 = vpop.f32.mrf.mxu1  ;;  %v1471_v42 = vpop.f32.mrf.mxu0  ;;  %7750 = vmatpush3.bf16.msra.mxu1 %v8418_v37  ;;  %7751 = vmatprep.mubr.msk.bf16.mxu1 %vm8678_vm0, %v8677_v1  ;;  %v8423_v37 = vld [vmem:[%s10030_s8 + $0x8] sm:$0xff]   ;;  %v6869_v39 = vld [vmem:[%s10029_s7] ss:$0 sm:$0xff] }
 0x3c0   : > { %v1525_v43 = vpack.c.bf16 %v1471_v42, %v1471_v42  ;;  %7763 = vmatprep.subr.bf16.mxu1 %v8677_v1 }
 0x3c1   : > { %v7718_v44 = vpop.f32.mrf.mxu1  ;;  %v7723_v45 = vpop.f32.mrf.mxu0 }
 0x3c2   : > { %7746 = vmatmul.mubr.msk.bf16.vlgmr.msra.gmra.mxu0 %vm1096_vm2, %v1525_v43 }
 0x3c3   : > { %v1474_v46 = vpop.f32.mrf.mxu0  ;;  %v1517_v47 = vpop.f32.mrf.mxu1  ;;  %7759 = vmatprep.mubr.msk.bf16.mxu0 %vm8678_vm0, %v8677_v1  ;;  %7756 = vmatpush3.bf16.msra.mxu0 %v8419_v19  ;;  %v8441_v19 = vld [vmem:[%s10039_s1 + $0x138] sm:$0xff]  }
 0x3c4   : > { %v1526_v48 = vpack.c.bf16 %v1517_v47, %v1517_v47  ;;  %7757 = vmatprep.subr.bf16.mxu0 %v8677_v1  ;;  %v6873_v47 = vld [vmem:[%s10031_s9] ss:$0 sm:$0xff] }
 0x3c5   : > { %v7724_v49 = vpop.f32.mrf.mxu0  ;;  %v7729_v50 = vpop.f32.mrf.mxu1 }
 0x3c6   : > { %7752 = vmatmul.mubr.msk.bf16.vlgmr.msra.gmra.mxu1 %vm1096_vm2, %v1526_v48 }
 0x3c7   : > { %v1520_v51 = vpop.f32.mrf.mxu1  ;;  %7771 = vmatprep.mubr.msk.bf16.mxu1 %vm8678_vm0, %v8677_v1  ;;  %7758 = vmatpush3.bf16.msra.mxu0 %v8420_v25  ;;  %v8442_v25 = vld [vmem:[%s10039_s1 + $0x168] sm:$0xff]  }
 0x3c8   : > { %7775 = vmatprep.subr.bf16.mxu0 %v8677_v1  ;;  %7764 = vmatpush3.bf16.msra.mxu1 %v8421_v23  ;;  %v8443_v23 = vld [vmem:[%s10039_s1 + $0x130] sm:$0xff]  }
 0x3c9   : > { %v7730_v52 = vpop.f32.mrf.mxu1  ;;  %7765 = vmatprep.subr.bf16.mxu1 %v8677_v1 }
 0x3cc   : > { %7766 = vmatpush3.bf16.msra.mxu1 %v8422_v26  ;;  %v8444_v26 = vld [vmem:[%s10039_s1 + $0x160] sm:$0xff]  }
 0x3cd   : > { %7767 = vmatprep.subr.bf16.mxu1 %v8677_v1 }
 0x3d0   : > { %7768 = vmatpush3.bf16.msra.mxu1 %v8423_v37 }
 0x3d1   : > { %7769 = vmatprep.subr.bf16.mxu1 %v8677_v1 }
 0x3d4   : > { %7770 = vmatpush3.bf16.msra.mxu1 %v8424_v38 }
 0x3d5   : > { %7791 = vmatprep.subr.bf16.mxu1 %v8677_v1 }
 0x47a   : > { %v1578_v53 = vpop.f32.mrf.mxu0 }
 0x47b   : > { %v1731_v62 = vsel %vm472_vm1, %v1578_v53, 0.0 }
 0x47c   : > { %v7735_v54 = vpop.f32.mrf.mxu0 }
 0x47e   : > { %v1581_v55 = vpop.f32.mrf.mxu0  ;;  %v1627_v56 = vpop.f32.mrf.mxu1 }
 0x47f   : > { %v1732_v59 = vsel %vm472_vm1, %v1627_v56, 0.0 }
 0x480   : > { %v7736_v57 = vpop.f32.mrf.mxu0  ;;  %v7741_v58 = vpop.f32.mrf.mxu1  ;;  %v1733_v0 = vadd.f32 %v1732_v59, %v1731_v62  ;;  %v8427_v62 = vld [vmem:[%s10039_s1 + $0xc0] sm:$0xff]  }
 0x482   : > { %v1630_v60 = vpop.f32.mrf.mxu1  ;;  %v1676_v61 = vpop.f32.mrf.mxu0 }
 0x483   : > { %v1734_v63 = vsel %vm472_vm1, %v1676_v61, 0.0  ;;  %v8425_v60 = vld [vmem:[%s10039_s1 + $0xc8] sm:$0xff]  }
 0x484   : > { %v7742_v2 = vpop.f32.mrf.mxu1  ;;  %v7747_v3 = vpop.f32.mrf.mxu0  ;;  %v1735_v4 = vadd.f32 %v1734_v63, %v1733_v0  ;;  %v8426_v61 = vld [vmem:[%s10039_s1 + $0xe8] sm:$0xff]   ;;  %v8428_v63 = vld [vmem:[%s10039_s1 + $0xe0] sm:$0xff]  }
 0x486   : > { %v1679_v5 = vpop.f32.mrf.mxu0  ;;  %v1725_v6 = vpop.f32.mrf.mxu1 }
 0x487   : > { %v1736_v7 = vsel %vm472_vm1, %v1725_v6, 0.0  ;;  %v6879_v5 = vld [vmem:[%s10032_s10] ss:$0 sm:$0xff] }
 0x488   : > { %v1737_v9 = vadd.f32 %v1736_v7, %v1735_v4  ;;  %v7748_v10 = vpop.f32.mrf.mxu0  ;;  %v7753_v11 = vpop.f32.mrf.mxu1  ;;  %v6880_v7 = vld [vmem:[%s10033_s11] ss:$0 sm:$0xff] }
 0x489   : > { %v8429_v10 = vld [vmem:[%s10039_s1 + $0xd8] sm:$0xff]   ;;  %v8430_v11 = vld [vmem:[%s10039_s1 + $0x108] sm:$0xff]  }
 0x48a   : > { %v1745_v12 = vadd.f32 %v6866_v8, %v1737_v9  ;;  %v1728_v13 = vpop.f32.mrf.mxu1 }
 0x48b   : > { %v8431_v13 = vld [vmem:[%s10039_s1 + $0xd0] sm:$0xff]  }
 0x48c   : > { %v7754_v14 = vpop.f32.mrf.mxu1  ;;  %v1746_v16 = vadd.f32 %v8613_v15, %v1745_v12  ;;  %v8433_v15 = vld [vmem:[%s10039_s1 + $0xf8] sm:$0xff]  }
 0x48d   : > { %v8432_v14 = vld [vmem:[%s10039_s1 + $0x100] sm:$0xff]  }
 0x48e   : > { %v1749_v17 = vsel %vm472_vm1, %v1746_v16, 0.0 }
 0x48f   : > { %1750 = vadd.xlane.f32.xlu0 %v1749_v17  ;;  %v8435_v17 = vld [vmem:[%s10039_s1 + $0xf0] sm:$0xff]  }
 0x518   : > { %v1751_v18 = vpop.xlane.xlu0 %1750 }
 0x519   : > { %v1753_v20 = vmul.f32 0.03125, %v1751_v18  ;;  %v8436_v18 = vld [vmem:[%s10039_s1 + $0x120] sm:$0xff]  }
 0x51b   : > { %v1754_v21 = vsub.f32 %v1746_v16, %v1753_v20  ;;  %v8434_v16 = vld [vmem:[%s10039_s1 + $0x128] sm:$0xff]   ;;  %v8437_v20 = vld [vmem:[%s10039_s1 + $0x118] sm:$0xff]  }
 0x51d   : > { %v1755_v22 = vmul.f32 %v1754_v21, %v1754_v21 }
 0x51f   : > { %v1756_v24 = vsel %vm472_vm1, %v1755_v22, 0.0  ;;  %v8439_v22 = vld [vmem:[%s10039_s1 + $0x110] sm:$0xff]  }
 0x520   : > { %1757 = vadd.xlane.f32.xlu1 %v1756_v24  ;;  %v8440_v24 = vld [vmem:[%s10039_s1 + $0x140] sm:$0xff]  }
 0x5a9   : > { %v1758_v27 = vpop.xlane.xlu1 %1757 }
 0x5aa   : > { %v1759_v28 = vmul.f32 0.03125, %v1758_v27  ;;  %v8445_v27 = vld [vmem:[%s10039_s1 + $0x158] sm:$0xff]  }
 0x5ac   : > { %v1760_v29 = vadd.f32 1e-05, %v1759_v28  ;;  %v8446_v28 = vld [vmem:[%s10039_s1 + $0x150] sm:$0xff]  }
 0x5ae   : > { %8543 = vrsqrt.f32 %v1760_v29  ;;  %v8447_v29 = vld [vmem:[%s10039_s1 + $0x178] sm:$0xff]  }
 0x5bb   : > { %v8544_v30 = vpop.eup %8543 }
 0x5bc   : > { %v1762_v32 = vmul.f32 %v8544_v30, %v1754_v21  ;;  %v8438_v21 = vld [vmem:[%s10039_s1 + $0x148] sm:$0xff]   ;;  %v8448_v30 = vld [vmem:[%s10039_s1 + $0x170] sm:$0xff]  }
 0x5be   : > { %v1769_v34 = vmul.f32 %v6867_v31, %v1762_v32 }
 0x5c0   : > { %v1776_v35 = vadd.f32 %v6868_v33, %v1769_v34 }
 0x5c2   : > { %v1777_v36 = vpack.c.bf16 %v1776_v35, %v1776_v35 }
 0x5c4   : > { %7760 = vmatmul.mubr.msk.bf16.vlgmr.msra.gmra.mxu0 %vm472_vm1, %v1777_v36 }
 0x5c5   : > { %7779 = vmatprep.mubr.msk.bf16.mxu0 %vm8678_vm0, %v8677_v1  ;;  %7776 = vmatpush3.bf16.msra.mxu0 %v8425_v60 }
 0x5c6   : > { %7777 = vmatprep.subr.bf16.mxu0 %v8677_v1 }
 0x5c9   : > { %7778 = vmatpush3.bf16.msra.mxu0 %v8427_v62 }
 0x5ca   : > { %7783 = vmatprep.subr.bf16.mxu0 %v8677_v1 }
 0x684   : > { %v1838_v40 = vpop.f32.mrf.mxu0 }
 0x685   : > { %v1839_v41 = vadd.f32 %v6869_v39, %v1838_v40 }
 0x686   : > { %v7761_v42 = vpop.f32.mrf.mxu0 }
 0x687   : > { %v1844_v43 = vmax.f32 %v1839_v41, 0.0 }
 0x688   : > { %v1841_v44 = vpop.f32.mrf.mxu0 }
 0x689   : > { %v1845_v45 = vpack.c.bf16 %v1844_v43, %v1844_v43 }
 0x68a   : > { %v7762_v46 = vpop.f32.mrf.mxu0 }
 0x68b   : > { %7772 = vmatmul.mubr.msk.bf16.vlgmr.msra.gmra.mxu1 %vm1885_vm5, %v1845_v45 }
 0x68c   : > { %7795 = vmatprep.mubr.msk.bf16.mxu1 %vm8678_vm0, %v8677_v1  ;;  %7792 = vmatpush3.bf16.msra.mxu1 %v8426_v61 }
 0x68d   : > { %7793 = vmatprep.subr.bf16.mxu1 %v8677_v1 }
 0x690   : > { %7794 = vmatpush3.bf16.msra.mxu1 %v8428_v63 }
 0x691   : > { %7807 = vmatprep.subr.bf16.mxu1 %v8677_v1 }
 0x74b   : > { %v1923_v48 = vpop.f32.mrf.mxu1 }
 0x74c   : > { %v1924_v49 = vadd.f32 %v6873_v47, %v1923_v48 }
 0x74d   : > { %v7773_v50 = vpop.f32.mrf.mxu1 }
 0x74e   : > { %v1929_v51 = vadd.f32 %v1924_v49, %v1776_v35 }
 0x74f   : > { %v1926_v52 = vpop.f32.mrf.mxu1 }
 0x750   : > { %v1932_v53 = vsel %vm472_vm1, %v1929_v51, 0.0 }
 0x751   : > { %1933 = vadd.xlane.f32.xlu0 %v1932_v53  ;;  %v7774_v54 = vpop.f32.mrf.mxu1 }
 0x7da   : > { %v1934_v55 = vpop.xlane.xlu0 %1933 }
 0x7db   : > { %v1935_v56 = vmul.f32 0.03125, %v1934_v55 }
 0x7dd   : > { %v1936_v57 = vsub.f32 %v1929_v51, %v1935_v56 }
 0x7df   : > { %v1937_v58 = vmul.f32 %v1936_v57, %v1936_v57 }
 0x7e1   : > { %v1938_v59 = vsel %vm472_vm1, %v1937_v58, 0.0 }
 0x7e2   : > { %1939 = vadd.xlane.f32.xlu1 %v1938_v59 }
 0x86b   : > { %v1940_v0 = vpop.xlane.xlu1 %1939 }
 0x86c   : > { %v1941_v2 = vmul.f32 0.03125, %v1940_v0 }
 0x86e   : > { %v1942_v3 = vadd.f32 1e-05, %v1941_v2 }
 0x870   : > { %8545 = vrsqrt.f32 %v1942_v3 }
 0x87d   : > { %v8546_v4 = vpop.eup %8545 }
 0x87e   : > { %v1944_v6 = vmul.f32 %v8546_v4, %v1936_v57 }
 0x880   : > { %v1951_v8 = vmul.f32 %v6879_v5, %v1944_v6 }
 0x882   : > { %v9115_v9 = vadd.f32 %v6880_v7, %v1951_v8 }
 0x884   : > { %v9125_v12 = vpack.c.bf16 %v9115_v9, %v9115_v9 }
 0x886   : > { %7780 = vmatmul.mubr.msk.bf16.vlgmr.msra.gmra.mxu0 %vm472_vm1, %v9125_v12  ;;  %7796 = vmatmul.mubr.msk.bf16.vlgmr.msra.gmra.mxu1 %vm472_vm1, %v9125_v12 }
 0x887   : > { %7784 = vmatpush3.bf16.msra.mxu0 %v8429_v10  ;;  %7808 = vmatpush3.bf16.msra.mxu1 %v8430_v11 }
 0x888   : > { %7785 = vmatprep.subr.bf16.mxu0 %v8677_v1  ;;  %7809 = vmatprep.subr.bf16.mxu1 %v8677_v1 }
 0x889   : > { %7787 = vmatprep.mubr.msk.bf16.mxu0 %vm8678_vm0, %v8677_v1  ;;  %7811 = vmatprep.mubr.msk.bf16.mxu1 %vm8678_vm0, %v8677_v1 }
 0x88b   : > { %7786 = vmatpush3.bf16.msra.mxu0 %v8431_v13  ;;  %7810 = vmatpush3.bf16.msra.mxu1 %v8432_v14 }
 0x88c   : > { %7799 = vmatprep.subr.bf16.mxu0 %v8677_v1  ;;  %7823 = vmatprep.subr.bf16.mxu1 %v8677_v1 }
 0x88e   : > { %7788 = vmatmul.mubr.msk.bf16.vlgmr.msra.gmra.mxu0 %vm472_vm1, %v9125_v12  ;;  %7812 = vmatmul.mubr.msk.bf16.vlgmr.msra.gmra.mxu1 %vm472_vm1, %v9125_v12 }
 0x88f   : > { %7800 = vmatpush3.bf16.msra.mxu0 %v8433_v15  ;;  %7824 = vmatpush3.bf16.msra.mxu1 %v8434_v16 }
 0x890   : > { %7801 = vmatprep.subr.bf16.mxu0 %v8677_v1  ;;  %7825 = vmatprep.subr.bf16.mxu1 %v8677_v1 }
 0x891   : > { %7803 = vmatprep.mubr.msk.bf16.mxu0 %vm8678_vm0, %v8677_v1  ;;  %7827 = vmatprep.mubr.msk.bf16.mxu1 %vm8678_vm0, %v8677_v1 }
 0x893   : > { %7802 = vmatpush3.bf16.msra.mxu0 %v8435_v17  ;;  %7826 = vmatpush3.bf16.msra.mxu1 %v8436_v18 }
 0x894   : > { %7815 = vmatprep.subr.bf16.mxu0 %v8677_v1  ;;  %7839 = vmatprep.subr.bf16.mxu1 %v8677_v1 }
 0x896   : > { %7804 = vmatmul.mubr.msk.bf16.vlgmr.msra.gmra.mxu0 %vm472_vm1, %v9125_v12  ;;  %7828 = vmatmul.mubr.msk.bf16.vlgmr.msra.gmra.mxu1 %vm472_vm1, %v9125_v12 }
 0x897   : > { %7816 = vmatpush3.bf16.msra.mxu0 %v8437_v20  ;;  %7840 = vmatpush3.bf16.msra.mxu1 %v8438_v21 }
 0x898   : > { %7817 = vmatprep.subr.bf16.mxu0 %v8677_v1  ;;  %7841 = vmatprep.subr.bf16.mxu1 %v8677_v1 }
 0x899   : > { %7819 = vmatprep.mubr.msk.bf16.mxu0 %vm8678_vm0, %v8677_v1  ;;  %7843 = vmatprep.mubr.msk.bf16.mxu1 %vm8678_vm0, %v8677_v1 }
 0x89b   : > { %7818 = vmatpush3.bf16.msra.mxu0 %v8439_v22  ;;  %7842 = vmatpush3.bf16.msra.mxu1 %v8440_v24 }
 0x89c   : > { %7831 = vmatprep.subr.bf16.mxu0 %v8677_v1  ;;  %7855 = vmatprep.subr.bf16.mxu1 %v8677_v1 }
 0x89e   : > { %7820 = vmatmul.mubr.msk.bf16.vlgmr.msra.gmra.mxu0 %vm472_vm1, %v9125_v12  ;;  %7844 = vmatmul.mubr.msk.bf16.vlgmr.msra.gmra.mxu1 %vm472_vm1, %v9125_v12 }
 0x89f   : > { %7832 = vmatpush3.bf16.msra.mxu0 %v8441_v19  ;;  %7856 = vmatpush3.bf16.msra.mxu1 %v8442_v25 }
 0x8a0   : > { %7833 = vmatprep.subr.bf16.mxu0 %v8677_v1  ;;  %7857 = vmatprep.subr.bf16.mxu1 %v8677_v1 }
 0x8a1   : > { %7835 = vmatprep.mubr.msk.bf16.mxu0 %vm8678_vm0, %v8677_v1  ;;  %7859 = vmatprep.mubr.msk.bf16.mxu1 %vm8678_vm0, %v8677_v1 }
 0x8a3   : > { %7834 = vmatpush3.bf16.msra.mxu0 %v8443_v23  ;;  %7858 = vmatpush3.bf16.msra.mxu1 %v8444_v26 }
 0x8a4   : > { %7847 = vmatprep.subr.bf16.mxu0 %v8677_v1  ;;  %7871 = vmatprep.subr.bf16.mxu1 %v8677_v1 }
 0x8a6   : > { %7836 = vmatmul.mubr.msk.bf16.vlgmr.msra.gmra.mxu0 %vm472_vm1, %v9125_v12  ;;  %7860 = vmatmul.mubr.msk.bf16.vlgmr.msra.gmra.mxu1 %vm472_vm1, %v9125_v12 }
 0x8a7   : > { %7848 = vmatpush3.bf16.msra.mxu0 %v8445_v27  ;;  %7851 = vmatprep.mubr.msk.bf16.mxu0 %vm8678_vm0, %v8677_v1 }
 0x8a8   : > { %7849 = vmatprep.subr.bf16.mxu0 %v8677_v1  ;;  %7873 = vmatprep.mubr.msk.bf16.mxu1 %vm8678_vm0, %v8677_v1 }
 0x8ab   : > { %7850 = vmatpush3.bf16.msra.mxu0 %v8446_v28 }
 0x8ac   : > { %7863 = vmatprep.subr.bf16.mxu0 %v8677_v1 }
 0x8ae   : > { %7852 = vmatmul.mubr.msk.bf16.vlgmr.msra.gmra.mxu0 %vm472_vm1, %v9125_v12 }
 0x8af   : > { %7864 = vmatpush3.bf16.msra.mxu0 %v8447_v29  ;;  %7867 = vmatprep.mubr.msk.bf16.mxu0 %vm8678_vm0, %v8677_v1 }
 0x8b0   : > { %7865 = vmatprep.subr.bf16.mxu0 %v8677_v1 }
 0x8b3   : > { %7866 = vmatpush3.bf16.msra.mxu0 %v8448_v30 }
 0x8b4   : > { %7877 = vmatprep.subr.bf16.mxu0 %v8677_v1 }
 0x8b6   : > { %7868 = vmatmul.mubr.msk.bf16.vlgmr.msra.gmra.mxu0 %vm472_vm1, %v9125_v12 }
 0x8b7   : > { %7879 = vmatprep.mubr.msk.bf16.mxu0 %vm8678_vm0, %v8677_v1 }
 0x946   : > { %v2058_v31 = vpop.f32.mrf.mxu0  ;;  %v2162_v32 = vpop.f32.mrf.mxu1 }
 0x947   : > { %v2636_v51 = vpack.c.bf16 %v2058_v31, %v2058_v31  ;;  %v2638_v62 = vpack.c.bf16 %v2162_v32, %v2162_v32 }
 0x948   : > { %v7781_v33 = vpop.f32.mrf.mxu0  ;;  %v7797_v34 = vpop.f32.mrf.mxu1 }
 0x94a   : > { %v2061_v35 = vpop.f32.mrf.mxu0  ;;  %v2165_v36 = vpop.f32.mrf.mxu1 }
 0x94c   : > { %v7782_v37 = vpop.f32.mrf.mxu0  ;;  %v7798_v38 = vpop.f32.mrf.mxu1 }
 0x94e   : > { %v2110_v39 = vpop.f32.mrf.mxu0  ;;  %v2266_v40 = vpop.f32.mrf.mxu1 }
 0x94f   : > { %v2640_v41 = vpack.c.bf16 %v2266_v40, %v2266_v40  ;;  %v2637_v13 = vpack.c.bf16 %v2110_v39, %v2110_v39 }
 0x950   : > { %v7789_v42 = vpop.f32.mrf.mxu0  ;;  %v7813_v43 = vpop.f32.mrf.mxu1 }
 0x951   : > { %v2648_v44 = vsel %vm1096_vm2, %v2640_v41, 0 }
 0x952   : > { %v2113_v45 = vpop.f32.mrf.mxu0  ;;  %v2269_v46 = vpop.f32.mrf.mxu1  ;;  %7872 = vmatpush3.bf16.xpose.msra.mxu1 %v2648_v44 }
 0x953   : > { %7883 = vmatprep.subr.bf16.mxu1 %v8677_v1 }
 0x954   : > { %v7790_v47 = vpop.f32.mrf.mxu0  ;;  %v7814_v48 = vpop.f32.mrf.mxu1 }
 0x956   : > { %v2214_v49 = vpop.f32.mrf.mxu0  ;;  %v2370_v50 = vpop.f32.mrf.mxu1 }
 0x957   : > { %v2642_v52 = vpack.c.bf16 %v2370_v50, %v2370_v50  ;;  %v2639_v19 = vpack.c.bf16 %v2214_v49, %v2214_v49 }
 0x958   : > { %v7805_v53 = vpop.f32.mrf.mxu0  ;;  %v7829_v54 = vpop.f32.mrf.mxu1 }
 0x959   : > { %v2740_v55 = vsel %vm1096_vm2, %v2642_v52, 0  ;;  %7874 = vmatmul.mubr.msk.bf16.vlgmr.msra.gmra.mxu1 %vm1096_vm2, %v2636_v51 }
 0x95a   : > { %v2217_v56 = vpop.f32.mrf.mxu0  ;;  %v2373_v57 = vpop.f32.mrf.mxu1  ;;  %7884 = vmatpush3.bf16.xpose.msra.mxu1 %v2740_v55  ;;  %7885 = vmatprep.mubr.msk.bf16.mxu1 %vm8678_vm0, %v8677_v1 }
 0x95b   : > { %7895 = vmatprep.subr.bf16.mxu1 %v8677_v1 }
 0x95c   : > { %v7806_v58 = vpop.f32.mrf.mxu0  ;;  %v7830_v59 = vpop.f32.mrf.mxu1 }
 0x95e   : > { %v2318_v60 = vpop.f32.mrf.mxu0  ;;  %v2474_v61 = vpop.f32.mrf.mxu1 }
 0x95f   : > { %v2641_v63 = vpack.c.bf16 %v2318_v60, %v2318_v60  ;;  %v2880_v0 = vpack.c.bf16 %v2474_v61, %v2474_v61 }
 0x960   : > { %v7821_v2 = vpop.f32.mrf.mxu0  ;;  %v7845_v3 = vpop.f32.mrf.mxu1 }
 0x961   : > { %v2694_v4 = vsel %vm1096_vm2, %v2641_v63, 0  ;;  %v2888_v5 = vsel %vm1341_vm3, %v2880_v0, 0  ;;  %7886 = vmatmul.mubr.msk.bf16.vlgmr.msra.gmra.mxu1 %vm1096_vm2, %v2638_v62 }
 0x962   : > { %v2321_v6 = vpop.f32.mrf.mxu0  ;;  %v2477_v7 = vpop.f32.mrf.mxu1  ;;  %7878 = vmatpush3.bf16.xpose.msra.mxu0 %v2694_v4  ;;  %7896 = vmatpush3.bf16.msra.mxu1 %v2888_v5 }
 0x963   : > { %7889 = vmatprep.subr.bf16.mxu0 %v8677_v1  ;;  %7897 = vmatprep.mubr.msk.bf16.mxu1 %vm8678_vm0, %v8677_v1 }
 0x964   : > { %v7822_v8 = vpop.f32.mrf.mxu0  ;;  %v7846_v10 = vpop.f32.mrf.mxu1  ;;  %7907 = vmatprep.subr.bf16.mxu1 %v8677_v1 }
 0x966   : > { %v2422_v11 = vpop.f32.mrf.mxu0  ;;  %v9263_v12 = vpop.f32.mrf.mxu1 }
 0x967   : > { %v2643_v14 = vpack.c.bf16 %v2422_v11, %v2422_v11 }
 0x968   : > { %v7837_v15 = vpop.f32.mrf.mxu0  ;;  %v7861_v16 = vpop.f32.mrf.mxu1 }
 0x969   : > { %v2786_v17 = vsel %vm1096_vm2, %v2643_v14, 0  ;;  %7880 = vmatmul.mubr.msk.bf16.vlgmr.msra.gmra.mxu0 %vm1096_vm2, %v2637_v13 }
 0x96a   : > { %v2425_v18 = vpop.f32.mrf.mxu0  ;;  %v2581_v20 = vpop.f32.mrf.mxu1  ;;  %7890 = vmatpush3.bf16.xpose.msra.mxu0 %v2786_v17  ;;  %7891 = vmatprep.mubr.msk.bf16.mxu0 %vm8678_vm0, %v8677_v1 }
 0x96b   : > { %7901 = vmatprep.subr.bf16.mxu0 %v8677_v1  ;;  %v2882_v20 = vpack.c.bf16 %v9263_v12, %v9263_v12 }
 0x96c   : > { %v7838_v21 = vpop.f32.mrf.mxu0  ;;  %v7862_v22 = vpop.f32.mrf.mxu1 }
 0x96e   : > { %v2526_v24 = vpop.f32.mrf.mxu0 }
 0x96f   : > { %v2881_v25 = vpack.c.bf16 %v2526_v24, %v2526_v24 }
 0x970   : > { %v7853_v23 = vpop.f32.mrf.mxu0 }
 0x971   : > { %v2934_v26 = vsel %vm1341_vm3, %v2881_v25, 0  ;;  %7892 = vmatmul.mubr.msk.bf16.vlgmr.msra.gmra.mxu0 %vm1096_vm2, %v2639_v19  ;;  %v2980_v19 = vsel %vm1341_vm3, %v2882_v20, 0 }
 0x972   : > { %v2529_v27 = vpop.f32.mrf.mxu0  ;;  %7902 = vmatpush3.bf16.msra.mxu0 %v2934_v26  ;;  %7903 = vmatprep.mubr.msk.bf16.mxu0 %vm8678_vm0, %v8677_v1 }
 0x973   : > { %7913 = vmatprep.subr.bf16.mxu0 %v8677_v1 }
 0x974   : > { %v7854_v28 = vpop.f32.mrf.mxu0 }
 0x976   : > { %v9275_v29 = vpop.f32.mrf.mxu0 }
 0x977   : > { %v2883_v28 = vpack.c.bf16 %v9275_v29, %v9275_v29  ;;  %v8449_v29 = vld [vmem:[%s10024_s2 + $0x20] sm:$0xff]  }
 0x978   : > { %v7869_v30 = vpop.f32.mrf.mxu0 }
 0x97a   : > { %v2633_v31 = vpop.f32.mrf.mxu0 }
 0x97c   : > { %v7870_v32 = vpop.f32.mrf.mxu0 }
 0x97d   : > { %v3026_v32 = vsel %vm1341_vm3, %v2883_v28, 0 }
 0xa19   : > { %v2684_v33 = vpop.f32.mrf.mxu1 }
 0xa1a   : > { %v2828_v34 = vmul.f32 0.25, %v2684_v33 }
 0xa1b   : > { %v7875_v35 = vpop.f32.mrf.mxu1 }
 0xa1c   : > { %v2832_v36 = vsel %vm1285_vm4, %v2828_v34, -inf }
 0xa1d   : > { %2833 = vmax.xlane.f32.xlu0 %v2832_v36  ;;  %v2687_v37 = vpop.f32.mrf.mxu1  ;;  %v8451_v36 = vld [vmem:[%s10024_s2 + $0x28] sm:$0xff]  }
 0xa1f   : > { %v7876_v38 = vpop.f32.mrf.mxu1 }
 0xa20   : > { %v8450_v38 = vld [vmem:[%s10024_s2 + $0x30] sm:$0xff]  }
 0xa21   : > { %v2776_v39 = vpop.f32.mrf.mxu1 }
 0xa22   : > { %v2830_v40 = vmul.f32 0.25, %v2776_v39 }
 0xa23   : > { %v7887_v41 = vpop.f32.mrf.mxu1 }
 0xa24   : > { %v2838_v42 = vsel %vm1285_vm4, %v2830_v40, -inf }
 0xa25   : > { %2839 = vmax.xlane.f32.xlu0 %v2838_v42  ;;  %v2779_v43 = vpop.f32.mrf.mxu1 }
 0xa27   : > { %v7888_v44 = vpop.f32.mrf.mxu1 }
 0xa29   : > { %v2730_v45 = vpop.f32.mrf.mxu0 }
 0xa2a   : > { %v2829_v46 = vmul.f32 0.25, %v2730_v45 }
 0xa2b   : > { %v7881_v47 = vpop.f32.mrf.mxu0 }
 0xa2c   : > { %v2835_v48 = vsel %vm1285_vm4, %v2829_v46, -inf }
 0xa2d   : > { %2836 = vmax.xlane.f32.xlu1 %v2835_v48  ;;  %v2733_v49 = vpop.f32.mrf.mxu0 }
 0xa2e   : > { %v8452_v49 = vld [vmem:[%s10024_s2 + $0x38] sm:$0xff]  }
 0xa2f   : > { %v7882_v50 = vpop.f32.mrf.mxu0 }
 0xa31   : > { %v2822_v51 = vpop.f32.mrf.mxu0 }
 0xa32   : > { %v2831_v52 = vmul.f32 0.25, %v2822_v51 }
 0xa33   : > { %v7893_v53 = vpop.f32.mrf.mxu0 }
 0xa34   : > { %v2841_v54 = vsel %vm1285_vm4, %v2831_v52, -inf }
 0xa35   : > { %2842 = vmax.xlane.f32.xlu1 %v2841_v54  ;;  %v2825_v55 = vpop.f32.mrf.mxu0 }
 0xa37   : > { %v7894_v56 = vpop.f32.mrf.mxu0 }
 0xaa6   : > { %v2834_v57 = vpop.xlane.xlu0 %2833 }
 0xaa7   : > { %v2844_v58 = vsub.f32 %v2828_v34, %v2834_v57 }
 0xaa9   : > { %v2848_v59 = vmul.f32 1.442695, %v2844_v58 }
 0xaab   : > { %8547 = vpow2.f32 %v2848_v59 }
 0xaae   : > { %v2840_v60 = vpop.xlane.xlu0 %2839 }
 0xaaf   : > { %v2846_v61 = vsub.f32 %v2830_v40, %v2840_v60 }
 0xab1   : > { %v2852_v62 = vmul.f32 1.442695, %v2846_v61 }
 0xab3   : > { %8549 = vpow2.f32 %v2852_v62 }
 0xab6   : > { %v2837_v63 = vpop.xlane.xlu1 %2836 }
 0xab7   : > { %v2845_v0 = vsub.f32 %v2829_v46, %v2837_v63 }
 0xab8   : > { %v8548_v2 = vpop.eup %8547 }
 0xab9   : > { %v2850_v3 = vmul.f32 1.442695, %v2845_v0  ;;  %v2856_v4 = vsel %vm1285_vm4, %v8548_v2, 0.0 }
 0xaba   : > { %2857 = vadd.xlane.f32.xlu0 %v2856_v4 }
 0xabb   : > { %8551 = vpow2.f32 %v2850_v3 }
 0xabe   : > { %v2843_v5 = vpop.xlane.xlu1 %2842 }
 0xabf   : > { %v2847_v6 = vsub.f32 %v2831_v52, %v2843_v5 }
 0xac0   : > { %v8550_v7 = vpop.eup %8549 }
 0xac1   : > { %v2854_v8 = vmul.f32 1.442695, %v2847_v6  ;;  %v2862_v10 = vsel %vm1285_vm4, %v8550_v7, 0.0 }
 0xac2   : > { %2863 = vadd.xlane.f32.xlu0 %v2862_v10 }
 0xac3   : > { %8553 = vpow2.f32 %v2854_v8 }
 0xac8   : > { %v8552_v11 = vpop.eup %8551 }
 0xac9   : > { %v2859_v13 = vsel %vm1285_vm4, %v8552_v11, 0.0 }
 0xaca   : > { %2860 = vadd.xlane.f32.xlu1 %v2859_v13 }
 0xad0   : > { %v8554_v14 = vpop.eup %8553 }
 0xad1   : > { %v2865_v15 = vsel %vm1285_vm4, %v8554_v14, 0.0 }
 0xad2   : > { %2866 = vadd.xlane.f32.xlu1 %v2865_v15 }
 0xb43   : > { %v2858_v16 = vpop.xlane.xlu0 %2857 }
 0xb44   : > { %8555 = vrcp.f32 %v2858_v16 }
 0xb4b   : > { %v2864_v17 = vpop.xlane.xlu0 %2863 }
 0xb4c   : > { %8557 = vrcp.f32 %v2864_v17  ;;  %v6990_v17 = vld [vmem:[%s10025_s3 + $0x1] ss:$0 sm:$0xff] }
 0xb51   : > { %v8556_v18 = vpop.eup %8555 }
 0xb52   : > { %v2872_v21 = vmul.f32 %v8556_v18, %v8548_v2 }
 0xb53   : > { %v2861_v22 = vpop.xlane.xlu1 %2860 }
 0xb54   : > { %8559 = vrcp.f32 %v2861_v22  ;;  %v2876_v24 = vpack.c.bf16 %v2872_v21, %v2872_v21 }
 0xb56   : > { %7898 = vmatmul.mubr.msk.bf16.vlgmr.msra.gmra.mxu1 %vm1285_vm4, %v2876_v24 }
 0xb57   : > { %7908 = vmatpush3.bf16.msra.mxu1 %v2980_v19  ;;  %7909 = vmatprep.mubr.msk.bf16.mxu1 %vm8678_vm0, %v8677_v1 }
 0xb58   : > { %7919 = vmatprep.subr.bf16.mxu1 %v8677_v1 }
 0xb59   : > { %v8558_v25 = vpop.eup %8557 }
 0xb5a   : > { %v2874_v23 = vmul.f32 %v8558_v25, %v8550_v7 }
 0xb5b   : > { %v2867_v26 = vpop.xlane.xlu1 %2866 }
 0xb5c   : > { %8561 = vrcp.f32 %v2867_v26  ;;  %v2878_v27 = vpack.c.bf16 %v2874_v23, %v2874_v23 }
 0xb5e   : > { %7910 = vmatmul.mubr.msk.bf16.vlgmr.msra.gmra.mxu1 %vm1285_vm4, %v2878_v27 }
 0xb5f   : > { %7921 = vmatprep.mubr.msk.bf16.mxu1 %vm8678_vm0, %v8677_v1  ;;  %7920 = vmatpush3.bf16.msra.mxu1 %v8449_v29 }
 0xb60   : > { %7931 = vmatprep.subr.bf16.mxu1 %v8677_v1 }
 0xb61   : > { %v8560_v12 = vpop.eup %8559 }
 0xb62   : > { %v2873_v30 = vmul.f32 %v8560_v12, %v8552_v11 }
 0xb64   : > { %v2877_v31 = vpack.c.bf16 %v2873_v30, %v2873_v30  ;;  %v8453_v30 = vld [vmem:[%s10028_s6 + $0x18] sm:$0xff]  }
 0xb66   : > { %7904 = vmatmul.mubr.msk.bf16.vlgmr.msra.gmra.mxu0 %vm1285_vm4, %v2877_v31  ;;  %v8454_v31 = vld [vmem:[%s10028_s6 + $0x10] sm:$0xff]  }
 0xb67   : > { %7914 = vmatpush3.bf16.msra.mxu0 %v3026_v32  ;;  %7915 = vmatprep.mubr.msk.bf16.mxu0 %vm8678_vm0, %v8677_v1  ;;  %v8456_v32 = vld [vmem:[%s10030_s8 + $0x30] sm:$0xff]  }
 0xb68   : > { %7925 = vmatprep.subr.bf16.mxu0 %v8677_v1 }
 0xb69   : > { %v8562_v33 = vpop.eup %8561 }
 0xb6a   : > { %v2875_v34 = vmul.f32 %v8562_v33, %v8554_v14 }
 0xb6c   : > { %v2879_v35 = vpack.c.bf16 %v2875_v34, %v2875_v34 }
 0xb6e   : > { %7916 = vmatmul.mubr.msk.bf16.vlgmr.msra.gmra.mxu0 %vm1285_vm4, %v2879_v35 }
 0xb6f   : > { %7927 = vmatprep.mubr.msk.bf16.mxu0 %vm8678_vm0, %v8677_v1  ;;  %7926 = vmatpush3.bf16.msra.mxu0 %v8451_v36  ;;  %v6993_v36 = vld [vmem:[%s10026_s4 + $0x1] ss:$0 sm:$0xff] }
 0xb70   : > { %7937 = vmatprep.subr.bf16.mxu0 %v8677_v1 }
 0xc16   : > { %v2924_v37 = vpop.f32.mrf.mxu1 }
 0xc17   : > { %v3068_v39 = vpack.c.bf16 %v2924_v37, %v2924_v37 }
 0xc18   : > { %v7899_v40 = vpop.f32.mrf.mxu1 }
 0xc19   : > { %7922 = vmatmul.mubr.msk.bf16.vlgmr.msra.gmra.mxu1 %vm1096_vm2, %v3068_v39 }
 0xc1a   : > { %v2927_v41 = vpop.f32.mrf.mxu1  ;;  %7932 = vmatpush3.bf16.msra.mxu1 %v8450_v38  ;;  %7933 = vmatprep.mubr.msk.bf16.mxu1 %vm8678_vm0, %v8677_v1  ;;  %v6994_v38 = vld [vmem:[%s10027_s5 + $0x1] ss:$0 sm:$0xff] }
 0xc1b   : > { %7943 = vmatprep.subr.bf16.mxu1 %v8677_v1 }
 0xc1c   : > { %v7900_v42 = vpop.f32.mrf.mxu1 }
 0xc1d   : > { %v8457_v42 = vld [vmem:[%s10030_s8 + $0x28] sm:$0xff]  }
 0xc1e   : > { %v3016_v43 = vpop.f32.mrf.mxu1 }
 0xc1f   : > { %v3070_v44 = vpack.c.bf16 %v3016_v43, %v3016_v43  ;;  %v8458_v43 = vld [vmem:[%s10030_s8 + $0x20] sm:$0xff]  }
 0xc20   : > { %v7911_v45 = vpop.f32.mrf.mxu1 }
 0xc21   : > { %7934 = vmatmul.mubr.msk.bf16.vlgmr.msra.gmra.mxu1 %vm1096_vm2, %v3070_v44  ;;  %v7000_v44 = vld [vmem:[%s10029_s7 + $0x1] ss:$0 sm:$0xff] }
 0xc22   : > { %v3019_v46 = vpop.f32.mrf.mxu1  ;;  %7947 = vmatprep.mubr.msk.bf16.mxu1 %vm8678_vm0, %v8677_v1  ;;  %7944 = vmatpush3.bf16.msra.mxu1 %v8453_v30  ;;  %v8475_v30 = vld [vmem:[%s10039_s1 + $0x1f8] sm:$0xff]  }
 0xc23   : > { %7945 = vmatprep.subr.bf16.mxu1 %v8677_v1 }
 0xc24   : > { %v7912_v47 = vpop.f32.mrf.mxu1 }
 0xc26   : > { %v2970_v48 = vpop.f32.mrf.mxu0  ;;  %7946 = vmatpush3.bf16.msra.mxu1 %v8454_v31  ;;  %v8476_v31 = vld [vmem:[%s10039_s1 + $0x228] sm:$0xff]  }
 0xc27   : > { %v3069_v50 = vpack.c.bf16 %v2970_v48, %v2970_v48  ;;  %7963 = vmatprep.subr.bf16.mxu1 %v8677_v1 }
 0xc28   : > { %v7905_v51 = vpop.f32.mrf.mxu0 }
 0xc29   : > { %7928 = vmatmul.mubr.msk.bf16.vlgmr.msra.gmra.mxu0 %vm1096_vm2, %v3069_v50 }
 0xc2a   : > { %v2973_v52 = vpop.f32.mrf.mxu0  ;;  %7938 = vmatpush3.bf16.msra.mxu0 %v8452_v49  ;;  %7939 = vmatprep.mubr.msk.bf16.mxu0 %vm8678_vm0, %v8677_v1 }
 0xc2b   : > { %7951 = vmatprep.subr.bf16.mxu0 %v8677_v1  ;;  %v7013_v52 = vld [vmem:[%s10031_s9 + $0x1] ss:$0 sm:$0xff] }
 0xc2c   : > { %v7906_v53 = vpop.f32.mrf.mxu0 }
 0xc2e   : > { %v3062_v54 = vpop.f32.mrf.mxu0 }
 0xc2f   : > { %v3071_v55 = vpack.c.bf16 %v3062_v54, %v3062_v54 }
 0xc30   : > { %v7917_v56 = vpop.f32.mrf.mxu0 }
 0xc31   : > { %7940 = vmatmul.mubr.msk.bf16.vlgmr.msra.gmra.mxu0 %vm1096_vm2, %v3071_v55 }
 0xc32   : > { %v3065_v57 = vpop.f32.mrf.mxu0  ;;  %7959 = vmatprep.mubr.msk.bf16.mxu0 %vm8678_vm0, %v8677_v1 }
 0xc34   : > { %v7918_v58 = vpop.f32.mrf.mxu0 }
 0xcd9   : > { %v3124_v59 = vpop.f32.mrf.mxu1 }
 0xcda   : > { %v3277_v7 = vsel %vm472_vm1, %v3124_v59, 0.0 }
 0xcdb   : > { %v7923_v60 = vpop.f32.mrf.mxu1 }
 0xcdd   : > { %v3127_v61 = vpop.f32.mrf.mxu1 }
 0xcdf   : > { %v7924_v62 = vpop.f32.mrf.mxu1 }
 0xce1   : > { %v3222_v63 = vpop.f32.mrf.mxu1 }
 0xce2   : > { %v3280_v13 = vsel %vm472_vm1, %v3222_v63, 0.0 }
 0xce3   : > { %v7935_v0 = vpop.f32.mrf.mxu1 }
 0xce5   : > { %v3225_v2 = vpop.f32.mrf.mxu1 }
 0xce6   : > { %v8459_v2 = vld [vmem:[%s10039_s1 + $0x188] sm:$0xff]  }
 0xce7   : > { %v7936_v3 = vpop.f32.mrf.mxu1 }
 0xce8   : > { %v8460_v3 = vld [vmem:[%s10039_s1 + $0x1a8] sm:$0xff]  }
 0xce9   : > { %v3173_v4 = vpop.f32.mrf.mxu0 }
 0xcea   : > { %v3278_v5 = vsel %vm472_vm1, %v3173_v4, 0.0  ;;  %v8461_v4 = vld [vmem:[%s10039_s1 + $0x180] sm:$0xff]  }
 0xceb   : > { %v7929_v6 = vpop.f32.mrf.mxu0  ;;  %v3279_v8 = vadd.f32 %v3278_v5, %v3277_v7  ;;  %v8462_v5 = vld [vmem:[%s10039_s1 + $0x1a0] sm:$0xff]  }
 0xced   : > { %v3176_v10 = vpop.f32.mrf.mxu0  ;;  %v3281_v15 = vadd.f32 %v3280_v13, %v3279_v8 }
 0xcef   : > { %v7930_v11 = vpop.f32.mrf.mxu0 }
 0xcf0   : > { %v7021_v11 = vld [vmem:[%s10032_s10 + $0x1] ss:$0 sm:$0xff] }
 0xcf1   : > { %v3271_v14 = vpop.f32.mrf.mxu0 }
 0xcf2   : > { %v3282_v16 = vsel %vm472_vm1, %v3271_v14, 0.0  ;;  %v7022_v14 = vld [vmem:[%s10033_s11 + $0x1] ss:$0 sm:$0xff] }
 0xcf3   : > { %v3283_v18 = vadd.f32 %v3282_v16, %v3281_v15  ;;  %v7941_v20 = vpop.f32.mrf.mxu0 }
 0xcf5   : > { %v3292_v21 = vadd.f32 %v6990_v17, %v3283_v18  ;;  %v3274_v22 = vpop.f32.mrf.mxu0  ;;  %v8463_v17 = vld [vmem:[%s10039_s1 + $0x198] sm:$0xff]   ;;  %v8464_v18 = vld [vmem:[%s10039_s1 + $0x1c8] sm:$0xff]  }
 0xcf6   : > { %v8466_v22 = vld [vmem:[%s10039_s1 + $0x1c0] sm:$0xff]  }
 0xcf7   : > { %v7942_v24 = vpop.f32.mrf.mxu0  ;;  %v3293_v19 = vadd.f32 %v3292_v21, %v9115_v9  ;;  %v8455_v9 = vld [vmem:[%s10030_s8 + $0x38] sm:$0xff]   ;;  %v8465_v21 = vld [vmem:[%s10039_s1 + $0x190] sm:$0xff]  }
 0xcf8   : > { %7952 = vmatpush3.bf16.msra.mxu0 %v8455_v9  ;;  %v8467_v24 = vld [vmem:[%s10039_s1 + $0x1b8] sm:$0xff]   ;;  %v8477_v9 = vld [vmem:[%s10039_s1 + $0x1f0] sm:$0xff]  }
 0xcf9   : > { %v3298_v25 = vsel %vm472_vm1, %v3293_v19, 0.0  ;;  %7953 = vmatprep.subr.bf16.mxu0 %v8677_v1 }
 0xcfa   : > { %3299 = vadd.xlane.f32.xlu0 %v3298_v25  ;;  %v8469_v25 = vld [vmem:[%s10039_s1 + $0x1b0] sm:$0xff]  }
 0xcfc   : > { %7954 = vmatpush3.bf16.msra.mxu0 %v8456_v32  ;;  %v8478_v32 = vld [vmem:[%s10039_s1 + $0x220] sm:$0xff]  }
 0xcfd   : > { %7955 = vmatprep.subr.bf16.mxu0 %v8677_v1 }
 0xd00   : > { %7956 = vmatpush3.bf16.msra.mxu0 %v8457_v42 }
 0xd01   : > { %7957 = vmatprep.subr.bf16.mxu0 %v8677_v1 }
 0xd04   : > { %7958 = vmatpush3.bf16.msra.mxu0 %v8458_v43 }
 0xd05   : > { %7979 = vmatprep.subr.bf16.mxu0 %v8677_v1 }
 0xd83   : > { %v3300_v23 = vpop.xlane.xlu0 %3299 }
 0xd84   : > { %v3301_v26 = vmul.f32 0.03125, %v3300_v23  ;;  %v8470_v23 = vld [vmem:[%s10039_s1 + $0x1e0] sm:$0xff]  }
 0xd86   : > { %v3302_v27 = vsub.f32 %v3293_v19, %v3301_v26  ;;  %v8468_v19 = vld [vmem:[%s10039_s1 + $0x1e8] sm:$0xff]   ;;  %v8471_v26 = vld [vmem:[%s10039_s1 + $0x1d8] sm:$0xff]  }
 0xd88   : > { %v3303_v12 = vmul.f32 %v3302_v27, %v3302_v27 }
 0xd8a   : > { %v3304_v28 = vsel %vm472_vm1, %v3303_v12, 0.0  ;;  %v8473_v12 = vld [vmem:[%s10039_s1 + $0x1d0] sm:$0xff]  }
 0xd8b   : > { %3305 = vadd.xlane.f32.xlu1 %v3304_v28  ;;  %v8474_v28 = vld [vmem:[%s10039_s1 + $0x200] sm:$0xff]  }
 0xe14   : > { %v3306_v33 = vpop.xlane.xlu1 %3305 }
 0xe15   : > { %v3307_v34 = vmul.f32 0.03125, %v3306_v33  ;;  %v8479_v33 = vld [vmem:[%s10039_s1 + $0x218] sm:$0xff]  }
 0xe17   : > { %v3308_v35 = vadd.f32 1e-05, %v3307_v34  ;;  %v8480_v34 = vld [vmem:[%s10039_s1 + $0x210] sm:$0xff]  }
 0xe19   : > { %8563 = vrsqrt.f32 %v3308_v35  ;;  %v8481_v35 = vld [vmem:[%s10039_s1 + $0x238] sm:$0xff]  }
 0xe26   : > { %v8564_v29 = vpop.eup %8563 }
 0xe27   : > { %v3310_v37 = vmul.f32 %v8564_v29, %v3302_v27  ;;  %v8472_v27 = vld [vmem:[%s10039_s1 + $0x208] sm:$0xff]   ;;  %v8482_v29 = vld [vmem:[%s10039_s1 + $0x230] sm:$0xff]  }
 0xe29   : > { %v3317_v39 = vmul.f32 %v6993_v36, %v3310_v37 }
 0xe2b   : > { %v3324_v40 = vadd.f32 %v6994_v38, %v3317_v39 }
 0xe2d   : > { %v3325_v41 = vpack.c.bf16 %v3324_v40, %v3324_v40 }
 0xe2f   : > { %7948 = vmatmul.mubr.msk.bf16.vlgmr.msra.gmra.mxu1 %vm472_vm1, %v3325_v41 }
 0xe30   : > { %7967 = vmatprep.mubr.msk.bf16.mxu1 %vm8678_vm0, %v8677_v1  ;;  %7964 = vmatpush3.bf16.msra.mxu1 %v8459_v2 }
 0xe31   : > { %7965 = vmatprep.subr.bf16.mxu1 %v8677_v1 }
 0xe34   : > { %7966 = vmatpush3.bf16.msra.mxu1 %v8461_v4 }
 0xe35   : > { %7971 = vmatprep.subr.bf16.mxu1 %v8677_v1 }
 0xeef   : > { %v3388_v45 = vpop.f32.mrf.mxu1 }
 0xef0   : > { %v3389_v46 = vadd.f32 %v7000_v44, %v3388_v45 }
 0xef1   : > { %v7949_v47 = vpop.f32.mrf.mxu1 }
 0xef2   : > { %v3394_v48 = vmax.f32 %v3389_v46, 0.0 }
 0xef3   : > { %v3391_v49 = vpop.f32.mrf.mxu1 }
 0xef4   : > { %v3395_v50 = vpack.c.bf16 %v3394_v48, %v3394_v48 }
 0xef5   : > { %v7950_v51 = vpop.f32.mrf.mxu1 }
 0xef6   : > { %7960 = vmatmul.mubr.msk.bf16.vlgmr.msra.gmra.mxu0 %vm1885_vm5, %v3395_v50 }
 0xef7   : > { %7983 = vmatprep.mubr.msk.bf16.mxu0 %vm8678_vm0, %v8677_v1  ;;  %7980 = vmatpush3.bf16.msra.mxu0 %v8460_v3 }
 0xef8   : > { %7981 = vmatprep.subr.bf16.mxu0 %v8677_v1 }
 0xefb   : > { %7982 = vmatpush3.bf16.msra.mxu0 %v8462_v5 }
 0xefc   : > { %7995 = vmatprep.subr.bf16.mxu0 %v8677_v1 }
 0xfb6   : > { %v3474_v53 = vpop.f32.mrf.mxu0 }
 0xfb7   : > { %v3475_v54 = vadd.f32 %v7013_v52, %v3474_v53 }
 0xfb8   : > { %v7961_v55 = vpop.f32.mrf.mxu0 }
 0xfb9   : > { %v3480_v56 = vadd.f32 %v3475_v54, %v3324_v40 }
 0xfba   : > { %v3477_v57 = vpop.f32.mrf.mxu0 }
 0xfbb   : > { %v3485_v58 = vsel %vm472_vm1, %v3480_v56, 0.0 }
 0xfbc   : > { %3486 = vadd.xlane.f32.xlu0 %v3485_v58  ;;  %v7962_v59 = vpop.f32.mrf.mxu0 }
0x1045   : > { %v3487_v60 = vpop.xlane.xlu0 %3486 }
0x1046   : > { %v3488_v61 = vmul.f32 0.03125, %v3487_v60 }
0x1048   : > { %v3489_v62 = vsub.f32 %v3480_v56, %v3488_v61 }
0x104a   : > { %v3490_v63 = vmul.f32 %v3489_v62, %v3489_v62 }
0x104c   : > { %v3491_v0 = vsel %vm472_vm1, %v3490_v63, 0.0 }
0x104d   : > { %3492 = vadd.xlane.f32.xlu1 %v3491_v0 }
0x10d6   : > { %v3493_v6 = vpop.xlane.xlu1 %3492 }
0x10d7   : > { %v3494_v7 = vmul.f32 0.03125, %v3493_v6 }
0x10d9   : > { %v3495_v8 = vadd.f32 1e-05, %v3494_v7 }
0x10db   : > { %8565 = vrsqrt.f32 %v3495_v8 }
0x10e8   : > { %v8566_v10 = vpop.eup %8565 }
0x10e9   : > { %v3497_v13 = vmul.f32 %v8566_v10, %v3489_v62 }
0x10eb   : > { %v3504_v15 = vmul.f32 %v7021_v11, %v3497_v13 }
0x10ed   : > { %v9409_v16 = vadd.f32 %v7022_v14, %v3504_v15 }
0x10ef   : > { %v9419_v20 = vpack.c.bf16 %v9409_v16, %v9409_v16 }
0x10f1   : > { %7968 = vmatmul.mubr.msk.bf16.vlgmr.msra.gmra.mxu1 %vm472_vm1, %v9419_v20  ;;  %7984 = vmatmul.mubr.msk.bf16.vlgmr.msra.gmra.mxu0 %vm472_vm1, %v9419_v20 }
0x10f2   : > { %7972 = vmatpush3.bf16.msra.mxu1 %v8463_v17  ;;  %7996 = vmatpush3.bf16.msra.mxu0 %v8464_v18 }
0x10f3   : > { %7973 = vmatprep.subr.bf16.mxu1 %v8677_v1  ;;  %7997 = vmatprep.subr.bf16.mxu0 %v8677_v1 }
0x10f4   : > { %7975 = vmatprep.mubr.msk.bf16.mxu1 %vm8678_vm0, %v8677_v1  ;;  %7999 = vmatprep.mubr.msk.bf16.mxu0 %vm8678_vm0, %v8677_v1 }
0x10f6   : > { %7974 = vmatpush3.bf16.msra.mxu1 %v8465_v21  ;;  %7998 = vmatpush3.bf16.msra.mxu0 %v8466_v22 }
0x10f7   : > { %7987 = vmatprep.subr.bf16.mxu1 %v8677_v1  ;;  %8011 = vmatprep.subr.bf16.mxu0 %v8677_v1 }
0x10f9   : > { %7976 = vmatmul.mubr.msk.bf16.vlgmr.msra.gmra.mxu1 %vm472_vm1, %v9419_v20  ;;  %8000 = vmatmul.mubr.msk.bf16.vlgmr.msra.gmra.mxu0 %vm472_vm1, %v9419_v20 }
0x10fa   : > { %7988 = vmatpush3.bf16.msra.mxu1 %v8467_v24  ;;  %8012 = vmatpush3.bf16.msra.mxu0 %v8468_v19 }
0x10fb   : > { %7989 = vmatprep.subr.bf16.mxu1 %v8677_v1  ;;  %8013 = vmatprep.subr.bf16.mxu0 %v8677_v1 }
0x10fc   : > { %7991 = vmatprep.mubr.msk.bf16.mxu1 %vm8678_vm0, %v8677_v1  ;;  %8015 = vmatprep.mubr.msk.bf16.mxu0 %vm8678_vm0, %v8677_v1 }
0x10fe   : > { %7990 = vmatpush3.bf16.msra.mxu1 %v8469_v25  ;;  %8014 = vmatpush3.bf16.msra.mxu0 %v8470_v23 }
0x10ff   : > { %8003 = vmatprep.subr.bf16.mxu1 %v8677_v1  ;;  %8027 = vmatprep.subr.bf16.mxu0 %v8677_v1 }
0x1101   : > { %7992 = vmatmul.mubr.msk.bf16.vlgmr.msra.gmra.mxu1 %vm472_vm1, %v9419_v20  ;;  %8016 = vmatmul.mubr.msk.bf16.vlgmr.msra.gmra.mxu0 %vm472_vm1, %v9419_v20 }
0x1102   : > { %8004 = vmatpush3.bf16.msra.mxu1 %v8471_v26  ;;  %8028 = vmatpush3.bf16.msra.mxu0 %v8472_v27 }
0x1103   : > { %8005 = vmatprep.subr.bf16.mxu1 %v8677_v1  ;;  %8029 = vmatprep.subr.bf16.mxu0 %v8677_v1 }
0x1104   : > { %8007 = vmatprep.mubr.msk.bf16.mxu1 %vm8678_vm0, %v8677_v1  ;;  %8031 = vmatprep.mubr.msk.bf16.mxu0 %vm8678_vm0, %v8677_v1 }
0x1106   : > { %8006 = vmatpush3.bf16.msra.mxu1 %v8473_v12  ;;  %8030 = vmatpush3.bf16.msra.mxu0 %v8474_v28 }
0x1107   : > { %8019 = vmatprep.subr.bf16.mxu1 %v8677_v1  ;;  %8043 = vmatprep.subr.bf16.mxu0 %v8677_v1 }
0x1109   : > { %8008 = vmatmul.mubr.msk.bf16.vlgmr.msra.gmra.mxu1 %vm472_vm1, %v9419_v20  ;;  %8032 = vmatmul.mubr.msk.bf16.vlgmr.msra.gmra.mxu0 %vm472_vm1, %v9419_v20 }
0x110a   : > { %8020 = vmatpush3.bf16.msra.mxu1 %v8475_v30  ;;  %8044 = vmatpush3.bf16.msra.mxu0 %v8476_v31 }
0x110b   : > { %8021 = vmatprep.subr.bf16.mxu1 %v8677_v1  ;;  %8045 = vmatprep.subr.bf16.mxu0 %v8677_v1 }
0x110c   : > { %8023 = vmatprep.mubr.msk.bf16.mxu1 %vm8678_vm0, %v8677_v1  ;;  %8047 = vmatprep.mubr.msk.bf16.mxu0 %vm8678_vm0, %v8677_v1 }
0x110e   : > { %8022 = vmatpush3.bf16.msra.mxu1 %v8477_v9  ;;  %8046 = vmatpush3.bf16.msra.mxu0 %v8478_v32 }
0x110f   : > { %8035 = vmatprep.subr.bf16.mxu1 %v8677_v1  ;;  %8059 = vmatprep.subr.bf16.mxu0 %v8677_v1 }
0x1111   : > { %8024 = vmatmul.mubr.msk.bf16.vlgmr.msra.gmra.mxu1 %vm472_vm1, %v9419_v20  ;;  %8048 = vmatmul.mubr.msk.bf16.vlgmr.msra.gmra.mxu0 %vm472_vm1, %v9419_v20 }
0x1112   : > { %8036 = vmatpush3.bf16.msra.mxu1 %v8479_v33  ;;  %8039 = vmatprep.mubr.msk.bf16.mxu1 %vm8678_vm0, %v8677_v1 }
0x1113   : > { %8037 = vmatprep.subr.bf16.mxu1 %v8677_v1  ;;  %8061 = vmatprep.mubr.msk.bf16.mxu0 %vm8678_vm0, %v8677_v1 }
0x1116   : > { %8038 = vmatpush3.bf16.msra.mxu1 %v8480_v34 }
0x1117   : > { %8051 = vmatprep.subr.bf16.mxu1 %v8677_v1 }
0x1119   : > { %8040 = vmatmul.mubr.msk.bf16.vlgmr.msra.gmra.mxu1 %vm472_vm1, %v9419_v20 }
0x111a   : > { %8052 = vmatpush3.bf16.msra.mxu1 %v8481_v35  ;;  %8055 = vmatprep.mubr.msk.bf16.mxu1 %vm8678_vm0, %v8677_v1 }
0x111b   : > { %8053 = vmatprep.subr.bf16.mxu1 %v8677_v1 }
0x111e   : > { %8054 = vmatpush3.bf16.msra.mxu1 %v8482_v29 }
0x111f   : > { %8065 = vmatprep.subr.bf16.mxu1 %v8677_v1 }
0x1121   : > { %8056 = vmatmul.mubr.msk.bf16.vlgmr.msra.gmra.mxu1 %vm472_vm1, %v9419_v20 }
0x1122   : > { %8067 = vmatprep.mubr.msk.bf16.mxu1 %vm8678_vm0, %v8677_v1 }
0x11b1   : > { %v3611_v36 = vpop.f32.mrf.mxu1  ;;  %v3715_v37 = vpop.f32.mrf.mxu0 }
0x11b2   : > { %v4189_v56 = vpack.c.bf16 %v3611_v36, %v3611_v36  ;;  %v4191_v4 = vpack.c.bf16 %v3715_v37, %v3715_v37 }
0x11b3   : > { %v7969_v38 = vpop.f32.mrf.mxu1  ;;  %v7985_v39 = vpop.f32.mrf.mxu0 }
0x11b5   : > { %v3614_v40 = vpop.f32.mrf.mxu1  ;;  %v3718_v41 = vpop.f32.mrf.mxu0 }
0x11b7   : > { %v7970_v42 = vpop.f32.mrf.mxu1  ;;  %v7986_v43 = vpop.f32.mrf.mxu0 }
0x11b9   : > { %v3663_v44 = vpop.f32.mrf.mxu1  ;;  %v3819_v45 = vpop.f32.mrf.mxu0 }
0x11ba   : > { %v4193_v46 = vpack.c.bf16 %v3819_v45, %v3819_v45  ;;  %v4190_v21 = vpack.c.bf16 %v3663_v44, %v3663_v44 }
0x11bb   : > { %v7977_v47 = vpop.f32.mrf.mxu1  ;;  %v8001_v48 = vpop.f32.mrf.mxu0 }
0x11bc   : > { %v4201_v49 = vsel %vm1096_vm2, %v4193_v46, 0 }
0x11bd   : > { %v3666_v50 = vpop.f32.mrf.mxu1  ;;  %v3822_v51 = vpop.f32.mrf.mxu0  ;;  %8060 = vmatpush3.bf16.xpose.msra.mxu0 %v4201_v49 }
0x11be   : > { %8071 = vmatprep.subr.bf16.mxu0 %v8677_v1 }
0x11bf   : > { %v7978_v52 = vpop.f32.mrf.mxu1  ;;  %v8002_v53 = vpop.f32.mrf.mxu0 }
0x11c1   : > { %v3767_v54 = vpop.f32.mrf.mxu1  ;;  %v3923_v55 = vpop.f32.mrf.mxu0 }
0x11c2   : > { %v4195_v57 = vpack.c.bf16 %v3923_v55, %v3923_v55  ;;  %v4192_v30 = vpack.c.bf16 %v3767_v54, %v3767_v54 }
0x11c3   : > { %v7993_v58 = vpop.f32.mrf.mxu1  ;;  %v8017_v59 = vpop.f32.mrf.mxu0 }
0x11c4   : > { %v4293_v60 = vsel %vm1096_vm2, %v4195_v57, 0  ;;  %8062 = vmatmul.mubr.msk.bf16.vlgmr.msra.gmra.mxu0 %vm1096_vm2, %v4189_v56 }
0x11c5   : > { %v3770_v61 = vpop.f32.mrf.mxu1  ;;  %v3926_v62 = vpop.f32.mrf.mxu0  ;;  %8072 = vmatpush3.bf16.xpose.msra.mxu0 %v4293_v60  ;;  %8073 = vmatprep.mubr.msk.bf16.mxu0 %vm8678_vm0, %v8677_v1 }
0x11c6   : > { %8083 = vmatprep.subr.bf16.mxu0 %v8677_v1 }
0x11c7   : > { %v7994_v63 = vpop.f32.mrf.mxu1  ;;  %v8018_v0 = vpop.f32.mrf.mxu0 }
0x11c9   : > { %v3871_v2 = vpop.f32.mrf.mxu1  ;;  %v4027_v3 = vpop.f32.mrf.mxu0 }
0x11ca   : > { %v4194_v5 = vpack.c.bf16 %v3871_v2, %v3871_v2  ;;  %v4433_v6 = vpack.c.bf16 %v4027_v3, %v4027_v3 }
0x11cb   : > { %v8009_v7 = vpop.f32.mrf.mxu1  ;;  %v8033_v8 = vpop.f32.mrf.mxu0 }
0x11cc   : > { %v4247_v10 = vsel %vm1096_vm2, %v4194_v5, 0  ;;  %v4441_v11 = vsel %vm1341_vm3, %v4433_v6, 0  ;;  %8074 = vmatmul.mubr.msk.bf16.vlgmr.msra.gmra.mxu0 %vm1096_vm2, %v4191_v4 }
0x11cd   : > { %v3874_v13 = vpop.f32.mrf.mxu1  ;;  %v4030_v14 = vpop.f32.mrf.mxu0  ;;  %8066 = vmatpush3.bf16.xpose.msra.mxu1 %v4247_v10  ;;  %8084 = vmatpush3.bf16.msra.mxu0 %v4441_v11 }
0x11ce   : > { %8077 = vmatprep.subr.bf16.mxu1 %v8677_v1  ;;  %8085 = vmatprep.mubr.msk.bf16.mxu0 %vm8678_vm0, %v8677_v1 }
0x11cf   : > { %v8010_v15 = vpop.f32.mrf.mxu1  ;;  %v8034_v17 = vpop.f32.mrf.mxu0  ;;  %8095 = vmatprep.subr.bf16.mxu0 %v8677_v1 }
0x11d1   : > { %v3975_v18 = vpop.f32.mrf.mxu1  ;;  %v9557_v20 = vpop.f32.mrf.mxu0 }
0x11d2   : > { %v4196_v22 = vpack.c.bf16 %v3975_v18, %v3975_v18 }
0x11d3   : > { %v8025_v24 = vpop.f32.mrf.mxu1  ;;  %v8049_v19 = vpop.f32.mrf.mxu0 }
0x11d4   : > { %v4339_v25 = vsel %vm1096_vm2, %v4196_v22, 0  ;;  %8068 = vmatmul.mubr.msk.bf16.vlgmr.msra.gmra.mxu1 %vm1096_vm2, %v4190_v21 }
0x11d5   : > { %v3978_v23 = vpop.f32.mrf.mxu1  ;;  %v4134_v26 = vpop.f32.mrf.mxu0  ;;  %8078 = vmatpush3.bf16.xpose.msra.mxu1 %v4339_v25  ;;  %8079 = vmatprep.mubr.msk.bf16.mxu1 %vm8678_vm0, %v8677_v1 }
0x11d6   : > { %8089 = vmatprep.subr.bf16.mxu1 %v8677_v1  ;;  %v4435_v26 = vpack.c.bf16 %v9557_v20, %v9557_v20 }
0x11d7   : > { %v8026_v27 = vpop.f32.mrf.mxu1  ;;  %v8050_v12 = vpop.f32.mrf.mxu0 }
0x11d9   : > { %v4079_v28 = vpop.f32.mrf.mxu1 }
0x11da   : > { %v4434_v31 = vpack.c.bf16 %v4079_v28, %v4079_v28 }
0x11db   : > { %v8041_v9 = vpop.f32.mrf.mxu1 }
0x11dc   : > { %v4487_v32 = vsel %vm1341_vm3, %v4434_v31, 0  ;;  %8080 = vmatmul.mubr.msk.bf16.vlgmr.msra.gmra.mxu1 %vm1096_vm2, %v4192_v30  ;;  %v4533_v30 = vsel %vm1341_vm3, %v4435_v26, 0 }
0x11dd   : > { %v4082_v33 = vpop.f32.mrf.mxu1  ;;  %8090 = vmatpush3.bf16.msra.mxu1 %v4487_v32  ;;  %8091 = vmatprep.mubr.msk.bf16.mxu1 %vm8678_vm0, %v8677_v1 }
0x11de   : > { %8101 = vmatprep.subr.bf16.mxu1 %v8677_v1 }
0x11df   : > { %v8042_v34 = vpop.f32.mrf.mxu1 }
0x11e1   : > { %v9569_v35 = vpop.f32.mrf.mxu1 }
0x11e2   : > { %v4436_v34 = vpack.c.bf16 %v9569_v35, %v9569_v35  ;;  %v8483_v35 = vld [vmem:[%s10024_s2 + $0x40] sm:$0xff]  }
0x11e3   : > { %v8057_v29 = vpop.f32.mrf.mxu1 }
0x11e5   : > { %v4186_v36 = vpop.f32.mrf.mxu1 }
0x11e7   : > { %v8058_v37 = vpop.f32.mrf.mxu1 }
0x11e8   : > { %v4579_v37 = vsel %vm1341_vm3, %v4436_v34, 0 }
0x1284   : > { %v4237_v38 = vpop.f32.mrf.mxu0 }
0x1285   : > { %v4381_v39 = vmul.f32 0.25, %v4237_v38 }
0x1286   : > { %v8063_v40 = vpop.f32.mrf.mxu0 }
0x1287   : > { %v4385_v41 = vsel %vm1285_vm4, %v4381_v39, -inf }
0x1288   : > { %4386 = vmax.xlane.f32.xlu0 %v4385_v41  ;;  %v4240_v42 = vpop.f32.mrf.mxu0  ;;  %v8485_v41 = vld [vmem:[%s10024_s2 + $0x48] sm:$0xff]  }
0x128a   : > { %v8064_v43 = vpop.f32.mrf.mxu0 }
0x128b   : > { %v8484_v43 = vld [vmem:[%s10024_s2 + $0x50] sm:$0xff]  }
0x128c   : > { %v4329_v44 = vpop.f32.mrf.mxu0 }
0x128d   : > { %v4383_v45 = vmul.f32 0.25, %v4329_v44 }
0x128e   : > { %v8075_v46 = vpop.f32.mrf.mxu0 }
0x128f   : > { %v4391_v47 = vsel %vm1285_vm4, %v4383_v45, -inf }
0x1290   : > { %4392 = vmax.xlane.f32.xlu0 %v4391_v47  ;;  %v4332_v48 = vpop.f32.mrf.mxu0 }
0x1292   : > { %v8076_v49 = vpop.f32.mrf.mxu0 }
0x1294   : > { %v4283_v50 = vpop.f32.mrf.mxu1 }
0x1295   : > { %v4382_v51 = vmul.f32 0.25, %v4283_v50 }
0x1296   : > { %v8069_v52 = vpop.f32.mrf.mxu1 }
0x1297   : > { %v4388_v53 = vsel %vm1285_vm4, %v4382_v51, -inf }
0x1298   : > { %4389 = vmax.xlane.f32.xlu1 %v4388_v53  ;;  %v4286_v54 = vpop.f32.mrf.mxu1 }
0x1299   : > { %v8486_v54 = vld [vmem:[%s10024_s2 + $0x58] sm:$0xff]  }
0x129a   : > { %v8070_v55 = vpop.f32.mrf.mxu1 }
0x129c   : > { %v4375_v56 = vpop.f32.mrf.mxu1 }
0x129d   : > { %v4384_v57 = vmul.f32 0.25, %v4375_v56 }
0x129e   : > { %v8081_v58 = vpop.f32.mrf.mxu1 }
0x129f   : > { %v4394_v59 = vsel %vm1285_vm4, %v4384_v57, -inf }
0x12a0   : > { %4395 = vmax.xlane.f32.xlu1 %v4394_v59  ;;  %v4378_v60 = vpop.f32.mrf.mxu1 }
0x12a2   : > { %v8082_v61 = vpop.f32.mrf.mxu1 }
0x1311   : > { %v4387_v62 = vpop.xlane.xlu0 %4386 }
0x1312   : > { %v4397_v63 = vsub.f32 %v4381_v39, %v4387_v62 }
0x1314   : > { %v4401_v0 = vmul.f32 1.442695, %v4397_v63 }
0x1316   : > { %8567 = vpow2.f32 %v4401_v0 }
0x1319   : > { %v4393_v2 = vpop.xlane.xlu0 %4392 }
0x131a   : > { %v4399_v3 = vsub.f32 %v4383_v45, %v4393_v2 }
0x131c   : > { %v4405_v4 = vmul.f32 1.442695, %v4399_v3 }
0x131e   : > { %8569 = vpow2.f32 %v4405_v4 }
0x1321   : > { %v4390_v5 = vpop.xlane.xlu1 %4389 }
0x1322   : > { %v4398_v6 = vsub.f32 %v4382_v51, %v4390_v5 }
0x1323   : > { %v8568_v7 = vpop.eup %8567 }
0x1324   : > { %v4403_v8 = vmul.f32 1.442695, %v4398_v6  ;;  %v4409_v10 = vsel %vm1285_vm4, %v8568_v7, 0.0 }
0x1325   : > { %4410 = vadd.xlane.f32.xlu0 %v4409_v10 }
0x1326   : > { %8571 = vpow2.f32 %v4403_v8 }
0x1329   : > { %v4396_v11 = vpop.xlane.xlu1 %4395 }
0x132a   : > { %v4400_v13 = vsub.f32 %v4384_v57, %v4396_v11 }
0x132b   : > { %v8570_v14 = vpop.eup %8569 }
0x132c   : > { %v4407_v15 = vmul.f32 1.442695, %v4400_v13  ;;  %v4415_v17 = vsel %vm1285_vm4, %v8570_v14, 0.0 }
0x132d   : > { %4416 = vadd.xlane.f32.xlu0 %v4415_v17 }
0x132e   : > { %8573 = vpow2.f32 %v4407_v15 }
0x1333   : > { %v8572_v18 = vpop.eup %8571 }
0x1334   : > { %v4412_v21 = vsel %vm1285_vm4, %v8572_v18, 0.0 }
0x1335   : > { %4413 = vadd.xlane.f32.xlu1 %v4412_v21 }
0x133b   : > { %v8574_v22 = vpop.eup %8573 }
0x133c   : > { %v4418_v24 = vsel %vm1285_vm4, %v8574_v22, 0.0 }
0x133d   : > { %4419 = vadd.xlane.f32.xlu1 %v4418_v24 }
0x13ae   : > { %v4411_v19 = vpop.xlane.xlu0 %4410 }
0x13af   : > { %8575 = vrcp.f32 %v4411_v19 }
0x13b6   : > { %v4417_v25 = vpop.xlane.xlu0 %4416 }
0x13b7   : > { %8577 = vrcp.f32 %v4417_v25  ;;  %v7132_v25 = vld [vmem:[%s10025_s3 + $0x2] ss:$0 sm:$0xff] }
0x13bc   : > { %v8576_v23 = vpop.eup %8575 }
0x13bd   : > { %v4425_v27 = vmul.f32 %v8576_v23, %v8568_v7 }
0x13be   : > { %v4414_v12 = vpop.xlane.xlu1 %4413 }
0x13bf   : > { %v4429_v28 = vpack.c.bf16 %v4425_v27, %v4425_v27  ;;  %8579 = vrcp.f32 %v4414_v12 }
0x13c1   : > { %8086 = vmatmul.mubr.msk.bf16.vlgmr.msra.gmra.mxu0 %vm1285_vm4, %v4429_v28 }
0x13c2   : > { %8096 = vmatpush3.bf16.msra.mxu0 %v4533_v30  ;;  %8097 = vmatprep.mubr.msk.bf16.mxu0 %vm8678_vm0, %v8677_v1 }
0x13c3   : > { %8107 = vmatprep.subr.bf16.mxu0 %v8677_v1 }
0x13c4   : > { %v8578_v31 = vpop.eup %8577 }
0x13c5   : > { %v4427_v9 = vmul.f32 %v8578_v31, %v8570_v14 }
0x13c6   : > { %v4420_v32 = vpop.xlane.xlu1 %4419 }
0x13c7   : > { %v4431_v33 = vpack.c.bf16 %v4427_v9, %v4427_v9  ;;  %8581 = vrcp.f32 %v4420_v32 }
0x13c9   : > { %8098 = vmatmul.mubr.msk.bf16.vlgmr.msra.gmra.mxu0 %vm1285_vm4, %v4431_v33 }
0x13ca   : > { %8109 = vmatprep.mubr.msk.bf16.mxu0 %vm8678_vm0, %v8677_v1  ;;  %8108 = vmatpush3.bf16.msra.mxu0 %v8483_v35 }
0x13cb   : > { %8119 = vmatprep.subr.bf16.mxu0 %v8677_v1 }
0x13cc   : > { %v8580_v20 = vpop.eup %8579 }
0x13cd   : > { %v4426_v29 = vmul.f32 %v8580_v20, %v8572_v18 }
0x13cf   : > { %v4430_v36 = vpack.c.bf16 %v4426_v29, %v4426_v29  ;;  %v8487_v29 = vld [vmem:[%s10028_s6 + $0x28] sm:$0xff]  }
0x13d1   : > { %8092 = vmatmul.mubr.msk.bf16.vlgmr.msra.gmra.mxu1 %vm1285_vm4, %v4430_v36  ;;  %v8488_v36 = vld [vmem:[%s10028_s6 + $0x20] sm:$0xff]  }
0x13d2   : > { %8102 = vmatpush3.bf16.msra.mxu1 %v4579_v37  ;;  %8103 = vmatprep.mubr.msk.bf16.mxu1 %vm8678_vm0, %v8677_v1  ;;  %v8490_v37 = vld [vmem:[%s10030_s8 + $0x50] sm:$0xff]  }
0x13d3   : > { %8113 = vmatprep.subr.bf16.mxu1 %v8677_v1 }
0x13d4   : > { %v8582_v38 = vpop.eup %8581 }
0x13d5   : > { %v4428_v39 = vmul.f32 %v8582_v38, %v8574_v22 }
0x13d7   : > { %v4432_v40 = vpack.c.bf16 %v4428_v39, %v4428_v39 }
0x13d9   : > { %8104 = vmatmul.mubr.msk.bf16.vlgmr.msra.gmra.mxu1 %vm1285_vm4, %v4432_v40 }
0x13da   : > { %8115 = vmatprep.mubr.msk.bf16.mxu1 %vm8678_vm0, %v8677_v1  ;;  %8114 = vmatpush3.bf16.msra.mxu1 %v8485_v41  ;;  %v7135_v41 = vld [vmem:[%s10026_s4 + $0x2] ss:$0 sm:$0xff] }
0x13db   : > { %8125 = vmatprep.subr.bf16.mxu1 %v8677_v1 }
0x1481   : > { %v4477_v42 = vpop.f32.mrf.mxu0 }
0x1482   : > { %v4621_v44 = vpack.c.bf16 %v4477_v42, %v4477_v42 }
0x1483   : > { %v8087_v45 = vpop.f32.mrf.mxu0 }
0x1484   : > { %8110 = vmatmul.mubr.msk.bf16.vlgmr.msra.gmra.mxu0 %vm1096_vm2, %v4621_v44 }
0x1485   : > { %v4480_v46 = vpop.f32.mrf.mxu0  ;;  %8120 = vmatpush3.bf16.msra.mxu0 %v8484_v43  ;;  %8121 = vmatprep.mubr.msk.bf16.mxu0 %vm8678_vm0, %v8677_v1  ;;  %v7136_v43 = vld [vmem:[%s10027_s5 + $0x2] ss:$0 sm:$0xff] }
0x1486   : > { %8131 = vmatprep.subr.bf16.mxu0 %v8677_v1 }
0x1487   : > { %v8088_v47 = vpop.f32.mrf.mxu0 }
0x1488   : > { %v8491_v47 = vld [vmem:[%s10030_s8 + $0x48] sm:$0xff]  }
0x1489   : > { %v4569_v48 = vpop.f32.mrf.mxu0 }
0x148a   : > { %v4623_v49 = vpack.c.bf16 %v4569_v48, %v4569_v48  ;;  %v8492_v48 = vld [vmem:[%s10030_s8 + $0x40] sm:$0xff]  }
0x148b   : > { %v8099_v50 = vpop.f32.mrf.mxu0 }
0x148c   : > { %8122 = vmatmul.mubr.msk.bf16.vlgmr.msra.gmra.mxu0 %vm1096_vm2, %v4623_v49  ;;  %v7142_v49 = vld [vmem:[%s10029_s7 + $0x2] ss:$0 sm:$0xff] }
0x148d   : > { %v4572_v51 = vpop.f32.mrf.mxu0  ;;  %8135 = vmatprep.mubr.msk.bf16.mxu0 %vm8678_vm0, %v8677_v1  ;;  %8132 = vmatpush3.bf16.msra.mxu0 %v8487_v29  ;;  %v8509_v29 = vld [vmem:[%s10039_s1 + $0x2b8] sm:$0xff]  }
0x148e   : > { %8133 = vmatprep.subr.bf16.mxu0 %v8677_v1 }
0x148f   : > { %v8100_v52 = vpop.f32.mrf.mxu0 }
0x1491   : > { %v4523_v53 = vpop.f32.mrf.mxu1  ;;  %8134 = vmatpush3.bf16.msra.mxu0 %v8488_v36  ;;  %v8510_v36 = vld [vmem:[%s10039_s1 + $0x2e8] sm:$0xff]  }
0x1492   : > { %v4622_v55 = vpack.c.bf16 %v4523_v53, %v4523_v53  ;;  %8151 = vmatprep.subr.bf16.mxu0 %v8677_v1 }
0x1493   : > { %v8093_v56 = vpop.f32.mrf.mxu1 }
0x1494   : > { %8116 = vmatmul.mubr.msk.bf16.vlgmr.msra.gmra.mxu1 %vm1096_vm2, %v4622_v55 }
0x1495   : > { %v4526_v57 = vpop.f32.mrf.mxu1  ;;  %8126 = vmatpush3.bf16.msra.mxu1 %v8486_v54  ;;  %8127 = vmatprep.mubr.msk.bf16.mxu1 %vm8678_vm0, %v8677_v1 }
0x1496   : > { %8139 = vmatprep.subr.bf16.mxu1 %v8677_v1  ;;  %v7155_v57 = vld [vmem:[%s10031_s9 + $0x2] ss:$0 sm:$0xff] }
0x1497   : > { %v8094_v58 = vpop.f32.mrf.mxu1 }
0x1499   : > { %v4615_v59 = vpop.f32.mrf.mxu1 }
0x149a   : > { %v4624_v60 = vpack.c.bf16 %v4615_v59, %v4615_v59 }
0x149b   : > { %v8105_v61 = vpop.f32.mrf.mxu1 }
0x149c   : > { %8128 = vmatmul.mubr.msk.bf16.vlgmr.msra.gmra.mxu1 %vm1096_vm2, %v4624_v60 }
0x149d   : > { %v4618_v62 = vpop.f32.mrf.mxu1  ;;  %8147 = vmatprep.mubr.msk.bf16.mxu1 %vm8678_vm0, %v8677_v1 }
0x149f   : > { %v8106_v63 = vpop.f32.mrf.mxu1 }
0x1544   : > { %v4677_v0 = vpop.f32.mrf.mxu0 }
0x1545   : > { %v4830_v14 = vsel %vm472_vm1, %v4677_v0, 0.0 }
0x1546   : > { %v8111_v2 = vpop.f32.mrf.mxu0 }
0x1548   : > { %v4680_v3 = vpop.f32.mrf.mxu0 }
0x154a   : > { %v8112_v4 = vpop.f32.mrf.mxu0 }
0x154c   : > { %v4775_v5 = vpop.f32.mrf.mxu0 }
0x154d   : > { %v4833_v21 = vsel %vm472_vm1, %v4775_v5, 0.0 }
0x154e   : > { %v8123_v6 = vpop.f32.mrf.mxu0 }
0x1550   : > { %v4778_v7 = vpop.f32.mrf.mxu0 }
0x1551   : > { %v8493_v7 = vld [vmem:[%s10039_s1 + $0x248] sm:$0xff]  }
0x1552   : > { %v8124_v8 = vpop.f32.mrf.mxu0 }
0x1553   : > { %v8494_v8 = vld [vmem:[%s10039_s1 + $0x268] sm:$0xff]  }
0x1554   : > { %v4726_v10 = vpop.f32.mrf.mxu1 }
0x1555   : > { %v4831_v11 = vsel %vm472_vm1, %v4726_v10, 0.0  ;;  %v8495_v10 = vld [vmem:[%s10039_s1 + $0x240] sm:$0xff]  }
0x1556   : > { %v8117_v13 = vpop.f32.mrf.mxu1  ;;  %v4832_v15 = vadd.f32 %v4831_v11, %v4830_v14  ;;  %v8496_v11 = vld [vmem:[%s10039_s1 + $0x260] sm:$0xff]  }
0x1558   : > { %v4729_v17 = vpop.f32.mrf.mxu1  ;;  %v4834_v24 = vadd.f32 %v4833_v21, %v4832_v15 }
0x155a   : > { %v8118_v18 = vpop.f32.mrf.mxu1 }
0x155b   : > { %v7163_v18 = vld [vmem:[%s10032_s10 + $0x2] ss:$0 sm:$0xff] }
0x155c   : > { %v4824_v22 = vpop.f32.mrf.mxu1 }
0x155d   : > { %v4835_v19 = vsel %vm472_vm1, %v4824_v22, 0.0  ;;  %v7164_v22 = vld [vmem:[%s10033_s11 + $0x2] ss:$0 sm:$0xff] }
0x155e   : > { %v4836_v23 = vadd.f32 %v4835_v19, %v4834_v24  ;;  %v8129_v26 = vpop.f32.mrf.mxu1 }
0x1560   : > { %v4845_v27 = vadd.f32 %v7132_v25, %v4836_v23  ;;  %v4827_v12 = vpop.f32.mrf.mxu1  ;;  %v8497_v25 = vld [vmem:[%s10039_s1 + $0x258] sm:$0xff]   ;;  %v8498_v23 = vld [vmem:[%s10039_s1 + $0x288] sm:$0xff]  }
0x1561   : > { %v8500_v12 = vld [vmem:[%s10039_s1 + $0x280] sm:$0xff]  }
0x1562   : > { %v8130_v28 = vpop.f32.mrf.mxu1  ;;  %v4846_v30 = vadd.f32 %v4845_v27, %v9409_v16  ;;  %v8489_v16 = vld [vmem:[%s10030_s8 + $0x58] sm:$0xff]   ;;  %v8499_v27 = vld [vmem:[%s10039_s1 + $0x250] sm:$0xff]  }
0x1563   : > { %8140 = vmatpush3.bf16.msra.mxu1 %v8489_v16  ;;  %v8501_v28 = vld [vmem:[%s10039_s1 + $0x278] sm:$0xff]   ;;  %v8511_v16 = vld [vmem:[%s10039_s1 + $0x2b0] sm:$0xff]  }
0x1564   : > { %v4851_v31 = vsel %vm472_vm1, %v4846_v30, 0.0  ;;  %8141 = vmatprep.subr.bf16.mxu1 %v8677_v1 }
0x1565   : > { %4852 = vadd.xlane.f32.xlu0 %v4851_v31  ;;  %v8503_v31 = vld [vmem:[%s10039_s1 + $0x270] sm:$0xff]  }
0x1567   : > { %8142 = vmatpush3.bf16.msra.mxu1 %v8490_v37  ;;  %v8512_v37 = vld [vmem:[%s10039_s1 + $0x2e0] sm:$0xff]  }
0x1568   : > { %8143 = vmatprep.subr.bf16.mxu1 %v8677_v1 }
0x156b   : > { %8144 = vmatpush3.bf16.msra.mxu1 %v8491_v47 }
0x156c   : > { %8145 = vmatprep.subr.bf16.mxu1 %v8677_v1 }
0x156f   : > { %8146 = vmatpush3.bf16.msra.mxu1 %v8492_v48 }
0x1570   : > { %8167 = vmatprep.subr.bf16.mxu1 %v8677_v1 }
0x15ee   : > { %v4853_v9 = vpop.xlane.xlu0 %4852 }
0x15ef   : > { %v4854_v32 = vmul.f32 0.03125, %v4853_v9  ;;  %v8504_v9 = vld [vmem:[%s10039_s1 + $0x2a0] sm:$0xff]  }
0x15f1   : > { %v4855_v33 = vsub.f32 %v4846_v30, %v4854_v32  ;;  %v8502_v30 = vld [vmem:[%s10039_s1 + $0x2a8] sm:$0xff]   ;;  %v8505_v32 = vld [vmem:[%s10039_s1 + $0x298] sm:$0xff]  }
0x15f3   : > { %v4856_v20 = vmul.f32 %v4855_v33, %v4855_v33 }
0x15f5   : > { %v4857_v34 = vsel %vm472_vm1, %v4856_v20, 0.0  ;;  %v8507_v20 = vld [vmem:[%s10039_s1 + $0x290] sm:$0xff]  }
0x15f6   : > { %4858 = vadd.xlane.f32.xlu1 %v4857_v34  ;;  %v8508_v34 = vld [vmem:[%s10039_s1 + $0x2c0] sm:$0xff]  }
0x167f   : > { %v4859_v38 = vpop.xlane.xlu1 %4858 }
0x1680   : > { %v4860_v39 = vmul.f32 0.03125, %v4859_v38  ;;  %v8513_v38 = vld [vmem:[%s10039_s1 + $0x2d8] sm:$0xff]  }
0x1682   : > { %v4861_v40 = vadd.f32 1e-05, %v4860_v39  ;;  %v8514_v39 = vld [vmem:[%s10039_s1 + $0x2d0] sm:$0xff]  }
0x1684   : > { %8583 = vrsqrt.f32 %v4861_v40  ;;  %v8515_v40 = vld [vmem:[%s10039_s1 + $0x2f8] sm:$0xff]  }
0x1691   : > { %v8584_v35 = vpop.eup %8583 }
0x1692   : > { %v4863_v42 = vmul.f32 %v8584_v35, %v4855_v33  ;;  %v8506_v33 = vld [vmem:[%s10039_s1 + $0x2c8] sm:$0xff]   ;;  %v8516_v35 = vld [vmem:[%s10039_s1 + $0x2f0] sm:$0xff]  }
0x1694   : > { %v4870_v44 = vmul.f32 %v7135_v41, %v4863_v42 }
0x1696   : > { %v4877_v45 = vadd.f32 %v7136_v43, %v4870_v44 }
0x1698   : > { %v4878_v46 = vpack.c.bf16 %v4877_v45, %v4877_v45 }
0x169a   : > { %8136 = vmatmul.mubr.msk.bf16.vlgmr.msra.gmra.mxu0 %vm472_vm1, %v4878_v46 }
0x169b   : > { %8155 = vmatprep.mubr.msk.bf16.mxu0 %vm8678_vm0, %v8677_v1  ;;  %8152 = vmatpush3.bf16.msra.mxu0 %v8493_v7 }
0x169c   : > { %8153 = vmatprep.subr.bf16.mxu0 %v8677_v1 }
0x169f   : > { %8154 = vmatpush3.bf16.msra.mxu0 %v8495_v10 }
0x16a0   : > { %8159 = vmatprep.subr.bf16.mxu0 %v8677_v1 }
0x175a   : > { %v4941_v50 = vpop.f32.mrf.mxu0 }
0x175b   : > { %v4942_v51 = vadd.f32 %v7142_v49, %v4941_v50 }
0x175c   : > { %v8137_v52 = vpop.f32.mrf.mxu0 }
0x175d   : > { %v4947_v53 = vmax.f32 %v4942_v51, 0.0 }
0x175e   : > { %v4944_v54 = vpop.f32.mrf.mxu0 }
0x175f   : > { %v4948_v55 = vpack.c.bf16 %v4947_v53, %v4947_v53 }
0x1760   : > { %v8138_v56 = vpop.f32.mrf.mxu0 }
0x1761   : > { %8148 = vmatmul.mubr.msk.bf16.vlgmr.msra.gmra.mxu1 %vm1885_vm5, %v4948_v55 }
0x1762   : > { %8171 = vmatprep.mubr.msk.bf16.mxu1 %vm8678_vm0, %v8677_v1  ;;  %8168 = vmatpush3.bf16.msra.mxu1 %v8494_v8 }
0x1763   : > { %8169 = vmatprep.subr.bf16.mxu1 %v8677_v1 }
0x1766   : > { %8170 = vmatpush3.bf16.msra.mxu1 %v8496_v11 }
0x1767   : > { %8183 = vmatprep.subr.bf16.mxu1 %v8677_v1 }
0x1821   : > { %v5027_v58 = vpop.f32.mrf.mxu1 }
0x1822   : > { %v5028_v59 = vadd.f32 %v7155_v57, %v5027_v58 }
0x1823   : > { %v8149_v60 = vpop.f32.mrf.mxu1 }
0x1824   : > { %v5033_v61 = vadd.f32 %v5028_v59, %v4877_v45 }
0x1825   : > { %v5030_v62 = vpop.f32.mrf.mxu1 }
0x1826   : > { %v5038_v63 = vsel %vm472_vm1, %v5033_v61, 0.0 }
0x1827   : > { %5039 = vadd.xlane.f32.xlu0 %v5038_v63  ;;  %v8150_v0 = vpop.f32.mrf.mxu1 }
0x18b0   : > { %v5040_v2 = vpop.xlane.xlu0 %5039 }
0x18b1   : > { %v5041_v3 = vmul.f32 0.03125, %v5040_v2 }
0x18b3   : > { %v5042_v4 = vsub.f32 %v5033_v61, %v5041_v3 }
0x18b5   : > { %v5043_v5 = vmul.f32 %v5042_v4, %v5042_v4 }
0x18b7   : > { %v5044_v6 = vsel %vm472_vm1, %v5043_v5, 0.0 }
0x18b8   : > { %5045 = vadd.xlane.f32.xlu1 %v5044_v6 }
0x1941   : > { %v5046_v13 = vpop.xlane.xlu1 %5045 }
0x1942   : > { %v5047_v14 = vmul.f32 0.03125, %v5046_v13 }
0x1944   : > { %v5048_v15 = vadd.f32 1e-05, %v5047_v14 }
0x1946   : > { %8585 = vrsqrt.f32 %v5048_v15 }
0x1953   : > { %v8586_v17 = vpop.eup %8585 }
0x1954   : > { %v5050_v21 = vmul.f32 %v8586_v17, %v5042_v4 }
0x1956   : > { %v5057_v24 = vmul.f32 %v7163_v18, %v5050_v21 }
0x1958   : > { %v9703_v19 = vadd.f32 %v7164_v22, %v5057_v24 }
0x195a   : > { %v9713_v26 = vpack.c.bf16 %v9703_v19, %v9703_v19 }
0x195c   : > { %8156 = vmatmul.mubr.msk.bf16.vlgmr.msra.gmra.mxu0 %vm472_vm1, %v9713_v26  ;;  %8172 = vmatmul.mubr.msk.bf16.vlgmr.msra.gmra.mxu1 %vm472_vm1, %v9713_v26 }
0x195d   : > { %8160 = vmatpush3.bf16.msra.mxu0 %v8497_v25  ;;  %8184 = vmatpush3.bf16.msra.mxu1 %v8498_v23 }
0x195e   : > { %8161 = vmatprep.subr.bf16.mxu0 %v8677_v1  ;;  %8185 = vmatprep.subr.bf16.mxu1 %v8677_v1 }
0x195f   : > { %8163 = vmatprep.mubr.msk.bf16.mxu0 %vm8678_vm0, %v8677_v1  ;;  %8187 = vmatprep.mubr.msk.bf16.mxu1 %vm8678_vm0, %v8677_v1 }
0x1961   : > { %8162 = vmatpush3.bf16.msra.mxu0 %v8499_v27  ;;  %8186 = vmatpush3.bf16.msra.mxu1 %v8500_v12 }
0x1962   : > { %8175 = vmatprep.subr.bf16.mxu0 %v8677_v1  ;;  %8199 = vmatprep.subr.bf16.mxu1 %v8677_v1 }
0x1964   : > { %8164 = vmatmul.mubr.msk.bf16.vlgmr.msra.gmra.mxu0 %vm472_vm1, %v9713_v26  ;;  %8188 = vmatmul.mubr.msk.bf16.vlgmr.msra.gmra.mxu1 %vm472_vm1, %v9713_v26 }
0x1965   : > { %8176 = vmatpush3.bf16.msra.mxu0 %v8501_v28  ;;  %8200 = vmatpush3.bf16.msra.mxu1 %v8502_v30 }
0x1966   : > { %8177 = vmatprep.subr.bf16.mxu0 %v8677_v1  ;;  %8201 = vmatprep.subr.bf16.mxu1 %v8677_v1 }
0x1967   : > { %8179 = vmatprep.mubr.msk.bf16.mxu0 %vm8678_vm0, %v8677_v1  ;;  %8203 = vmatprep.mubr.msk.bf16.mxu1 %vm8678_vm0, %v8677_v1 }
0x1969   : > { %8178 = vmatpush3.bf16.msra.mxu0 %v8503_v31  ;;  %8202 = vmatpush3.bf16.msra.mxu1 %v8504_v9 }
0x196a   : > { %8191 = vmatprep.subr.bf16.mxu0 %v8677_v1  ;;  %8215 = vmatprep.subr.bf16.mxu1 %v8677_v1 }
0x196c   : > { %8180 = vmatmul.mubr.msk.bf16.vlgmr.msra.gmra.mxu0 %vm472_vm1, %v9713_v26  ;;  %8204 = vmatmul.mubr.msk.bf16.vlgmr.msra.gmra.mxu1 %vm472_vm1, %v9713_v26 }
0x196d   : > { %8192 = vmatpush3.bf16.msra.mxu0 %v8505_v32  ;;  %8216 = vmatpush3.bf16.msra.mxu1 %v8506_v33 }
0x196e   : > { %8193 = vmatprep.subr.bf16.mxu0 %v8677_v1  ;;  %8217 = vmatprep.subr.bf16.mxu1 %v8677_v1 }
0x196f   : > { %8195 = vmatprep.mubr.msk.bf16.mxu0 %vm8678_vm0, %v8677_v1  ;;  %8219 = vmatprep.mubr.msk.bf16.mxu1 %vm8678_vm0, %v8677_v1 }
0x1971   : > { %8194 = vmatpush3.bf16.msra.mxu0 %v8507_v20  ;;  %8218 = vmatpush3.bf16.msra.mxu1 %v8508_v34 }
0x1972   : > { %8207 = vmatprep.subr.bf16.mxu0 %v8677_v1  ;;  %8231 = vmatprep.subr.bf16.mxu1 %v8677_v1 }
0x1974   : > { %8196 = vmatmul.mubr.msk.bf16.vlgmr.msra.gmra.mxu0 %vm472_vm1, %v9713_v26  ;;  %8220 = vmatmul.mubr.msk.bf16.vlgmr.msra.gmra.mxu1 %vm472_vm1, %v9713_v26 }
0x1975   : > { %8208 = vmatpush3.bf16.msra.mxu0 %v8509_v29  ;;  %8232 = vmatpush3.bf16.msra.mxu1 %v8510_v36 }
0x1976   : > { %8209 = vmatprep.subr.bf16.mxu0 %v8677_v1  ;;  %8233 = vmatprep.subr.bf16.mxu1 %v8677_v1 }
0x1977   : > { %8211 = vmatprep.mubr.msk.bf16.mxu0 %vm8678_vm0, %v8677_v1  ;;  %8235 = vmatprep.mubr.msk.bf16.mxu1 %vm8678_vm0, %v8677_v1 }
0x1979   : > { %8210 = vmatpush3.bf16.msra.mxu0 %v8511_v16  ;;  %8234 = vmatpush3.bf16.msra.mxu1 %v8512_v37 }
0x197a   : > { %8223 = vmatprep.subr.bf16.mxu0 %v8677_v1  ;;  %8247 = vmatprep.subr.bf16.mxu1 %v8677_v1 }
0x197c   : > { %8212 = vmatmul.mubr.msk.bf16.vlgmr.msra.gmra.mxu0 %vm472_vm1, %v9713_v26  ;;  %8236 = vmatmul.mubr.msk.bf16.vlgmr.msra.gmra.mxu1 %vm472_vm1, %v9713_v26 }
0x197d   : > { %8224 = vmatpush3.bf16.msra.mxu0 %v8513_v38  ;;  %8227 = vmatprep.mubr.msk.bf16.mxu0 %vm8678_vm0, %v8677_v1 }
0x197e   : > { %8225 = vmatprep.subr.bf16.mxu0 %v8677_v1  ;;  %8249 = vmatprep.mubr.msk.bf16.mxu1 %vm8678_vm0, %v8677_v1 }
0x1981   : > { %8226 = vmatpush3.bf16.msra.mxu0 %v8514_v39 }
0x1982   : > { %8239 = vmatprep.subr.bf16.mxu0 %v8677_v1 }
0x1984   : > { %8228 = vmatmul.mubr.msk.bf16.vlgmr.msra.gmra.mxu0 %vm472_vm1, %v9713_v26 }
0x1985   : > { %8240 = vmatpush3.bf16.msra.mxu0 %v8515_v40  ;;  %8243 = vmatprep.mubr.msk.bf16.mxu0 %vm8678_vm0, %v8677_v1 }
0x1986   : > { %8241 = vmatprep.subr.bf16.mxu0 %v8677_v1 }
0x1989   : > { %8242 = vmatpush3.bf16.msra.mxu0 %v8516_v35 }
0x198a   : > { %8253 = vmatprep.subr.bf16.mxu0 %v8677_v1 }
0x198c   : > { %8244 = vmatmul.mubr.msk.bf16.vlgmr.msra.gmra.mxu0 %vm472_vm1, %v9713_v26 }
0x198d   : > { %8255 = vmatprep.mubr.msk.bf16.mxu0 %vm8678_vm0, %v8677_v1 }
0x1a1c   : > { %v5164_v41 = vpop.f32.mrf.mxu0  ;;  %v5268_v42 = vpop.f32.mrf.mxu1 }
0x1a1d   : > { %v5742_v61 = vpack.c.bf16 %v5164_v41, %v5164_v41  ;;  %v5744_v10 = vpack.c.bf16 %v5268_v42, %v5268_v42 }
0x1a1e   : > { %v8157_v43 = vpop.f32.mrf.mxu0  ;;  %v8173_v44 = vpop.f32.mrf.mxu1 }
0x1a20   : > { %v5167_v45 = vpop.f32.mrf.mxu0  ;;  %v5271_v46 = vpop.f32.mrf.mxu1 }
0x1a22   : > { %v8158_v47 = vpop.f32.mrf.mxu0  ;;  %v8174_v48 = vpop.f32.mrf.mxu1 }
0x1a24   : > { %v5216_v49 = vpop.f32.mrf.mxu0  ;;  %v5372_v50 = vpop.f32.mrf.mxu1 }
0x1a25   : > { %v5746_v51 = vpack.c.bf16 %v5372_v50, %v5372_v50  ;;  %v5743_v27 = vpack.c.bf16 %v5216_v49, %v5216_v49 }
0x1a26   : > { %v8165_v52 = vpop.f32.mrf.mxu0  ;;  %v8189_v53 = vpop.f32.mrf.mxu1 }
0x1a27   : > { %v5754_v54 = vsel %vm1096_vm2, %v5746_v51, 0 }
0x1a28   : > { %v5219_v55 = vpop.f32.mrf.mxu0  ;;  %v5375_v56 = vpop.f32.mrf.mxu1  ;;  %8248 = vmatpush3.bf16.xpose.msra.mxu1 %v5754_v54 }
0x1a29   : > { %8259 = vmatprep.subr.bf16.mxu1 %v8677_v1 }
0x1a2a   : > { %v8166_v57 = vpop.f32.mrf.mxu0  ;;  %v8190_v58 = vpop.f32.mrf.mxu1 }
0x1a2c   : > { %v5320_v59 = vpop.f32.mrf.mxu0  ;;  %v5476_v60 = vpop.f32.mrf.mxu1 }
0x1a2d   : > { %v5748_v62 = vpack.c.bf16 %v5476_v60, %v5476_v60  ;;  %v5745_v29 = vpack.c.bf16 %v5320_v59, %v5320_v59 }
0x1a2e   : > { %v8181_v63 = vpop.f32.mrf.mxu0  ;;  %v8205_v0 = vpop.f32.mrf.mxu1 }
0x1a2f   : > { %v5846_v2 = vsel %vm1096_vm2, %v5748_v62, 0  ;;  %8250 = vmatmul.mubr.msk.bf16.vlgmr.msra.gmra.mxu1 %vm1096_vm2, %v5742_v61 }
0x1a30   : > { %v5323_v3 = vpop.f32.mrf.mxu0  ;;  %v5479_v4 = vpop.f32.mrf.mxu1  ;;  %8260 = vmatpush3.bf16.xpose.msra.mxu1 %v5846_v2  ;;  %8261 = vmatprep.mubr.msk.bf16.mxu1 %vm8678_vm0, %v8677_v1 }
0x1a31   : > { %8271 = vmatprep.subr.bf16.mxu1 %v8677_v1 }
0x1a32   : > { %v8182_v5 = vpop.f32.mrf.mxu0  ;;  %v8206_v6 = vpop.f32.mrf.mxu1 }
0x1a34   : > { %v5424_v7 = vpop.f32.mrf.mxu0  ;;  %v5580_v8 = vpop.f32.mrf.mxu1 }
0x1a35   : > { %v5747_v11 = vpack.c.bf16 %v5424_v7, %v5424_v7  ;;  %v5986_v13 = vpack.c.bf16 %v5580_v8, %v5580_v8 }
0x1a36   : > { %v8197_v14 = vpop.f32.mrf.mxu0  ;;  %v8221_v15 = vpop.f32.mrf.mxu1 }
0x1a37   : > { %v5800_v17 = vsel %vm1096_vm2, %v5747_v11, 0  ;;  %v5994_v18 = vsel %vm1341_vm3, %v5986_v13, 0  ;;  %8262 = vmatmul.mubr.msk.bf16.vlgmr.msra.gmra.mxu1 %vm1096_vm2, %v5744_v10 }
0x1a38   : > { %v5427_v21 = vpop.f32.mrf.mxu0  ;;  %v5583_v22 = vpop.f32.mrf.mxu1  ;;  %8254 = vmatpush3.bf16.xpose.msra.mxu0 %v5800_v17  ;;  %8272 = vmatpush3.bf16.msra.mxu1 %v5994_v18 }
0x1a39   : > { %8265 = vmatprep.subr.bf16.mxu0 %v8677_v1  ;;  %8273 = vmatprep.mubr.msk.bf16.mxu1 %vm8678_vm0, %v8677_v1 }
0x1a3a   : > { %v8198_v24 = vpop.f32.mrf.mxu0  ;;  %v8222_v25 = vpop.f32.mrf.mxu1  ;;  %8283 = vmatprep.subr.bf16.mxu1 %v8677_v1 }
0x1a3c   : > { %v5528_v23 = vpop.f32.mrf.mxu0  ;;  %v9851_v26 = vpop.f32.mrf.mxu1 }
0x1a3d   : > { %v5749_v12 = vpack.c.bf16 %v5528_v23, %v5528_v23 }
0x1a3e   : > { %v8213_v28 = vpop.f32.mrf.mxu0  ;;  %v8237_v30 = vpop.f32.mrf.mxu1 }
0x1a3f   : > { %v5892_v31 = vsel %vm1096_vm2, %v5749_v12, 0  ;;  %8256 = vmatmul.mubr.msk.bf16.vlgmr.msra.gmra.mxu0 %vm1096_vm2, %v5743_v27 }
0x1a40   : > { %v5531_v9 = vpop.f32.mrf.mxu0  ;;  %v5687_v32 = vpop.f32.mrf.mxu1  ;;  %8266 = vmatpush3.bf16.xpose.msra.mxu0 %v5892_v31  ;;  %8267 = vmatprep.mubr.msk.bf16.mxu0 %vm8678_vm0, %v8677_v1 }
0x1a41   : > { %8277 = vmatprep.subr.bf16.mxu0 %v8677_v1  ;;  %v5988_v32 = vpack.c.bf16 %v9851_v26, %v9851_v26 }
0x1a42   : > { %v8214_v33 = vpop.f32.mrf.mxu0  ;;  %v8238_v20 = vpop.f32.mrf.mxu1 }
0x1a44   : > { %v5632_v34 = vpop.f32.mrf.mxu0 }
0x1a45   : > { %v5987_v36 = vpack.c.bf16 %v5632_v34, %v5632_v34 }
0x1a46   : > { %v8229_v16 = vpop.f32.mrf.mxu0 }
0x1a47   : > { %v6040_v37 = vsel %vm1341_vm3, %v5987_v36, 0  ;;  %8268 = vmatmul.mubr.msk.bf16.vlgmr.msra.gmra.mxu0 %vm1096_vm2, %v5745_v29  ;;  %v6086_v29 = vsel %vm1341_vm3, %v5988_v32, 0 }
0x1a48   : > { %v5635_v38 = vpop.f32.mrf.mxu0  ;;  %8278 = vmatpush3.bf16.msra.mxu0 %v6040_v37  ;;  %8279 = vmatprep.mubr.msk.bf16.mxu0 %vm8678_vm0, %v8677_v1 }
0x1a49   : > { %8289 = vmatprep.subr.bf16.mxu0 %v8677_v1 }
0x1a4a   : > { %v8230_v39 = vpop.f32.mrf.mxu0 }
0x1a4c   : > { %v9863_v40 = vpop.f32.mrf.mxu0 }
0x1a4d   : > { %v5989_v39 = vpack.c.bf16 %v9863_v40, %v9863_v40  ;;  %v8517_v40 = vld [vmem:[%s10024_s2 + $0x60] sm:$0xff]  }
0x1a4e   : > { %v8245_v35 = vpop.f32.mrf.mxu0 }
0x1a50   : > { %v5739_v41 = vpop.f32.mrf.mxu0 }
0x1a52   : > { %v8246_v42 = vpop.f32.mrf.mxu0 }
0x1a53   : > { %v6132_v42 = vsel %vm1341_vm3, %v5989_v39, 0 }
0x1aef   : > { %v5790_v43 = vpop.f32.mrf.mxu1 }
0x1af0   : > { %v5934_v44 = vmul.f32 0.25, %v5790_v43 }
0x1af1   : > { %v8251_v45 = vpop.f32.mrf.mxu1 }
0x1af2   : > { %v5938_v46 = vsel %vm1285_vm4, %v5934_v44, -inf }
0x1af3   : > { %5939 = vmax.xlane.f32.xlu0 %v5938_v46  ;;  %v5793_v47 = vpop.f32.mrf.mxu1  ;;  %v8519_v46 = vld [vmem:[%s10024_s2 + $0x68] sm:$0xff]  }
0x1af5   : > { %v8252_v48 = vpop.f32.mrf.mxu1 }
0x1af6   : > { %v8518_v48 = vld [vmem:[%s10024_s2 + $0x70] sm:$0xff]  }
0x1af7   : > { %v5882_v49 = vpop.f32.mrf.mxu1 }
0x1af8   : > { %v5936_v50 = vmul.f32 0.25, %v5882_v49 }
0x1af9   : > { %v8263_v51 = vpop.f32.mrf.mxu1 }
0x1afa   : > { %v5944_v52 = vsel %vm1285_vm4, %v5936_v50, -inf }
0x1afb   : > { %5945 = vmax.xlane.f32.xlu0 %v5944_v52  ;;  %v5885_v53 = vpop.f32.mrf.mxu1 }
0x1afd   : > { %v8264_v54 = vpop.f32.mrf.mxu1 }
0x1aff   : > { %v5836_v55 = vpop.f32.mrf.mxu0 }
0x1b00   : > { %v5935_v56 = vmul.f32 0.25, %v5836_v55 }
0x1b01   : > { %v8257_v57 = vpop.f32.mrf.mxu0 }
0x1b02   : > { %v5941_v58 = vsel %vm1285_vm4, %v5935_v56, -inf }
0x1b03   : > { %5942 = vmax.xlane.f32.xlu1 %v5941_v58  ;;  %v5839_v59 = vpop.f32.mrf.mxu0 }
0x1b04   : > { %v8520_v59 = vld [vmem:[%s10024_s2 + $0x78] sm:$0xff]  }
0x1b05   : > { %v8258_v60 = vpop.f32.mrf.mxu0 }
0x1b07   : > { %v5928_v61 = vpop.f32.mrf.mxu0 }
0x1b08   : > { %v5937_v62 = vmul.f32 0.25, %v5928_v61 }
0x1b09   : > { %v8269_v63 = vpop.f32.mrf.mxu0 }
0x1b0a   : > { %v5947_v0 = vsel %vm1285_vm4, %v5937_v62, -inf }
0x1b0b   : > { %5948 = vmax.xlane.f32.xlu1 %v5947_v0  ;;  %v5931_v2 = vpop.f32.mrf.mxu0 }
0x1b0d   : > { %v8270_v3 = vpop.f32.mrf.mxu0 }
0x1b7c   : > { %v5940_v4 = vpop.xlane.xlu0 %5939 }
0x1b7d   : > { %v5950_v5 = vsub.f32 %v5934_v44, %v5940_v4 }
0x1b7f   : > { %v5954_v6 = vmul.f32 1.442695, %v5950_v5 }
0x1b81   : > { %8587 = vpow2.f32 %v5954_v6 }
0x1b84   : > { %v5946_v7 = vpop.xlane.xlu0 %5945 }
0x1b85   : > { %v5952_v8 = vsub.f32 %v5936_v50, %v5946_v7 }
0x1b87   : > { %v5958_v10 = vmul.f32 1.442695, %v5952_v8 }
0x1b89   : > { %8589 = vpow2.f32 %v5958_v10 }
0x1b8c   : > { %v5943_v11 = vpop.xlane.xlu1 %5942 }
0x1b8d   : > { %v5951_v13 = vsub.f32 %v5935_v56, %v5943_v11 }
0x1b8e   : > { %v8588_v14 = vpop.eup %8587 }
0x1b8f   : > { %v5956_v15 = vmul.f32 1.442695, %v5951_v13  ;;  %v5962_v17 = vsel %vm1285_vm4, %v8588_v14, 0.0 }
0x1b90   : > { %5963 = vadd.xlane.f32.xlu0 %v5962_v17 }
0x1b91   : > { %8591 = vpow2.f32 %v5956_v15 }
0x1b94   : > { %v5949_v18 = vpop.xlane.xlu1 %5948 }
0x1b95   : > { %v5953_v21 = vsub.f32 %v5937_v62, %v5949_v18 }
0x1b96   : > { %v8590_v22 = vpop.eup %8589 }
0x1b97   : > { %v5960_v24 = vmul.f32 1.442695, %v5953_v21  ;;  %v5968_v25 = vsel %vm1285_vm4, %v8590_v22, 0.0 }
0x1b98   : > { %5969 = vadd.xlane.f32.xlu0 %v5968_v25 }
0x1b99   : > { %8593 = vpow2.f32 %v5960_v24 }
0x1b9e   : > { %v8592_v23 = vpop.eup %8591 }
0x1b9f   : > { %v5965_v27 = vsel %vm1285_vm4, %v8592_v23, 0.0 }
0x1ba0   : > { %5966 = vadd.xlane.f32.xlu1 %v5965_v27 }
0x1ba6   : > { %v8594_v12 = vpop.eup %8593 }
0x1ba7   : > { %v5971_v28 = vsel %vm1285_vm4, %v8594_v12, 0.0 }
0x1ba8   : > { %5972 = vadd.xlane.f32.xlu1 %v5971_v28 }
0x1c19   : > { %v5964_v30 = vpop.xlane.xlu0 %5963 }
0x1c1a   : > { %8595 = vrcp.f32 %v5964_v30 }
0x1c21   : > { %v5970_v31 = vpop.xlane.xlu0 %5969 }
0x1c22   : > { %8597 = vrcp.f32 %v5970_v31  ;;  %v7274_v31 = vld [vmem:[%s10025_s3 + $0x3] ss:$0 sm:$0xff] }
0x1c27   : > { %v8596_v9 = vpop.eup %8595 }
0x1c28   : > { %v5978_v33 = vmul.f32 %v8596_v9, %v8588_v14 }
0x1c29   : > { %v5967_v20 = vpop.xlane.xlu1 %5966 }
0x1c2a   : > { %v5982_v34 = vpack.c.bf16 %v5978_v33, %v5978_v33  ;;  %8599 = vrcp.f32 %v5967_v20 }
0x1c2c   : > { %8274 = vmatmul.mubr.msk.bf16.vlgmr.msra.gmra.mxu1 %vm1285_vm4, %v5982_v34 }
0x1c2d   : > { %8284 = vmatpush3.bf16.msra.mxu1 %v6086_v29  ;;  %8285 = vmatprep.mubr.msk.bf16.mxu1 %vm8678_vm0, %v8677_v1 }
0x1c2e   : > { %8295 = vmatprep.subr.bf16.mxu1 %v8677_v1 }
0x1c2f   : > { %v8598_v36 = vpop.eup %8597 }
0x1c30   : > { %v5980_v16 = vmul.f32 %v8598_v36, %v8590_v22 }
0x1c31   : > { %v5973_v37 = vpop.xlane.xlu1 %5972 }
0x1c32   : > { %v5984_v38 = vpack.c.bf16 %v5980_v16, %v5980_v16  ;;  %8601 = vrcp.f32 %v5973_v37 }
0x1c34   : > { %8286 = vmatmul.mubr.msk.bf16.vlgmr.msra.gmra.mxu1 %vm1285_vm4, %v5984_v38 }
0x1c35   : > { %8297 = vmatprep.mubr.msk.bf16.mxu1 %vm8678_vm0, %v8677_v1  ;;  %8296 = vmatpush3.bf16.msra.mxu1 %v8517_v40 }
0x1c36   : > { %8307 = vmatprep.subr.bf16.mxu1 %v8677_v1 }
0x1c37   : > { %v8600_v26 = vpop.eup %8599 }
0x1c38   : > { %v5979_v35 = vmul.f32 %v8600_v26, %v8592_v23 }
0x1c3a   : > { %v5983_v41 = vpack.c.bf16 %v5979_v35, %v5979_v35  ;;  %v8521_v35 = vld [vmem:[%s10028_s6 + $0x38] sm:$0xff]  }
0x1c3c   : > { %8280 = vmatmul.mubr.msk.bf16.vlgmr.msra.gmra.mxu0 %vm1285_vm4, %v5983_v41  ;;  %v8522_v41 = vld [vmem:[%s10028_s6 + $0x30] sm:$0xff]  }
0x1c3d   : > { %8290 = vmatpush3.bf16.msra.mxu0 %v6132_v42  ;;  %8291 = vmatprep.mubr.msk.bf16.mxu0 %vm8678_vm0, %v8677_v1  ;;  %v8524_v42 = vld [vmem:[%s10030_s8 + $0x70] sm:$0xff]  }
0x1c3e   : > { %8301 = vmatprep.subr.bf16.mxu0 %v8677_v1 }
0x1c3f   : > { %v8602_v43 = vpop.eup %8601 }
0x1c40   : > { %v5981_v44 = vmul.f32 %v8602_v43, %v8594_v12 }
0x1c42   : > { %v5985_v45 = vpack.c.bf16 %v5981_v44, %v5981_v44 }
0x1c44   : > { %8292 = vmatmul.mubr.msk.bf16.vlgmr.msra.gmra.mxu0 %vm1285_vm4, %v5985_v45 }
0x1c45   : > { %8303 = vmatprep.mubr.msk.bf16.mxu0 %vm8678_vm0, %v8677_v1  ;;  %8302 = vmatpush3.bf16.msra.mxu0 %v8519_v46  ;;  %v7277_v46 = vld [vmem:[%s10026_s4 + $0x3] ss:$0 sm:$0xff] }
0x1c46   : > { %8313 = vmatprep.subr.bf16.mxu0 %v8677_v1 }
0x1cec   : > { %v6030_v47 = vpop.f32.mrf.mxu1 }
0x1ced   : > { %v6174_v49 = vpack.c.bf16 %v6030_v47, %v6030_v47 }
0x1cee   : > { %v8275_v50 = vpop.f32.mrf.mxu1 }
0x1cef   : > { %8298 = vmatmul.mubr.msk.bf16.vlgmr.msra.gmra.mxu1 %vm1096_vm2, %v6174_v49 }
0x1cf0   : > { %v6033_v51 = vpop.f32.mrf.mxu1  ;;  %8308 = vmatpush3.bf16.msra.mxu1 %v8518_v48  ;;  %8309 = vmatprep.mubr.msk.bf16.mxu1 %vm8678_vm0, %v8677_v1  ;;  %v7278_v48 = vld [vmem:[%s10027_s5 + $0x3] ss:$0 sm:$0xff] }
0x1cf1   : > { %8319 = vmatprep.subr.bf16.mxu1 %v8677_v1 }
0x1cf2   : > { %v8276_v52 = vpop.f32.mrf.mxu1 }
0x1cf3   : > { %v8525_v52 = vld [vmem:[%s10030_s8 + $0x68] sm:$0xff]  }
0x1cf4   : > { %v6122_v53 = vpop.f32.mrf.mxu1 }
0x1cf5   : > { %v6176_v54 = vpack.c.bf16 %v6122_v53, %v6122_v53  ;;  %v8526_v53 = vld [vmem:[%s10030_s8 + $0x60] sm:$0xff]  }
0x1cf6   : > { %v8287_v55 = vpop.f32.mrf.mxu1 }
0x1cf7   : > { %8310 = vmatmul.mubr.msk.bf16.vlgmr.msra.gmra.mxu1 %vm1096_vm2, %v6176_v54  ;;  %v7284_v54 = vld [vmem:[%s10029_s7 + $0x3] ss:$0 sm:$0xff] }
0x1cf8   : > { %v6125_v56 = vpop.f32.mrf.mxu1  ;;  %8323 = vmatprep.mubr.msk.bf16.mxu1 %vm8678_vm0, %v8677_v1  ;;  %8320 = vmatpush3.bf16.msra.mxu1 %v8521_v35 }
0x1cf9   : > { %8321 = vmatprep.subr.bf16.mxu1 %v8677_v1 }
0x1cfa   : > { %v8288_v57 = vpop.f32.mrf.mxu1 }
0x1cfc   : > { %v6076_v58 = vpop.f32.mrf.mxu0  ;;  %8322 = vmatpush3.bf16.msra.mxu1 %v8522_v41 }
0x1cfd   : > { %v6175_v60 = vpack.c.bf16 %v6076_v58, %v6076_v58  ;;  %8339 = vmatprep.subr.bf16.mxu1 %v8677_v1 }
0x1cfe   : > { %v8281_v61 = vpop.f32.mrf.mxu0 }
0x1cff   : > { %8304 = vmatmul.mubr.msk.bf16.vlgmr.msra.gmra.mxu0 %vm1096_vm2, %v6175_v60 }
0x1d00   : > { %v6079_v62 = vpop.f32.mrf.mxu0  ;;  %8314 = vmatpush3.bf16.msra.mxu0 %v8520_v59  ;;  %8315 = vmatprep.mubr.msk.bf16.mxu0 %vm8678_vm0, %v8677_v1 }
0x1d01   : > { %8327 = vmatprep.subr.bf16.mxu0 %v8677_v1 }
0x1d02   : > { %v8282_v63 = vpop.f32.mrf.mxu0 }
0x1d04   : > { %v6168_v0 = vpop.f32.mrf.mxu0 }
0x1d05   : > { %v6177_v2 = vpack.c.bf16 %v6168_v0, %v6168_v0 }
0x1d06   : > { %v8293_v3 = vpop.f32.mrf.mxu0 }
0x1d07   : > { %8316 = vmatmul.mubr.msk.bf16.vlgmr.msra.gmra.mxu0 %vm1096_vm2, %v6177_v2 }
0x1d08   : > { %v6171_v4 = vpop.f32.mrf.mxu0  ;;  %8335 = vmatprep.mubr.msk.bf16.mxu0 %vm8678_vm0, %v8677_v1 }
0x1d0a   : > { %v8294_v5 = vpop.f32.mrf.mxu0 }
0x1daf   : > { %v6230_v6 = vpop.f32.mrf.mxu1 }
0x1db0   : > { %v6383_v22 = vsel %vm472_vm1, %v6230_v6, 0.0 }
0x1db1   : > { %v8299_v7 = vpop.f32.mrf.mxu1 }
0x1db3   : > { %v6233_v8 = vpop.f32.mrf.mxu1 }
0x1db5   : > { %v8300_v10 = vpop.f32.mrf.mxu1 }
0x1db7   : > { %v6328_v11 = vpop.f32.mrf.mxu1 }
0x1db8   : > { %v6386_v27 = vsel %vm472_vm1, %v6328_v11, 0.0 }
0x1db9   : > { %v8311_v13 = vpop.f32.mrf.mxu1 }
0x1dba   : > { %v8679_v13 = vmov 1  }
0x1dbb   : > { %v6331_v14 = vpop.f32.mrf.mxu1  ;;  %8389 = vset.pattern.permute.xlu1 %v8679_v13 }
0x1dbc   : > { %v8614_v14 = vld [vmem:[%s8823_s20] sm:$0xff]  ;;  %s402_s20 = sand.u32 1, %s8667_s22  }
0x1dbd   : > { %v8312_v15 = vpop.f32.mrf.mxu1  ;;  %s6812_s18 = sshll.u32 %s402_s20, 3  ;;  %s6736_s17 = scalar_lea.sflag [#allocation3], %s402_s20 }
0x1dbe   : > { %v8680_v15 = vmov 0   ;;  %s404_s26 = scalar_lea.vmem [#allocation2], %s6812_s18  ;;  %s8619_s18 = sshll.u32 %s8681_s25, 4  ;;  %s8620_s18 = int_to_ptr.vmem [resolvable:$false] %s8619_s18 }
0x1dbf   : > { %v6279_v17 = vpop.f32.mrf.mxu0  ;;  %8388 = vset.pattern.permute.xlu0 %v8680_v15  ;;  %s6749_s28 = sshll.u32 %s404_s26, 4  ;;  %s8621_s1 = scalar_lea.vmem %s8620_s18, 256  ;;  %s6750_s28 = int_to_ptr.vmem [resolvable:$true] %s6749_s28 }
0x1dc0   : > { %v6384_v18 = vsel %vm472_vm1, %v6279_v17, 0.0  ;;  %s8615_s0 = scalar_lea.vmem %s6750_s28, 128  ;;  %p8622_p0 = scmp.lt.s32.totalorder %s6750_s28, %s8620_s18 }
0x1dc1   : > { %v8305_v21 = vpop.f32.mrf.mxu0  ;;  %v6385_v24 = vadd.f32 %v6384_v18, %v6383_v22  ;;  %p8616_p11 = scmp.ne.s32.totalorder %s6750_s28, %s8615_s0  ;;  %p8623_p1 = scmp.lt.s32.totalorder %s8621_s1, %s8615_s0 }
0x1dc3   : > { %v6282_v25 = vpop.f32.mrf.mxu0  ;;  %v6387_v28 = vadd.f32 %v6386_v27, %v6385_v24  ;;  %v7305_v24 = vld [vmem:[%s10032_s10 + $0x3] ss:$0 sm:$0xff]  ;;  %p8617_p12 = pnand %p8616_p11, %p8785_p5  ;;  %p8624_p2 = por %p8623_p1, %p8622_p0 }
0x1dc5   : > { %v8306_v23 = vpop.f32.mrf.mxu0  ;;  %p8618_p13 = pneg %p8617_p12 }
0x1dc6   : > { %v7306_v23 = vld [vmem:[%s10033_s11 + $0x3] ss:$0 sm:$0xff] }
0x1dc7   : > { %v6377_v12 = vpop.f32.mrf.mxu0  ;;  %p8625_p3 = pnand %p8624_p2, %p8618_p13 }
0x1dc8   : > { %v6388_v30 = vsel %vm472_vm1, %v6377_v12, 0.0 }
0x1dc9   : > { %v6389_v9 = vadd.f32 %v6388_v30, %v6387_v28  ;;  %v8317_v32 = vpop.f32.mrf.mxu0 }
0x1dcb   : > { %v6398_v33 = vadd.f32 %v7274_v31, %v6389_v9  ;;  %v6380_v20 = vpop.f32.mrf.mxu0  ;;  %v6705_v31 = vlaneseq }
0x1dcd   : > { %v8318_v34 = vpop.f32.mrf.mxu0  ;;  %v6399_v29 = vadd.f32 %v6398_v33, %v9703_v19  ;;  %v8523_v19 = vld [vmem:[%s10030_s8 + $0x78] sm:$0xff]   ;;  %v6706_v32 = vshrl.u32 %v6705_v31, 7 }
0x1dce   : > { %8328 = vmatpush3.bf16.msra.mxu0 %v8523_v19 }
0x1dcf   : > { %v6404_v36 = vsel %vm472_vm1, %v6399_v29, 0.0  ;;  %8329 = vmatprep.subr.bf16.mxu0 %v8677_v1  ;;  %v6707_v33 = vsub.s32 0, %v6706_v32  ;;  %v6719_v20 = vsub.s32 1, %v6706_v32 }
0x1dd0   : > { %6405 = vadd.xlane.f32.xlu0 %v6404_v36 }
0x1dd2   : > { %8330 = vmatpush3.bf16.msra.mxu0 %v8524_v42 }
0x1dd3   : > { %8331 = vmatprep.subr.bf16.mxu0 %v8677_v1 }
0x1dd6   : > { %8332 = vmatpush3.bf16.msra.mxu0 %v8525_v52 }
0x1dd7   : > { %8333 = vmatprep.subr.bf16.mxu0 %v8677_v1 }
0x1dda   : > { %8334 = vmatpush3.bf16.msra.mxu0 %v8526_v53 }
0x1e59   : > { %v6406_v16 = vpop.xlane.xlu0 %6405 }
0x1e5a   : > { %v6407_v37 = vmul.f32 0.03125, %v6406_v16 }
0x1e5c   : > { %v6408_v38 = vsub.f32 %v6399_v29, %v6407_v37 }
0x1e5e   : > { %v6409_v26 = vmul.f32 %v6408_v38, %v6408_v38 }
0x1e60   : > { %v6410_v39 = vsel %vm472_vm1, %v6409_v26, 0.0 }
0x1e61   : > { %6411 = vadd.xlane.f32.xlu1 %v6410_v39 }
0x1eea   : > { %v6412_v43 = vpop.xlane.xlu1 %6411 }
0x1eeb   : > { %v6413_v44 = vmul.f32 0.03125, %v6412_v43 }
0x1eed   : > { %v6414_v45 = vadd.f32 1e-05, %v6413_v44 }
0x1eef   : > { %8603 = vrsqrt.f32 %v6414_v45 }
0x1efc   : > { %v8604_v40 = vpop.eup %8603 }
0x1efd   : > { %v6416_v47 = vmul.f32 %v8604_v40, %v6408_v38 }
0x1eff   : > { %v6423_v49 = vmul.f32 %v7277_v46, %v6416_v47 }
0x1f01   : > { %v6430_v50 = vadd.f32 %v7278_v48, %v6423_v49 }
0x1f03   : > { %v6431_v51 = vpack.c.bf16 %v6430_v50, %v6430_v50 }
0x1f05   : > { %8324 = vmatmul.mubr.msk.bf16.vlgmr.msra.gmra.mxu1 %vm472_vm1, %v6431_v51 }
0x1f06   : > { %8341 = vmatprep.mubr.msk.bf16.mxu1 %vm8678_vm0, %v8677_v1  ;;  %v7297_v1 = vld [vmem:[%s10031_s9 + $0x3] ss:$0 sm:$0xff] }
0x1fc5   : > { %v6494_v55 = vpop.f32.mrf.mxu1 }
0x1fc6   : > { %v6495_v56 = vadd.f32 %v7284_v54, %v6494_v55 }
0x1fc7   : > { %v8325_v57 = vpop.f32.mrf.mxu1 }
0x1fc8   : > { %v6500_v58 = vmax.f32 %v6495_v56, 0.0 }
0x1fc9   : > { %v6497_v59 = vpop.f32.mrf.mxu1 }
0x1fca   : > { %v6501_v60 = vpack.c.bf16 %v6500_v58, %v6500_v58 }
0x1fcb   : > { %v8326_v61 = vpop.f32.mrf.mxu1 }
0x1fcc   : > { %8336 = vmatmul.mubr.msk.bf16.vlgmr.msra.gmra.mxu0 %vm1885_vm5, %v6501_v60 }
0x208c   : > { %v6580_v62 = vpop.f32.mrf.mxu0 }
0x208d   : > { %v6581_v63 = vadd.f32 %v7297_v1, %v6580_v62 }
0x208e   : > { %v8337_v0 = vpop.f32.mrf.mxu0 }
0x208f   : > { %v6586_v2 = vadd.f32 %v6581_v63, %v6430_v50 }
0x2090   : > { %v6583_v3 = vpop.f32.mrf.mxu0 }
0x2091   : > { %v6591_v4 = vsel %vm472_vm1, %v6586_v2, 0.0 }
0x2092   : > { %6592 = vadd.xlane.f32.xlu0 %v6591_v4  ;;  %v8338_v5 = vpop.f32.mrf.mxu0 }
0x20a8   : > { %6702 = vperm.xlu0 %8388, %v8614_v14  }
0x20ac   : > { %8390 = vset.pattern.permute.xlu0 %v8679_v13 }
0x211b   : > { %v6593_v6 = vpop.xlane.xlu0 %6592 }
0x211c   : > { %v6594_v7 = vmul.f32 0.03125, %v6593_v6 }
0x211e   : > { %v6595_v8 = vsub.f32 %v6586_v2, %v6594_v7 }
0x2120   : > { %v6596_v10 = vmul.f32 %v6595_v8, %v6595_v8 }
0x2122   : > { %v6597_v11 = vsel %vm472_vm1, %v6596_v10, 0.0 }
0x2123   : > { %6598 = vadd.xlane.f32.xlu1 %v6597_v11  ;;  %v6703_v16 = vpop.permute.xlu0 %6702 }
0x2134   : > { %6714 = vperm.xlu1 %8389, %v8614_v14  }
0x215d   : > { %6668 = vxpose.xlu1.b32.start.end [1/1] (short) (narrow) %v8614_v14, 8 }
0x21ac   : > { %v6599_v17 = vpop.xlane.xlu1 %6598 }
0x21ad   : > { %v6600_v18 = vmul.f32 0.03125, %v6599_v17 }
0x21af   : > { %v6601_v21 = vadd.f32 1e-05, %v6600_v18 }
0x21b0   : > { %v6715_v9 = vpop.permute.xlu1 %6714 }
0x21b1   : > { %8605 = vrsqrt.f32 %v6601_v21 }
0x21be   : > { %v8606_v22 = vpop.eup %8605 }
0x21bf   : > { %v6603_v25 = vmul.f32 %v8606_v22, %v6595_v8 }
0x21c1   : > { %v6610_v27 = vmul.f32 %v7305_v24, %v6603_v25 }
0x21c3   : > { %v6617_v12 = vadd.f32 %v7306_v23, %v6610_v27 }
0x21c5   : > { %v6618_v28 = vpack.c.bf16 %v6617_v12, %v6617_v12 }
0x21c7   : > { %v6620_v30 = vsel %vm472_vm1, %v6618_v28, 0 }
0x21c8   : > { %8340 = vmatpush3.bf16.xpose.msra.mxu1 %v6620_v30 }
0x21cf   : > { %8342 = vmatmul.mubr.msk.bf16.vlgmr.msra.gmra.mxu1 %vm472_vm1, %v6618_v28 }
0x21d9   : > { %v6684_v34 = vpop.trf.xlu1 }
0x21da   : > { %v6708_v29 = vrot.slane %v6684_v34, %v6707_v33  ;;  %v6720_v36 = vrot.slane %v6684_v34, %v6719_v20 }
0x21dc   : > { %v6721_v37 = vsub.f32 %v6715_v9, %v6720_v36  ;;  %v6709_v38 = vsub.f32 %v6703_v16, %v6708_v29 }
0x21de   : > { %v6722_v26 = vadd.f32 1e-06, %v6721_v37  ;;  %v6710_v39 = vadd.f32 1e-06, %v6709_v38 }
0x21e0   : > { %v6723_v35 = vmul.f32 %v6722_v26, %v6722_v26  ;;  %v6711_v41 = vmul.f32 %v6710_v39, %v6710_v39 }
0x21e2   : > { %v6724_v43 = vadd.f32 %v6723_v35, %v6711_v41 }
0x21e4   : > { %vm6727_vm6 = vcmp.eq.f32.partialorder %v6724_v43, inf  ;;  %v6730_v50 = vand.u32 2147483648, %v6724_v43  ;;  %vm6729_vm7 = vcmp.eq.f32.partialorder %v6724_v43, 0.0 }
0x228f   : > { %v6656_v19 = vpop.f32.mrf.mxu1 }
0x2290   : > { %v7308_v42 = vmul.f32 -1.442695, %v6656_v19 }
0x2291   : > { %v8343_v44 = vpop.f32.mrf.mxu1 }
0x2292   : > { %8607 = vpow2.f32 %v7308_v42 }
0x2293   : > { %v6659_v45 = vpop.f32.mrf.mxu1  ;;  %8609 = vrsqrt.f32 %v6724_v43 }
0x2295   : > { %v8344_v40 = vpop.f32.mrf.mxu1 }
0x229f   : > { %v8608_v46 = vpop.eup %8607 }
0x22a0   : > { %v6665_v47 = vadd.f32 1.0, %v8608_v46  ;;  %v8610_v48 = vpop.eup %8609 }
0x22a1   : > { %v6726_v49 = vmul.f32 %v8610_v48, %v6724_v43 }
0x22a2   : > { %8611 = vrcp.f32 %v6665_v47 }
0x22a3   : > { %v6728_v51 = vsel %vm6727_vm6, %v6724_v43, %v6726_v49 }
0x22a4   : > { %v6731_v52 = vsel %vm6729_vm7, %v6730_v50, %v6728_v51 }
0x22a5   : > { %vm6732_vm8 = vcmp.lt.f32.partialorder %v6731_v52, 2.0 }
0x22af   : > { %v8612_v53 = vpop.eup %8611 }
0x22b0   : > { %v6733_v54 = vsel %vm6732_vm8, %v8612_v53, 0.0 }
0x22b1   : > { %6734 = vst.msk [vmem:[%s404_s26] sm:$0xff] %vm1285_vm4, %v6733_v54 }
0x22b2   : > { %8628 = shalt.err (!%p8625_p3)
}
0x22b3   : > { %s8629_s19 = scalar_lea.hbm %s9986_s16, 128  ;;  %s8633_s29 = scalar_lea.hbm %s10034_s12, 256 }
0x22b4   : > { %p8630_p4 = scmp.ne.s32.totalorder %s9986_s16, %s8629_s19  ;;  %p8634_p9 = scmp.lt.s32.totalorder %s9986_s16, %s10034_s12 }
0x22b5   : > { %p8635_p10 = scmp.lt.s32.totalorder %s8633_s29, %s8629_s19 }
0x22b6   : > { %p8631_p7 = pnand %p8630_p4, %p8785_p5 }
0x22b7   : > { %p8636_p11 = por %p8635_p10, %p8634_p9 }
0x22b8   : > { %p8632_p8 = pneg %p8631_p7 }
0x22ba   : > { %p8637_p12 = pnand %p8636_p11, %p8632_p8 }
0x22bc   : > { %8640 = shalt.err (!%p8637_p12)
}
0x22bd   : > { %8345 = dma.vmem_to_hbm [thread:$0]  (%p8785_p5), %s6750_s28, 128, %s9986_s16, %s6736_s17  }
0x22be PF: > { %p8351_p13 = scmp.ge.s32.totalorder %s8675_s24, 2  ;;  %s6761_s0 = sand.u32 1, %s8663_s21  }
0x22bf   : > { %s6762_s1 = scalar_lea.sflag [#allocation3], %s6761_s0 }
0x22c0   : > { %p8348_p0 = pnand %p8351_p13, %p8789_p6 }
0x22c2   : > { %p8349_p1 = pneg %p8348_p0 }
0x22c4   : > { %8658 = dma.done.wait (%p8349_p1), %s6762_s1, 128  }
0x22c5   : > { %8660 = vsyncadd (%p8349_p1), %s6762_s1, 4294967168  ;;  %p22_p2 = scmp.ge.s32.totalorder %s8772_s27, 4   ;;  %s10041_s21 = smov %s8667_s22 }
0x22c6   : > { %s10042_s22 = smov %s8671_s23  ;;  %s10043_s23 = smov %s8783_s30 }
0x22c7   : > { %s10044_s24 = smov %s8772_s27  ;;  %24 = sbr.rel (!%p22_p2) target bundleno = 6 (0x6), region = 136 }
0x22cc   :  { %6767 = vsyncpa [#allocation3], 1 }
0x22cd   :  { %6769 = vsyncpa [#allocation3 + $0x1], 1 }

</bundles_post_ra>
